<compile_context>
chip_gen: v7x
topology: tpu7x:2x2x1
jax: 0.10.0
libtpu: 0.0.40
codegen_flags: <defaults>
</compile_context>

<pallas_src>
import functools

import jax
import jax.numpy as jnp
from jax.experimental import pallas as pl
from jax.experimental.pallas import tpu as pltpu

_BN_EPS = 1e-5
_C_PAD = 128  # every channel dimension is zero-padded to 128 lanes

_DW_CFG = [  # (cin, cout, stride) for each conv_dw block
    (32, 64, 1), (64, 128, 2), (128, 128, 1), (128, 128, 2), (128, 128, 1),
    (128, 128, 2), (128, 128, 1), (128, 128, 1), (128, 128, 1), (128, 128, 1),
]


def _conv_out(size, stride):  # 3x3 conv, padding 1
    return (size + 2 - 3) // stride + 1


def _round_up(x, m):
    return ((x + m - 1) // m) * m


def _make_plan(bt, h, w, ch_in, n_classes):
    ho, wo = _conv_out(h, 2), _conv_out(w, 2)
    stem = dict(cin=ch_in, ho=ho, wo=wo, k_pad=_round_up(9 * ch_in, 8))
    blocks = []
    hh, ww = ho, wo
    for cin, cout, s in _DW_CFG:
        if s == 2:
            assert hh % 2 == 0 and ww % 2 == 0, "stride-2 blocks need even input"
        oh, ow = _conv_out(hh, s), _conv_out(ww, s)
        blocks.append(dict(cin=cin, cout=cout, stride=s,
                           hi=hh, wi=ww, ho=oh, wo=ow))
        hh, ww = oh, ow
    ncls_pad = _round_up(max(n_classes, 128), 128)
    return dict(bt=bt, stem=stem, blocks=blocks,
                n_classes=n_classes, ncls_pad=ncls_pad)


# ---------------------------------------------------------------------------
# Single fused kernel: stem -> 10 dw/pw blocks -> global avg pool -> fc.
# All inter-layer activations stay in VMEM; one grid step = one batch tile.
# ---------------------------------------------------------------------------
def _fused_mobilenet_kernel(plan, patches_ref, stem_w_ref, stem_b_ref,
                            dww_ref, dwb_ref, pww_ref, pwb_ref,
                            fcw_ref, fcb_ref, out_ref, *pad_refs):
    bt = plan["bt"]
    blocks = plan["blocks"]
    C = _C_PAD

    # Zero the padded activation buffers (provides the 1-pixel conv halo; the
    # interiors are fully overwritten below).  Done per grid step because
    # scratch may be per-core when the grid axis is "parallel".
    for P in pad_refs:
        P[...] = jnp.zeros(P.shape, P.dtype)

    # ---- stem: im2col matmul (bf16 MXU, f32 acc) + bias + ReLU --------------
    st = plan["stem"]
    ho, wo = st["ho"], st["wo"]
    y = jnp.dot(patches_ref[...], stem_w_ref[...],
                preferred_element_type=jnp.float32)
    y = jnp.maximum(y + stem_b_ref[...], 0.0)
    # One lane-dense slab store into the first padded buffer's interior.
    pad_refs[0][:, 1:1 + ho, 1:1 + wo, :] = y.reshape(bt, ho, wo, C)

    pooled = None
    for b, blk in enumerate(blocks):
        P = pad_refs[b]
        hi, wi, s = blk["hi"], blk["wi"], blk["stride"]
        ho, wo = blk["ho"], blk["wo"]
        w9 = dww_ref[b]                                    # [9, C] f32

        # Depthwise 3x3: 9-tap slab accumulation at stride-1 resolution (f32).
        fh = hi if s == 2 else ho
        fw = wi if s == 2 else wo
        acc = None
        for kh in range(3):
            for kw in range(3):
                tap = P[:, kh:kh + fh, kw:kw + fw, :]       # [bt, fh, fw, C]
                wt = w9[3 * kh + kw:3 * kh + kw + 1, :]     # [1, C]
                t = tap * wt
                acc = t if acc is None else acc + t
        if s == 2:
            # Vectorized stride-2: keep even columns, then even rows.
            acc = acc.reshape(bt, hi, wo, 2, C)[:, :, :, 0, :]   # [bt, hi, wo, C]
            acc = acc.reshape(bt, ho, 2, wo, C)[:, :, 0, :, :]   # [bt, ho, wo, C]

        # dw bias + ReLU (f32), then 1x1 pointwise conv on the MXU in bf16.
        m = bt * ho * wo
        x2 = jnp.maximum(acc.reshape(m, C) + dwb_ref[b], 0.0)
        y2 = jnp.dot(x2.astype(jnp.bfloat16), pww_ref[b],
                     preferred_element_type=jnp.float32)
        y2 = jnp.maximum(y2 + pwb_ref[b], 0.0)

        if b + 1 < len(blocks):
            # One slab store into the next padded buffer's interior.
            pad_refs[b + 1][:, 1:1 + ho, 1:1 + wo, :] = y2.reshape(bt, ho, wo, C)
        else:
            # AdaptiveAvgPool2d(1): mean over spatial positions per image.
            hw = ho * wo
            pooled = y2 if hw == 1 else jnp.mean(y2.reshape(bt, hw, C), axis=1)

    # ---- head: Linear(128, n_classes), lane-padded (bf16 MXU) ---------------
    logits = jnp.dot(pooled.astype(jnp.bfloat16), fcw_ref[...],
                     preferred_element_type=jnp.float32) + fcb_ref[...]
    out_ref[...] = logits


# ---------------------------------------------------------------------------
# Wrapper: weight folding / packing, stem im2col, single pallas_call.
# ---------------------------------------------------------------------------
def _fold_bn(gamma, beta, mean, var):
    scale = gamma / jnp.sqrt(var + _BN_EPS)
    bias = beta - mean * scale
    return scale, bias


def _extract_stem_patches(x, k_pad):
    # x: [N, H, W, C] f32; 3x3 conv, stride 2, padding 1 -> im2col rows (n,h,w)
    n, h, w, cin = x.shape
    ho, wo = _conv_out(h, 2), _conv_out(w, 2)
    xp = jnp.pad(x, ((0, 0), (1, 1), (1, 1), (0, 0)))
    taps = []
    for kh in range(3):
        for kw in range(3):
            taps.append(xp[:, kh:kh + 2 * (ho - 1) + 1:2,
                           kw:kw + 2 * (wo - 1) + 1:2, :])
    pat = jnp.stack(taps, axis=3)                       # [n, ho, wo, 9, cin]
    pat = pat.reshape(n * ho * wo, 9 * cin)
    pat = jnp.pad(pat, ((0, 0), (0, k_pad - 9 * cin)))  # K pad (27 -> 32)
    return pat.astype(jnp.bfloat16)


def _prep_params(params, plan):
    C = _C_PAD
    st_plan = plan["stem"]
    cin, k_pad = st_plan["cin"], st_plan["k_pad"]

    st = params["stem"]
    s_scale, s_bias = _fold_bn(st["gamma"], st["beta"], st["mean"], st["var"])
    w = (st["w"] * s_scale[None, None, None, :]).reshape(9 * cin, 32)
    stem_w = jnp.zeros((k_pad, C), jnp.float32).at[:9 * cin, :32].set(w)
    stem_b = jnp.zeros((1, C), jnp.float32).at[0, :32].set(s_bias)

    nb = len(plan["blocks"])
    dww = jnp.zeros((nb, 9, C), jnp.float32)
    dwb = jnp.zeros((nb, 1, C), jnp.float32)
    pww = jnp.zeros((nb, C, C), jnp.float32)
    pwb = jnp.zeros((nb, 1, C), jnp.float32)
    for b, (bp, blk) in enumerate(zip(params["blocks"], plan["blocks"])):
        ci, co = blk["cin"], blk["cout"]
        dsc, dbi = _fold_bn(bp["dw_gamma"], bp["dw_beta"],
                            bp["dw_mean"], bp["dw_var"])
        psc, pbi = _fold_bn(bp["pw_gamma"], bp["pw_beta"],
                            bp["pw_mean"], bp["pw_var"])
        dw_w = (bp["dw_w"] * dsc[None, None, :]).reshape(9, ci)
        pw_w = bp["pw_w"] * psc[None, :]
        dww = dww.at[b, :, :ci].set(dw_w)
        dwb = dwb.at[b, 0, :ci].set(dbi)
        pww = pww.at[b, :ci, :co].set(pw_w)
        pwb = pwb.at[b, 0, :co].set(pbi)

    ncls, ncp = plan["n_classes"], plan["ncls_pad"]
    fcw = jnp.zeros((C, ncp), jnp.float32).at[:, :ncls].set(params["fc_w"])
    fcb = jnp.zeros((1, ncp), jnp.float32).at[0, :ncls].set(params["fc_b"])
    return dict(stem_w=stem_w.astype(jnp.bfloat16), stem_b=stem_b,
                dww=dww, dwb=dwb, pww=pww.astype(jnp.bfloat16), pwb=pwb,
                fcw=fcw.astype(jnp.bfloat16), fcb=fcb)


def mobilenet_v1_forward(x_nchw, params, batch_tile=None):
    x = jnp.transpose(x_nchw, (0, 2, 3, 1)).astype(jnp.float32)  # NCHW -> NHWC
    n, h, w, cin = x.shape
    ncls = params["fc_w"].shape[-1]
    if batch_tile is None:
        # Keep the output block (8,128)-friendly: full batch or a multiple of 8.
        batch_tile = 8 if n % 8 == 0 else n
    assert n % batch_tile == 0
    bt = batch_tile
    plan = _make_plan(bt, h, w, cin, ncls)
    st = plan["stem"]
    hw0 = st["ho"] * st["wo"]

    patches = _extract_stem_patches(x, st["k_pad"])              # [n*hw0, k_pad]
    pp = _prep_params(params, plan)
    inputs = [patches, pp["stem_w"], pp["stem_b"], pp["dww"], pp["dwb"],
              pp["pww"], pp["pwb"], pp["fcw"], pp["fcb"]]

    def _resident(a):
        return pl.BlockSpec(a.shape, lambda i, _nd=a.ndim: (0,) * _nd)

    in_specs = [pl.BlockSpec((bt * hw0, st["k_pad"]), lambda i: (i, 0))]
    in_specs += [_resident(a) for a in inputs[1:]]

    # One padded NHWC activation buffer per block input (channel dim = 128).
    scratch_shapes = [
        pltpu.VMEM((bt, blk["hi"] + 2, blk["wi"] + 2, _C_PAD), jnp.float32)
        for blk in plan["blocks"]
    ]

    out = pl.pallas_call(
        functools.partial(_fused_mobilenet_kernel, plan),
        out_shape=jax.ShapeDtypeStruct((n, plan["ncls_pad"]), jnp.float32),
        grid=(n // bt,),
        in_specs=in_specs,
        out_specs=pl.BlockSpec((bt, plan["ncls_pad"]), lambda i: (i, 0)),
        scratch_shapes=scratch_shapes,
        compiler_params=pltpu.CompilerParams(
            dimension_semantics=("parallel",)),
    )(*inputs)
    return out[:, :ncls]


# ---------------------------------------------------------------------------
# Parameters (deterministic, in-script; PyTorch-default BN stats, eval mode)
# ---------------------------------------------------------------------------
def init_params(key, ch_in, n_classes):
    keys = jax.random.split(key, 3 + 2 * len(_DW_CFG))
    ki = iter(keys)

    def bn(c):
        return (jnp.ones((c,), jnp.float32), jnp.zeros((c,), jnp.float32),
                jnp.zeros((c,), jnp.float32), jnp.ones((c,), jnp.float32))

    g, be, mu, va = bn(32)
    params = {
        "stem": {"w": jax.random.normal(next(ki), (3, 3, ch_in, 32),
                                        jnp.float32) * 0.1,
                 "gamma": g, "beta": be, "mean": mu, "var": va},
        "blocks": [],
    }
    for cin, cout, _ in _DW_CFG:
        dg, dbt, dmu, dva = bn(cin)
        pg, pbt, pmu, pva = bn(cout)
        params["blocks"].append({
            "dw_w": jax.random.normal(next(ki), (3, 3, cin), jnp.float32) * 0.1,
            "dw_gamma": dg, "dw_beta": dbt, "dw_mean": dmu, "dw_var": dva,
            "pw_w": jax.random.normal(next(ki), (cin, cout), jnp.float32) * 0.1,
            "pw_gamma": pg, "pw_beta": pbt, "pw_mean": pmu, "pw_var": pva,
        })
    params["fc_w"] = jax.random.normal(next(ki), (128, n_classes),
                                       jnp.float32) * 0.1
    params["fc_b"] = jax.random.normal(next(ki), (n_classes,), jnp.float32) * 0.1
    return params


if __name__ == "__main__":
    key = jax.random.PRNGKey(0)
    kx, kp = jax.random.split(key)
    # CIFAR-like small input: batch=2, ch_in=3, spatial=16 (NCHW, like PyTorch)
    x = jax.random.normal(kx, (2, 3, 16, 16), jnp.float32)
    params = init_params(kp, ch_in=3, n_classes=10)

    fwd = jax.jit(mobilenet_v1_forward)
    out = fwd(x, params)
    jax.block_until_ready(out)
    assert out.shape == (2, 10) and out.dtype == jnp.float32
    print("KERNEL_OK")
</pallas_src>

<mosaic_0001>
module attributes {stable_mosaic.version = 11 : i64} {
  func.func @_fused_mobilenet_kernel(%arg0: i32, %arg1: memref<128x32xbf16, #tpu.memory_space<vmem>>, %arg2: memref<32x128xbf16, #tpu.memory_space<vmem>>, %arg3: memref<1x128xf32, #tpu.memory_space<vmem>>, %arg4: memref<10x9x128xf32, #tpu.memory_space<vmem>>, %arg5: memref<10x1x128xf32, #tpu.memory_space<vmem>>, %arg6: memref<10x128x128xbf16, #tpu.memory_space<vmem>>, %arg7: memref<10x1x128xf32, #tpu.memory_space<vmem>>, %arg8: memref<128x128xbf16, #tpu.memory_space<vmem>>, %arg9: memref<1x128xf32, #tpu.memory_space<vmem>>, %arg10: memref<2x128xf32, #tpu.memory_space<vmem>>, %arg11: memref<2x10x10x128xf32, #tpu.memory_space<vmem>>, %arg12: memref<2x10x10x128xf32, #tpu.memory_space<vmem>>, %arg13: memref<2x6x6x128xf32, #tpu.memory_space<vmem>>, %arg14: memref<2x6x6x128xf32, #tpu.memory_space<vmem>>, %arg15: memref<2x4x4x128xf32, #tpu.memory_space<vmem>>, %arg16: memref<2x4x4x128xf32, #tpu.memory_space<vmem>>, %arg17: memref<2x3x3x128xf32, #tpu.memory_space<vmem>>, %arg18: memref<2x3x3x128xf32, #tpu.memory_space<vmem>>, %arg19: memref<2x3x3x128xf32, #tpu.memory_space<vmem>>, %arg20: memref<2x3x3x128xf32, #tpu.memory_space<vmem>>) attributes {dimension_semantics = [#tpu.dimension_semantics<parallel>], iteration_bounds = array<i64: 1>, scalar_prefetch = 0 : i64, scratch_operands = 10 : i64, tpu.core_type = #tpu.core_type<tc>, window_params = [{transform_indices = @transform_0, window_bounds = array<i64: 128, 32>}, {pipeline_mode = #tpu.pipeline_mode<synchronous>, transform_indices = @transform_1, window_bounds = array<i64: 32, 128>}, {pipeline_mode = #tpu.pipeline_mode<synchronous>, transform_indices = @transform_2, window_bounds = array<i64: 1, 128>}, {pipeline_mode = #tpu.pipeline_mode<synchronous>, transform_indices = @transform_3, window_bounds = array<i64: 10, 9, 128>}, {pipeline_mode = #tpu.pipeline_mode<synchronous>, transform_indices = @transform_4, window_bounds = array<i64: 10, 1, 128>}, {pipeline_mode = #tpu.pipeline_mode<synchronous>, transform_indices = @transform_5, window_bounds = array<i64: 10, 128, 128>}, {pipeline_mode = #tpu.pipeline_mode<synchronous>, transform_indices = @transform_6, window_bounds = array<i64: 10, 1, 128>}, {pipeline_mode = #tpu.pipeline_mode<synchronous>, transform_indices = @transform_7, window_bounds = array<i64: 128, 128>}, {pipeline_mode = #tpu.pipeline_mode<synchronous>, transform_indices = @transform_8, window_bounds = array<i64: 1, 128>}, {transform_indices = @transform_9, window_bounds = array<i64: 2, 128>}]} {
    %cst = arith.constant 0.000000e+00 : f32
    %0 = vector.broadcast %cst : f32 to vector<2x10x10x128xf32>
    %c0 = arith.constant 0 : index
    %c0_0 = arith.constant 0 : index
    %c0_1 = arith.constant 0 : index
    %c0_2 = arith.constant 0 : index
    %1 = vector.load %arg11[%c0, %c0_0, %c0_1, %c0_2] : memref<2x10x10x128xf32, #tpu.memory_space<vmem>>, vector<2x10x10x128xf32>
    tpu.vector_store %arg11[%c0, %c0_0, %c0_1, %c0_2], %0 {strides = array<i32>} : memref<2x10x10x128xf32, #tpu.memory_space<vmem>>, vector<2x10x10x128xf32>,
    %cst_3 = arith.constant 0.000000e+00 : f32
    %2 = vector.broadcast %cst_3 : f32 to vector<2x10x10x128xf32>
    %c0_4 = arith.constant 0 : index
    %c0_5 = arith.constant 0 : index
    %c0_6 = arith.constant 0 : index
    %c0_7 = arith.constant 0 : index
    %3 = vector.load %arg12[%c0_4, %c0_5, %c0_6, %c0_7] : memref<2x10x10x128xf32, #tpu.memory_space<vmem>>, vector<2x10x10x128xf32>
    tpu.vector_store %arg12[%c0_4, %c0_5, %c0_6, %c0_7], %2 {strides = array<i32>} : memref<2x10x10x128xf32, #tpu.memory_space<vmem>>, vector<2x10x10x128xf32>,
    %cst_8 = arith.constant 0.000000e+00 : f32
    %4 = vector.broadcast %cst_8 : f32 to vector<2x6x6x128xf32>
    %c0_9 = arith.constant 0 : index
    %c0_10 = arith.constant 0 : index
    %c0_11 = arith.constant 0 : index
    %c0_12 = arith.constant 0 : index
    %5 = vector.load %arg13[%c0_9, %c0_10, %c0_11, %c0_12] : memref<2x6x6x128xf32, #tpu.memory_space<vmem>>, vector<2x6x6x128xf32>
    tpu.vector_store %arg13[%c0_9, %c0_10, %c0_11, %c0_12], %4 {strides = array<i32>} : memref<2x6x6x128xf32, #tpu.memory_space<vmem>>, vector<2x6x6x128xf32>,
    %cst_13 = arith.constant 0.000000e+00 : f32
    %6 = vector.broadcast %cst_13 : f32 to vector<2x6x6x128xf32>
    %c0_14 = arith.constant 0 : index
    %c0_15 = arith.constant 0 : index
    %c0_16 = arith.constant 0 : index
    %c0_17 = arith.constant 0 : index
    %7 = vector.load %arg14[%c0_14, %c0_15, %c0_16, %c0_17] : memref<2x6x6x128xf32, #tpu.memory_space<vmem>>, vector<2x6x6x128xf32>
    tpu.vector_store %arg14[%c0_14, %c0_15, %c0_16, %c0_17], %6 {strides = array<i32>} : memref<2x6x6x128xf32, #tpu.memory_space<vmem>>, vector<2x6x6x128xf32>,
    %cst_18 = arith.constant 0.000000e+00 : f32
    %8 = vector.broadcast %cst_18 : f32 to vector<2x4x4x128xf32>
    %c0_19 = arith.constant 0 : index
    %c0_20 = arith.constant 0 : index
    %c0_21 = arith.constant 0 : index
    %c0_22 = arith.constant 0 : index
    %9 = vector.load %arg15[%c0_19, %c0_20, %c0_21, %c0_22] : memref<2x4x4x128xf32, #tpu.memory_space<vmem>>, vector<2x4x4x128xf32>
    tpu.vector_store %arg15[%c0_19, %c0_20, %c0_21, %c0_22], %8 {strides = array<i32>} : memref<2x4x4x128xf32, #tpu.memory_space<vmem>>, vector<2x4x4x128xf32>,
    %cst_23 = arith.constant 0.000000e+00 : f32
    %10 = vector.broadcast %cst_23 : f32 to vector<2x4x4x128xf32>
    %c0_24 = arith.constant 0 : index
    %c0_25 = arith.constant 0 : index
    %c0_26 = arith.constant 0 : index
    %c0_27 = arith.constant 0 : index
    %11 = vector.load %arg16[%c0_24, %c0_25, %c0_26, %c0_27] : memref<2x4x4x128xf32, #tpu.memory_space<vmem>>, vector<2x4x4x128xf32>
    tpu.vector_store %arg16[%c0_24, %c0_25, %c0_26, %c0_27], %10 {strides = array<i32>} : memref<2x4x4x128xf32, #tpu.memory_space<vmem>>, vector<2x4x4x128xf32>,
    %cst_28 = arith.constant 0.000000e+00 : f32
    %12 = vector.broadcast %cst_28 : f32 to vector<2x3x3x128xf32>
    %c0_29 = arith.constant 0 : index
    %c0_30 = arith.constant 0 : index
    %c0_31 = arith.constant 0 : index
    %c0_32 = arith.constant 0 : index
    %13 = vector.load %arg17[%c0_29, %c0_30, %c0_31, %c0_32] : memref<2x3x3x128xf32, #tpu.memory_space<vmem>>, vector<2x3x3x128xf32>
    tpu.vector_store %arg17[%c0_29, %c0_30, %c0_31, %c0_32], %12 {strides = array<i32>} : memref<2x3x3x128xf32, #tpu.memory_space<vmem>>, vector<2x3x3x128xf32>,
    %cst_33 = arith.constant 0.000000e+00 : f32
    %14 = vector.broadcast %cst_33 : f32 to vector<2x3x3x128xf32>
    %c0_34 = arith.constant 0 : index
    %c0_35 = arith.constant 0 : index
    %c0_36 = arith.constant 0 : index
    %c0_37 = arith.constant 0 : index
    %15 = vector.load %arg18[%c0_34, %c0_35, %c0_36, %c0_37] : memref<2x3x3x128xf32, #tpu.memory_space<vmem>>, vector<2x3x3x128xf32>
    tpu.vector_store %arg18[%c0_34, %c0_35, %c0_36, %c0_37], %14 {strides = array<i32>} : memref<2x3x3x128xf32, #tpu.memory_space<vmem>>, vector<2x3x3x128xf32>,
    %cst_38 = arith.constant 0.000000e+00 : f32
    %16 = vector.broadcast %cst_38 : f32 to vector<2x3x3x128xf32>
    %c0_39 = arith.constant 0 : index
    %c0_40 = arith.constant 0 : index
    %c0_41 = arith.constant 0 : index
    %c0_42 = arith.constant 0 : index
    %17 = vector.load %arg19[%c0_39, %c0_40, %c0_41, %c0_42] : memref<2x3x3x128xf32, #tpu.memory_space<vmem>>, vector<2x3x3x128xf32>
    tpu.vector_store %arg19[%c0_39, %c0_40, %c0_41, %c0_42], %16 {strides = array<i32>} : memref<2x3x3x128xf32, #tpu.memory_space<vmem>>, vector<2x3x3x128xf32>,
    %cst_43 = arith.constant 0.000000e+00 : f32
    %18 = vector.broadcast %cst_43 : f32 to vector<2x3x3x128xf32>
    %c0_44 = arith.constant 0 : index
    %c0_45 = arith.constant 0 : index
    %c0_46 = arith.constant 0 : index
    %c0_47 = arith.constant 0 : index
    %19 = vector.load %arg20[%c0_44, %c0_45, %c0_46, %c0_47] : memref<2x3x3x128xf32, #tpu.memory_space<vmem>>, vector<2x3x3x128xf32>
    tpu.vector_store %arg20[%c0_44, %c0_45, %c0_46, %c0_47], %18 {strides = array<i32>} : memref<2x3x3x128xf32, #tpu.memory_space<vmem>>, vector<2x3x3x128xf32>,
    %c0_48 = arith.constant 0 : index
    %c0_49 = arith.constant 0 : index
    %20 = vector.load %arg1[%c0_48, %c0_49] : memref<128x32xbf16, #tpu.memory_space<vmem>>, vector<128x32xbf16>
    %c0_50 = arith.constant 0 : index
    %c0_51 = arith.constant 0 : index
    %21 = vector.load %arg2[%c0_50, %c0_51] : memref<32x128xbf16, #tpu.memory_space<vmem>>, vector<32x128xbf16>
    %cst_52 = arith.constant dense<0.000000e+00> : vector<128x128xf32>
    %22 = tpu.matmul %20, %21, %cst_52 {dimension_numbers = #tpu.dot_dimension_numbers<[1], [0], [0], [1], [0, 0, 1, 1], [], []>} : vector<128x32xbf16>, vector<32x128xbf16>, vector<128x128xf32> -> vector<128x128xf32>
    %c0_53 = arith.constant 0 : index
    %c0_54 = arith.constant 0 : index
    %23 = vector.load %arg3[%c0_53, %c0_54] : memref<1x128xf32, #tpu.memory_space<vmem>>, vector<1x128xf32>
    %24 = vector.broadcast %23 : vector<1x128xf32> to vector<128x128xf32>
    %25 = arith.addf %22, %24 : vector<128x128xf32>
    %cst_55 = arith.constant 0.000000e+00 : f32
    %26 = vector.broadcast %cst_55 : f32 to vector<128x128xf32>
    %27 = arith.maximumf %25, %26 : vector<128x128xf32>
    %28 = vector.shape_cast %27 : vector<128x128xf32> to vector<2x8x8x128xf32>
    %c0_56 = arith.constant 0 : index
    %c1 = arith.constant 1 : index
    %c1_57 = arith.constant 1 : index
    %c0_58 = arith.constant 0 : index
    %29 = vector.load %arg11[%c0_56, %c1, %c1_57, %c0_58] : memref<2x10x10x128xf32, #tpu.memory_space<vmem>>, vector<2x8x8x128xf32>
    tpu.vector_store %arg11[%c0_56, %c1, %c1_57, %c0_58], %28 {strides = array<i32>} : memref<2x10x10x128xf32, #tpu.memory_space<vmem>>, vector<2x8x8x128xf32>,
    %c0_59 = arith.constant 0 : index
    %c0_60 = arith.constant 0 : index
    %c0_61 = arith.constant 0 : index
    %30 = vector.load %arg4[%c0_59, %c0_60, %c0_61] : memref<10x9x128xf32, #tpu.memory_space<vmem>>, vector<1x9x128xf32>
    %31 = vector.shape_cast %30 : vector<1x9x128xf32> to vector<9x128xf32>
    %c0_62 = arith.constant 0 : index
    %c0_63 = arith.constant 0 : index
    %c0_64 = arith.constant 0 : index
    %c0_65 = arith.constant 0 : index
    %32 = vector.load %arg11[%c0_62, %c0_63, %c0_64, %c0_65] : memref<2x10x10x128xf32, #tpu.memory_space<vmem>>, vector<2x8x8x128xf32>
    %33 = vector.extract_strided_slice %31 {offsets = [0, 0], sizes = [1, 128], strides = [1, 1]} : vector<9x128xf32> to vector<1x128xf32>
    %34 = vector.shape_cast %33 : vector<1x128xf32> to vector<1x1x1x128xf32>
    %35 = vector.broadcast %34 : vector<1x1x1x128xf32> to vector<2x8x8x128xf32>
    %36 = arith.mulf %32, %35 : vector<2x8x8x128xf32>
    %c0_66 = arith.constant 0 : index
    %c0_67 = arith.constant 0 : index
    %c1_68 = arith.constant 1 : index
    %c0_69 = arith.constant 0 : index
    %37 = vector.load %arg11[%c0_66, %c0_67, %c1_68, %c0_69] : memref<2x10x10x128xf32, #tpu.memory_space<vmem>>, vector<2x8x8x128xf32>
    %38 = vector.extract_strided_slice %31 {offsets = [1, 0], sizes = [1, 128], strides = [1, 1]} : vector<9x128xf32> to vector<1x128xf32>
    %39 = vector.shape_cast %38 : vector<1x128xf32> to vector<1x1x1x128xf32>
    %40 = vector.broadcast %39 : vector<1x1x1x128xf32> to vector<2x8x8x128xf32>
    %41 = arith.mulf %37, %40 : vector<2x8x8x128xf32>
    %42 = arith.addf %36, %41 : vector<2x8x8x128xf32>
    %c0_70 = arith.constant 0 : index
    %c0_71 = arith.constant 0 : index
    %c2 = arith.constant 2 : index
    %c0_72 = arith.constant 0 : index
    %43 = vector.load %arg11[%c0_70, %c0_71, %c2, %c0_72] : memref<2x10x10x128xf32, #tpu.memory_space<vmem>>, vector<2x8x8x128xf32>
    %44 = vector.extract_strided_slice %31 {offsets = [2, 0], sizes = [1, 128], strides = [1, 1]} : vector<9x128xf32> to vector<1x128xf32>
    %45 = vector.shape_cast %44 : vector<1x128xf32> to vector<1x1x1x128xf32>
    %46 = vector.broadcast %45 : vector<1x1x1x128xf32> to vector<2x8x8x128xf32>
    %47 = arith.mulf %43, %46 : vector<2x8x8x128xf32>
    %48 = arith.addf %42, %47 : vector<2x8x8x128xf32>
    %c0_73 = arith.constant 0 : index
    %c1_74 = arith.constant 1 : index
    %c0_75 = arith.constant 0 : index
    %c0_76 = arith.constant 0 : index
    %49 = vector.load %arg11[%c0_73, %c1_74, %c0_75, %c0_76] : memref<2x10x10x128xf32, #tpu.memory_space<vmem>>, vector<2x8x8x128xf32>
    %50 = vector.extract_strided_slice %31 {offsets = [3, 0], sizes = [1, 128], strides = [1, 1]} : vector<9x128xf32> to vector<1x128xf32>
    %51 = vector.shape_cast %50 : vector<1x128xf32> to vector<1x1x1x128xf32>
    %52 = vector.broadcast %51 : vector<1x1x1x128xf32> to vector<2x8x8x128xf32>
    %53 = arith.mulf %49, %52 : vector<2x8x8x128xf32>
    %54 = arith.addf %48, %53 : vector<2x8x8x128xf32>
    %c0_77 = arith.constant 0 : index
    %c1_78 = arith.constant 1 : index
    %c1_79 = arith.constant 1 : index
    %c0_80 = arith.constant 0 : index
    %55 = vector.load %arg11[%c0_77, %c1_78, %c1_79, %c0_80] : memref<2x10x10x128xf32, #tpu.memory_space<vmem>>, vector<2x8x8x128xf32>
    %56 = vector.extract_strided_slice %31 {offsets = [4, 0], sizes = [1, 128], strides = [1, 1]} : vector<9x128xf32> to vector<1x128xf32>
    %57 = vector.shape_cast %56 : vector<1x128xf32> to vector<1x1x1x128xf32>
    %58 = vector.broadcast %57 : vector<1x1x1x128xf32> to vector<2x8x8x128xf32>
    %59 = arith.mulf %55, %58 : vector<2x8x8x128xf32>
    %60 = arith.addf %54, %59 : vector<2x8x8x128xf32>
    %c0_81 = arith.constant 0 : index
    %c1_82 = arith.constant 1 : index
    %c2_83 = arith.constant 2 : index
    %c0_84 = arith.constant 0 : index
    %61 = vector.load %arg11[%c0_81, %c1_82, %c2_83, %c0_84] : memref<2x10x10x128xf32, #tpu.memory_space<vmem>>, vector<2x8x8x128xf32>
    %62 = vector.extract_strided_slice %31 {offsets = [5, 0], sizes = [1, 128], strides = [1, 1]} : vector<9x128xf32> to vector<1x128xf32>
    %63 = vector.shape_cast %62 : vector<1x128xf32> to vector<1x1x1x128xf32>
    %64 = vector.broadcast %63 : vector<1x1x1x128xf32> to vector<2x8x8x128xf32>
    %65 = arith.mulf %61, %64 : vector<2x8x8x128xf32>
    %66 = arith.addf %60, %65 : vector<2x8x8x128xf32>
    %c0_85 = arith.constant 0 : index
    %c2_86 = arith.constant 2 : index
    %c0_87 = arith.constant 0 : index
    %c0_88 = arith.constant 0 : index
    %67 = vector.load %arg11[%c0_85, %c2_86, %c0_87, %c0_88] : memref<2x10x10x128xf32, #tpu.memory_space<vmem>>, vector<2x8x8x128xf32>
    %68 = vector.extract_strided_slice %31 {offsets = [6, 0], sizes = [1, 128], strides = [1, 1]} : vector<9x128xf32> to vector<1x128xf32>
    %69 = vector.shape_cast %68 : vector<1x128xf32> to vector<1x1x1x128xf32>
    %70 = vector.broadcast %69 : vector<1x1x1x128xf32> to vector<2x8x8x128xf32>
    %71 = arith.mulf %67, %70 : vector<2x8x8x128xf32>
    %72 = arith.addf %66, %71 : vector<2x8x8x128xf32>
    %c0_89 = arith.constant 0 : index
    %c2_90 = arith.constant 2 : index
    %c1_91 = arith.constant 1 : index
    %c0_92 = arith.constant 0 : index
    %73 = vector.load %arg11[%c0_89, %c2_90, %c1_91, %c0_92] : memref<2x10x10x128xf32, #tpu.memory_space<vmem>>, vector<2x8x8x128xf32>
    %74 = vector.extract_strided_slice %31 {offsets = [7, 0], sizes = [1, 128], strides = [1, 1]} : vector<9x128xf32> to vector<1x128xf32>
    %75 = vector.shape_cast %74 : vector<1x128xf32> to vector<1x1x1x128xf32>
    %76 = vector.broadcast %75 : vector<1x1x1x128xf32> to vector<2x8x8x128xf32>
    %77 = arith.mulf %73, %76 : vector<2x8x8x128xf32>
    %78 = arith.addf %72, %77 : vector<2x8x8x128xf32>
    %c0_93 = arith.constant 0 : index
    %c2_94 = arith.constant 2 : index
    %c2_95 = arith.constant 2 : index
    %c0_96 = arith.constant 0 : index
    %79 = vector.load %arg11[%c0_93, %c2_94, %c2_95, %c0_96] : memref<2x10x10x128xf32, #tpu.memory_space<vmem>>, vector<2x8x8x128xf32>
    %80 = vector.extract_strided_slice %31 {offsets = [8, 0], sizes = [1, 128], strides = [1, 1]} : vector<9x128xf32> to vector<1x128xf32>
    %81 = vector.shape_cast %80 : vector<1x128xf32> to vector<1x1x1x128xf32>
    %82 = vector.broadcast %81 : vector<1x1x1x128xf32> to vector<2x8x8x128xf32>
    %83 = arith.mulf %79, %82 : vector<2x8x8x128xf32>
    %84 = arith.addf %78, %83 : vector<2x8x8x128xf32>
    %85 = vector.shape_cast %84 : vector<2x8x8x128xf32> to vector<128x128xf32>
    %c0_97 = arith.constant 0 : index
    %c0_98 = arith.constant 0 : index
    %c0_99 = arith.constant 0 : index
    %86 = vector.load %arg5[%c0_97, %c0_98, %c0_99] : memref<10x1x128xf32, #tpu.memory_space<vmem>>, vector<1x1x128xf32>
    %87 = vector.shape_cast %86 : vector<1x1x128xf32> to vector<1x128xf32>
    %88 = vector.broadcast %87 : vector<1x128xf32> to vector<128x128xf32>
    %89 = arith.addf %85, %88 : vector<128x128xf32>
    %cst_100 = arith.constant 0.000000e+00 : f32
    %90 = vector.broadcast %cst_100 : f32 to vector<128x128xf32>
    %91 = arith.maximumf %89, %90 : vector<128x128xf32>
    %92 = arith.truncf %91 : vector<128x128xf32> to vector<128x128xbf16>
    %c0_101 = arith.constant 0 : index
    %c0_102 = arith.constant 0 : index
    %c0_103 = arith.constant 0 : index
    %93 = vector.load %arg6[%c0_101, %c0_102, %c0_103] : memref<10x128x128xbf16, #tpu.memory_space<vmem>>, vector<1x128x128xbf16>
    %94 = vector.shape_cast %93 : vector<1x128x128xbf16> to vector<128x128xbf16>
    %cst_104 = arith.constant dense<0.000000e+00> : vector<128x128xf32>
    %95 = tpu.matmul %92, %94, %cst_104 {dimension_numbers = #tpu.dot_dimension_numbers<[1], [0], [0], [1], [0, 0, 1, 1], [], []>} : vector<128x128xbf16>, vector<128x128xbf16>, vector<128x128xf32> -> vector<128x128xf32>
    %c0_105 = arith.constant 0 : index
    %c0_106 = arith.constant 0 : index
    %c0_107 = arith.constant 0 : index
    %96 = vector.load %arg7[%c0_105, %c0_106, %c0_107] : memref<10x1x128xf32, #tpu.memory_space<vmem>>, vector<1x1x128xf32>
    %97 = vector.shape_cast %96 : vector<1x1x128xf32> to vector<1x128xf32>
    %98 = vector.broadcast %97 : vector<1x128xf32> to vector<128x128xf32>
    %99 = arith.addf %95, %98 : vector<128x128xf32>
    %cst_108 = arith.constant 0.000000e+00 : f32
    %100 = vector.broadcast %cst_108 : f32 to vector<128x128xf32>
    %101 = arith.maximumf %99, %100 : vector<128x128xf32>
    %102 = vector.shape_cast %101 : vector<128x128xf32> to vector<2x8x8x128xf32>
    %c0_109 = arith.constant 0 : index
    %c1_110 = arith.constant 1 : index
    %c1_111 = arith.constant 1 : index
    %c0_112 = arith.constant 0 : index
    %103 = vector.load %arg12[%c0_109, %c1_110, %c1_111, %c0_112] : memref<2x10x10x128xf32, #tpu.memory_space<vmem>>, vector<2x8x8x128xf32>
    tpu.vector_store %arg12[%c0_109, %c1_110, %c1_111, %c0_112], %102 {strides = array<i32>} : memref<2x10x10x128xf32, #tpu.memory_space<vmem>>, vector<2x8x8x128xf32>,
    %c1_113 = arith.constant 1 : index
    %c0_114 = arith.constant 0 : index
    %c0_115 = arith.constant 0 : index
    %104 = vector.load %arg4[%c1_113, %c0_114, %c0_115] : memref<10x9x128xf32, #tpu.memory_space<vmem>>, vector<1x9x128xf32>
    %105 = vector.shape_cast %104 : vector<1x9x128xf32> to vector<9x128xf32>
    %c0_116 = arith.constant 0 : index
    %c0_117 = arith.constant 0 : index
    %c0_118 = arith.constant 0 : index
    %c0_119 = arith.constant 0 : index
    %106 = vector.load %arg12[%c0_116, %c0_117, %c0_118, %c0_119] : memref<2x10x10x128xf32, #tpu.memory_space<vmem>>, vector<2x8x8x128xf32>
    %107 = vector.extract_strided_slice %105 {offsets = [0, 0], sizes = [1, 128], strides = [1, 1]} : vector<9x128xf32> to vector<1x128xf32>
    %108 = vector.shape_cast %107 : vector<1x128xf32> to vector<1x1x1x128xf32>
    %109 = vector.broadcast %108 : vector<1x1x1x128xf32> to vector<2x8x8x128xf32>
    %110 = arith.mulf %106, %109 : vector<2x8x8x128xf32>
    %c0_120 = arith.constant 0 : index
    %c0_121 = arith.constant 0 : index
    %c1_122 = arith.constant 1 : index
    %c0_123 = arith.constant 0 : index
    %111 = vector.load %arg12[%c0_120, %c0_121, %c1_122, %c0_123] : memref<2x10x10x128xf32, #tpu.memory_space<vmem>>, vector<2x8x8x128xf32>
    %112 = vector.extract_strided_slice %105 {offsets = [1, 0], sizes = [1, 128], strides = [1, 1]} : vector<9x128xf32> to vector<1x128xf32>
    %113 = vector.shape_cast %112 : vector<1x128xf32> to vector<1x1x1x128xf32>
    %114 = vector.broadcast %113 : vector<1x1x1x128xf32> to vector<2x8x8x128xf32>
    %115 = arith.mulf %111, %114 : vector<2x8x8x128xf32>
    %116 = arith.addf %110, %115 : vector<2x8x8x128xf32>
    %c0_124 = arith.constant 0 : index
    %c0_125 = arith.constant 0 : index
    %c2_126 = arith.constant 2 : index
    %c0_127 = arith.constant 0 : index
    %117 = vector.load %arg12[%c0_124, %c0_125, %c2_126, %c0_127] : memref<2x10x10x128xf32, #tpu.memory_space<vmem>>, vector<2x8x8x128xf32>
    %118 = vector.extract_strided_slice %105 {offsets = [2, 0], sizes = [1, 128], strides = [1, 1]} : vector<9x128xf32> to vector<1x128xf32>
    %119 = vector.shape_cast %118 : vector<1x128xf32> to vector<1x1x1x128xf32>
    %120 = vector.broadcast %119 : vector<1x1x1x128xf32> to vector<2x8x8x128xf32>
    %121 = arith.mulf %117, %120 : vector<2x8x8x128xf32>
    %122 = arith.addf %116, %121 : vector<2x8x8x128xf32>
    %c0_128 = arith.constant 0 : index
    %c1_129 = arith.constant 1 : index
    %c0_130 = arith.constant 0 : index
    %c0_131 = arith.constant 0 : index
    %123 = vector.load %arg12[%c0_128, %c1_129, %c0_130, %c0_131] : memref<2x10x10x128xf32, #tpu.memory_space<vmem>>, vector<2x8x8x128xf32>
    %124 = vector.extract_strided_slice %105 {offsets = [3, 0], sizes = [1, 128], strides = [1, 1]} : vector<9x128xf32> to vector<1x128xf32>
    %125 = vector.shape_cast %124 : vector<1x128xf32> to vector<1x1x1x128xf32>
    %126 = vector.broadcast %125 : vector<1x1x1x128xf32> to vector<2x8x8x128xf32>
    %127 = arith.mulf %123, %126 : vector<2x8x8x128xf32>
    %128 = arith.addf %122, %127 : vector<2x8x8x128xf32>
    %c0_132 = arith.constant 0 : index
    %c1_133 = arith.constant 1 : index
    %c1_134 = arith.constant 1 : index
    %c0_135 = arith.constant 0 : index
    %129 = vector.load %arg12[%c0_132, %c1_133, %c1_134, %c0_135] : memref<2x10x10x128xf32, #tpu.memory_space<vmem>>, vector<2x8x8x128xf32>
    %130 = vector.extract_strided_slice %105 {offsets = [4, 0], sizes = [1, 128], strides = [1, 1]} : vector<9x128xf32> to vector<1x128xf32>
    %131 = vector.shape_cast %130 : vector<1x128xf32> to vector<1x1x1x128xf32>
    %132 = vector.broadcast %131 : vector<1x1x1x128xf32> to vector<2x8x8x128xf32>
    %133 = arith.mulf %129, %132 : vector<2x8x8x128xf32>
    %134 = arith.addf %128, %133 : vector<2x8x8x128xf32>
    %c0_136 = arith.constant 0 : index
    %c1_137 = arith.constant 1 : index
    %c2_138 = arith.constant 2 : index
    %c0_139 = arith.constant 0 : index
    %135 = vector.load %arg12[%c0_136, %c1_137, %c2_138, %c0_139] : memref<2x10x10x128xf32, #tpu.memory_space<vmem>>, vector<2x8x8x128xf32>
    %136 = vector.extract_strided_slice %105 {offsets = [5, 0], sizes = [1, 128], strides = [1, 1]} : vector<9x128xf32> to vector<1x128xf32>
    %137 = vector.shape_cast %136 : vector<1x128xf32> to vector<1x1x1x128xf32>
    %138 = vector.broadcast %137 : vector<1x1x1x128xf32> to vector<2x8x8x128xf32>
    %139 = arith.mulf %135, %138 : vector<2x8x8x128xf32>
    %140 = arith.addf %134, %139 : vector<2x8x8x128xf32>
    %c0_140 = arith.constant 0 : index
    %c2_141 = arith.constant 2 : index
    %c0_142 = arith.constant 0 : index
    %c0_143 = arith.constant 0 : index
    %141 = vector.load %arg12[%c0_140, %c2_141, %c0_142, %c0_143] : memref<2x10x10x128xf32, #tpu.memory_space<vmem>>, vector<2x8x8x128xf32>
    %142 = vector.extract_strided_slice %105 {offsets = [6, 0], sizes = [1, 128], strides = [1, 1]} : vector<9x128xf32> to vector<1x128xf32>
    %143 = vector.shape_cast %142 : vector<1x128xf32> to vector<1x1x1x128xf32>
    %144 = vector.broadcast %143 : vector<1x1x1x128xf32> to vector<2x8x8x128xf32>
    %145 = arith.mulf %141, %144 : vector<2x8x8x128xf32>
    %146 = arith.addf %140, %145 : vector<2x8x8x128xf32>
    %c0_144 = arith.constant 0 : index
    %c2_145 = arith.constant 2 : index
    %c1_146 = arith.constant 1 : index
    %c0_147 = arith.constant 0 : index
    %147 = vector.load %arg12[%c0_144, %c2_145, %c1_146, %c0_147] : memref<2x10x10x128xf32, #tpu.memory_space<vmem>>, vector<2x8x8x128xf32>
    %148 = vector.extract_strided_slice %105 {offsets = [7, 0], sizes = [1, 128], strides = [1, 1]} : vector<9x128xf32> to vector<1x128xf32>
    %149 = vector.shape_cast %148 : vector<1x128xf32> to vector<1x1x1x128xf32>
    %150 = vector.broadcast %149 : vector<1x1x1x128xf32> to vector<2x8x8x128xf32>
    %151 = arith.mulf %147, %150 : vector<2x8x8x128xf32>
    %152 = arith.addf %146, %151 : vector<2x8x8x128xf32>
    %c0_148 = arith.constant 0 : index
    %c2_149 = arith.constant 2 : index
    %c2_150 = arith.constant 2 : index
    %c0_151 = arith.constant 0 : index
    %153 = vector.load %arg12[%c0_148, %c2_149, %c2_150, %c0_151] : memref<2x10x10x128xf32, #tpu.memory_space<vmem>>, vector<2x8x8x128xf32>
    %154 = vector.extract_strided_slice %105 {offsets = [8, 0], sizes = [1, 128], strides = [1, 1]} : vector<9x128xf32> to vector<1x128xf32>
    %155 = vector.shape_cast %154 : vector<1x128xf32> to vector<1x1x1x128xf32>
    %156 = vector.broadcast %155 : vector<1x1x1x128xf32> to vector<2x8x8x128xf32>
    %157 = arith.mulf %153, %156 : vector<2x8x8x128xf32>
    %158 = arith.addf %152, %157 : vector<2x8x8x128xf32>
    %159 = vector.shape_cast %158 : vector<2x8x8x128xf32> to vector<2x8x4x2x128xf32>
    %160 = vector.extract_strided_slice %159 {offsets = [0, 0, 0, 0, 0], sizes = [2, 8, 4, 1, 128], strides = [1, 1, 1, 1, 1]} : vector<2x8x4x2x128xf32> to vector<2x8x4x1x128xf32>
    %161 = vector.shape_cast %160 : vector<2x8x4x1x128xf32> to vector<2x8x4x128xf32>
    %162 = vector.shape_cast %161 : vector<2x8x4x128xf32> to vector<2x4x2x4x128xf32>
    %163 = vector.extract_strided_slice %162 {offsets = [0, 0, 0, 0, 0], sizes = [2, 4, 1, 4, 128], strides = [1, 1, 1, 1, 1]} : vector<2x4x2x4x128xf32> to vector<2x4x1x4x128xf32>
    %164 = vector.shape_cast %163 : vector<2x4x1x4x128xf32> to vector<2x4x4x128xf32>
    %165 = vector.shape_cast %164 : vector<2x4x4x128xf32> to vector<32x128xf32>
    %c1_152 = arith.constant 1 : index
    %c0_153 = arith.constant 0 : index
    %c0_154 = arith.constant 0 : index
    %166 = vector.load %arg5[%c1_152, %c0_153, %c0_154] : memref<10x1x128xf32, #tpu.memory_space<vmem>>, vector<1x1x128xf32>
    %167 = vector.shape_cast %166 : vector<1x1x128xf32> to vector<1x128xf32>
    %168 = vector.broadcast %167 : vector<1x128xf32> to vector<32x128xf32>
    %169 = arith.addf %165, %168 : vector<32x128xf32>
    %cst_155 = arith.constant 0.000000e+00 : f32
    %170 = vector.broadcast %cst_155 : f32 to vector<32x128xf32>
    %171 = arith.maximumf %169, %170 : vector<32x128xf32>
    %172 = arith.truncf %171 : vector<32x128xf32> to vector<32x128xbf16>
    %c1_156 = arith.constant 1 : index
    %c0_157 = arith.constant 0 : index
    %c0_158 = arith.constant 0 : index
    %173 = vector.load %arg6[%c1_156, %c0_157, %c0_158] : memref<10x128x128xbf16, #tpu.memory_space<vmem>>, vector<1x128x128xbf16>
    %174 = vector.shape_cast %173 : vector<1x128x128xbf16> to vector<128x128xbf16>
    %cst_159 = arith.constant dense<0.000000e+00> : vector<32x128xf32>
    %175 = tpu.matmul %172, %174, %cst_159 {dimension_numbers = #tpu.dot_dimension_numbers<[1], [0], [0], [1], [0, 0, 1, 1], [], []>} : vector<32x128xbf16>, vector<128x128xbf16>, vector<32x128xf32> -> vector<32x128xf32>
    %c1_160 = arith.constant 1 : index
    %c0_161 = arith.constant 0 : index
    %c0_162 = arith.constant 0 : index
    %176 = vector.load %arg7[%c1_160, %c0_161, %c0_162] : memref<10x1x128xf32, #tpu.memory_space<vmem>>, vector<1x1x128xf32>
    %177 = vector.shape_cast %176 : vector<1x1x128xf32> to vector<1x128xf32>
    %178 = vector.broadcast %177 : vector<1x128xf32> to vector<32x128xf32>
    %179 = arith.addf %175, %178 : vector<32x128xf32>
    %cst_163 = arith.constant 0.000000e+00 : f32
    %180 = vector.broadcast %cst_163 : f32 to vector<32x128xf32>
    %181 = arith.maximumf %179, %180 : vector<32x128xf32>
    %182 = vector.shape_cast %181 : vector<32x128xf32> to vector<2x4x4x128xf32>
    %c0_164 = arith.constant 0 : index
    %c1_165 = arith.constant 1 : index
    %c1_166 = arith.constant 1 : index
    %c0_167 = arith.constant 0 : index
    %183 = vector.load %arg13[%c0_164, %c1_165, %c1_166, %c0_167] : memref<2x6x6x128xf32, #tpu.memory_space<vmem>>, vector<2x4x4x128xf32>
    tpu.vector_store %arg13[%c0_164, %c1_165, %c1_166, %c0_167], %182 {strides = array<i32>} : memref<2x6x6x128xf32, #tpu.memory_space<vmem>>, vector<2x4x4x128xf32>,
    %c2_168 = arith.constant 2 : index
    %c0_169 = arith.constant 0 : index
    %c0_170 = arith.constant 0 : index
    %184 = vector.load %arg4[%c2_168, %c0_169, %c0_170] : memref<10x9x128xf32, #tpu.memory_space<vmem>>, vector<1x9x128xf32>
    %185 = vector.shape_cast %184 : vector<1x9x128xf32> to vector<9x128xf32>
    %c0_171 = arith.constant 0 : index
    %c0_172 = arith.constant 0 : index
    %c0_173 = arith.constant 0 : index
    %c0_174 = arith.constant 0 : index
    %186 = vector.load %arg13[%c0_171, %c0_172, %c0_173, %c0_174] : memref<2x6x6x128xf32, #tpu.memory_space<vmem>>, vector<2x4x4x128xf32>
    %187 = vector.extract_strided_slice %185 {offsets = [0, 0], sizes = [1, 128], strides = [1, 1]} : vector<9x128xf32> to vector<1x128xf32>
    %188 = vector.shape_cast %187 : vector<1x128xf32> to vector<1x1x1x128xf32>
    %189 = vector.broadcast %188 : vector<1x1x1x128xf32> to vector<2x4x4x128xf32>
    %190 = arith.mulf %186, %189 : vector<2x4x4x128xf32>
    %c0_175 = arith.constant 0 : index
    %c0_176 = arith.constant 0 : index
    %c1_177 = arith.constant 1 : index
    %c0_178 = arith.constant 0 : index
    %191 = vector.load %arg13[%c0_175, %c0_176, %c1_177, %c0_178] : memref<2x6x6x128xf32, #tpu.memory_space<vmem>>, vector<2x4x4x128xf32>
    %192 = vector.extract_strided_slice %185 {offsets = [1, 0], sizes = [1, 128], strides = [1, 1]} : vector<9x128xf32> to vector<1x128xf32>
    %193 = vector.shape_cast %192 : vector<1x128xf32> to vector<1x1x1x128xf32>
    %194 = vector.broadcast %193 : vector<1x1x1x128xf32> to vector<2x4x4x128xf32>
    %195 = arith.mulf %191, %194 : vector<2x4x4x128xf32>
    %196 = arith.addf %190, %195 : vector<2x4x4x128xf32>
    %c0_179 = arith.constant 0 : index
    %c0_180 = arith.constant 0 : index
    %c2_181 = arith.constant 2 : index
    %c0_182 = arith.constant 0 : index
    %197 = vector.load %arg13[%c0_179, %c0_180, %c2_181, %c0_182] : memref<2x6x6x128xf32, #tpu.memory_space<vmem>>, vector<2x4x4x128xf32>
    %198 = vector.extract_strided_slice %185 {offsets = [2, 0], sizes = [1, 128], strides = [1, 1]} : vector<9x128xf32> to vector<1x128xf32>
    %199 = vector.shape_cast %198 : vector<1x128xf32> to vector<1x1x1x128xf32>
    %200 = vector.broadcast %199 : vector<1x1x1x128xf32> to vector<2x4x4x128xf32>
    %201 = arith.mulf %197, %200 : vector<2x4x4x128xf32>
    %202 = arith.addf %196, %201 : vector<2x4x4x128xf32>
    %c0_183 = arith.constant 0 : index
    %c1_184 = arith.constant 1 : index
    %c0_185 = arith.constant 0 : index
    %c0_186 = arith.constant 0 : index
    %203 = vector.load %arg13[%c0_183, %c1_184, %c0_185, %c0_186] : memref<2x6x6x128xf32, #tpu.memory_space<vmem>>, vector<2x4x4x128xf32>
    %204 = vector.extract_strided_slice %185 {offsets = [3, 0], sizes = [1, 128], strides = [1, 1]} : vector<9x128xf32> to vector<1x128xf32>
    %205 = vector.shape_cast %204 : vector<1x128xf32> to vector<1x1x1x128xf32>
    %206 = vector.broadcast %205 : vector<1x1x1x128xf32> to vector<2x4x4x128xf32>
    %207 = arith.mulf %203, %206 : vector<2x4x4x128xf32>
    %208 = arith.addf %202, %207 : vector<2x4x4x128xf32>
    %c0_187 = arith.constant 0 : index
    %c1_188 = arith.constant 1 : index
    %c1_189 = arith.constant 1 : index
    %c0_190 = arith.constant 0 : index
    %209 = vector.load %arg13[%c0_187, %c1_188, %c1_189, %c0_190] : memref<2x6x6x128xf32, #tpu.memory_space<vmem>>, vector<2x4x4x128xf32>
    %210 = vector.extract_strided_slice %185 {offsets = [4, 0], sizes = [1, 128], strides = [1, 1]} : vector<9x128xf32> to vector<1x128xf32>
    %211 = vector.shape_cast %210 : vector<1x128xf32> to vector<1x1x1x128xf32>
    %212 = vector.broadcast %211 : vector<1x1x1x128xf32> to vector<2x4x4x128xf32>
    %213 = arith.mulf %209, %212 : vector<2x4x4x128xf32>
    %214 = arith.addf %208, %213 : vector<2x4x4x128xf32>
    %c0_191 = arith.constant 0 : index
    %c1_192 = arith.constant 1 : index
    %c2_193 = arith.constant 2 : index
    %c0_194 = arith.constant 0 : index
    %215 = vector.load %arg13[%c0_191, %c1_192, %c2_193, %c0_194] : memref<2x6x6x128xf32, #tpu.memory_space<vmem>>, vector<2x4x4x128xf32>
    %216 = vector.extract_strided_slice %185 {offsets = [5, 0], sizes = [1, 128], strides = [1, 1]} : vector<9x128xf32> to vector<1x128xf32>
    %217 = vector.shape_cast %216 : vector<1x128xf32> to vector<1x1x1x128xf32>
    %218 = vector.broadcast %217 : vector<1x1x1x128xf32> to vector<2x4x4x128xf32>
    %219 = arith.mulf %215, %218 : vector<2x4x4x128xf32>
    %220 = arith.addf %214, %219 : vector<2x4x4x128xf32>
    %c0_195 = arith.constant 0 : index
    %c2_196 = arith.constant 2 : index
    %c0_197 = arith.constant 0 : index
    %c0_198 = arith.constant 0 : index
    %221 = vector.load %arg13[%c0_195, %c2_196, %c0_197, %c0_198] : memref<2x6x6x128xf32, #tpu.memory_space<vmem>>, vector<2x4x4x128xf32>
    %222 = vector.extract_strided_slice %185 {offsets = [6, 0], sizes = [1, 128], strides = [1, 1]} : vector<9x128xf32> to vector<1x128xf32>
    %223 = vector.shape_cast %222 : vector<1x128xf32> to vector<1x1x1x128xf32>
    %224 = vector.broadcast %223 : vector<1x1x1x128xf32> to vector<2x4x4x128xf32>
    %225 = arith.mulf %221, %224 : vector<2x4x4x128xf32>
    %226 = arith.addf %220, %225 : vector<2x4x4x128xf32>
    %c0_199 = arith.constant 0 : index
    %c2_200 = arith.constant 2 : index
    %c1_201 = arith.constant 1 : index
    %c0_202 = arith.constant 0 : index
    %227 = vector.load %arg13[%c0_199, %c2_200, %c1_201, %c0_202] : memref<2x6x6x128xf32, #tpu.memory_space<vmem>>, vector<2x4x4x128xf32>
    %228 = vector.extract_strided_slice %185 {offsets = [7, 0], sizes = [1, 128], strides = [1, 1]} : vector<9x128xf32> to vector<1x128xf32>
    %229 = vector.shape_cast %228 : vector<1x128xf32> to vector<1x1x1x128xf32>
    %230 = vector.broadcast %229 : vector<1x1x1x128xf32> to vector<2x4x4x128xf32>
    %231 = arith.mulf %227, %230 : vector<2x4x4x128xf32>
    %232 = arith.addf %226, %231 : vector<2x4x4x128xf32>
    %c0_203 = arith.constant 0 : index
    %c2_204 = arith.constant 2 : index
    %c2_205 = arith.constant 2 : index
    %c0_206 = arith.constant 0 : index
    %233 = vector.load %arg13[%c0_203, %c2_204, %c2_205, %c0_206] : memref<2x6x6x128xf32, #tpu.memory_space<vmem>>, vector<2x4x4x128xf32>
    %234 = vector.extract_strided_slice %185 {offsets = [8, 0], sizes = [1, 128], strides = [1, 1]} : vector<9x128xf32> to vector<1x128xf32>
    %235 = vector.shape_cast %234 : vector<1x128xf32> to vector<1x1x1x128xf32>
    %236 = vector.broadcast %235 : vector<1x1x1x128xf32> to vector<2x4x4x128xf32>
    %237 = arith.mulf %233, %236 : vector<2x4x4x128xf32>
    %238 = arith.addf %232, %237 : vector<2x4x4x128xf32>
    %239 = vector.shape_cast %238 : vector<2x4x4x128xf32> to vector<32x128xf32>
    %c2_207 = arith.constant 2 : index
    %c0_208 = arith.constant 0 : index
    %c0_209 = arith.constant 0 : index
    %240 = vector.load %arg5[%c2_207, %c0_208, %c0_209] : memref<10x1x128xf32, #tpu.memory_space<vmem>>, vector<1x1x128xf32>
    %241 = vector.shape_cast %240 : vector<1x1x128xf32> to vector<1x128xf32>
    %242 = vector.broadcast %241 : vector<1x128xf32> to vector<32x128xf32>
    %243 = arith.addf %239, %242 : vector<32x128xf32>
    %cst_210 = arith.constant 0.000000e+00 : f32
    %244 = vector.broadcast %cst_210 : f32 to vector<32x128xf32>
    %245 = arith.maximumf %243, %244 : vector<32x128xf32>
    %246 = arith.truncf %245 : vector<32x128xf32> to vector<32x128xbf16>
    %c2_211 = arith.constant 2 : index
    %c0_212 = arith.constant 0 : index
    %c0_213 = arith.constant 0 : index
    %247 = vector.load %arg6[%c2_211, %c0_212, %c0_213] : memref<10x128x128xbf16, #tpu.memory_space<vmem>>, vector<1x128x128xbf16>
    %248 = vector.shape_cast %247 : vector<1x128x128xbf16> to vector<128x128xbf16>
    %cst_214 = arith.constant dense<0.000000e+00> : vector<32x128xf32>
    %249 = tpu.matmul %246, %248, %cst_214 {dimension_numbers = #tpu.dot_dimension_numbers<[1], [0], [0], [1], [0, 0, 1, 1], [], []>} : vector<32x128xbf16>, vector<128x128xbf16>, vector<32x128xf32> -> vector<32x128xf32>
    %c2_215 = arith.constant 2 : index
    %c0_216 = arith.constant 0 : index
    %c0_217 = arith.constant 0 : index
    %250 = vector.load %arg7[%c2_215, %c0_216, %c0_217] : memref<10x1x128xf32, #tpu.memory_space<vmem>>, vector<1x1x128xf32>
    %251 = vector.shape_cast %250 : vector<1x1x128xf32> to vector<1x128xf32>
    %252 = vector.broadcast %251 : vector<1x128xf32> to vector<32x128xf32>
    %253 = arith.addf %249, %252 : vector<32x128xf32>
    %cst_218 = arith.constant 0.000000e+00 : f32
    %254 = vector.broadcast %cst_218 : f32 to vector<32x128xf32>
    %255 = arith.maximumf %253, %254 : vector<32x128xf32>
    %256 = vector.shape_cast %255 : vector<32x128xf32> to vector<2x4x4x128xf32>
    %c0_219 = arith.constant 0 : index
    %c1_220 = arith.constant 1 : index
    %c1_221 = arith.constant 1 : index
    %c0_222 = arith.constant 0 : index
    %257 = vector.load %arg14[%c0_219, %c1_220, %c1_221, %c0_222] : memref<2x6x6x128xf32, #tpu.memory_space<vmem>>, vector<2x4x4x128xf32>
    tpu.vector_store %arg14[%c0_219, %c1_220, %c1_221, %c0_222], %256 {strides = array<i32>} : memref<2x6x6x128xf32, #tpu.memory_space<vmem>>, vector<2x4x4x128xf32>,
    %c3 = arith.constant 3 : index
    %c0_223 = arith.constant 0 : index
    %c0_224 = arith.constant 0 : index
    %258 = vector.load %arg4[%c3, %c0_223, %c0_224] : memref<10x9x128xf32, #tpu.memory_space<vmem>>, vector<1x9x128xf32>
    %259 = vector.shape_cast %258 : vector<1x9x128xf32> to vector<9x128xf32>
    %c0_225 = arith.constant 0 : index
    %c0_226 = arith.constant 0 : index
    %c0_227 = arith.constant 0 : index
    %c0_228 = arith.constant 0 : index
    %260 = vector.load %arg14[%c0_225, %c0_226, %c0_227, %c0_228] : memref<2x6x6x128xf32, #tpu.memory_space<vmem>>, vector<2x4x4x128xf32>
    %261 = vector.extract_strided_slice %259 {offsets = [0, 0], sizes = [1, 128], strides = [1, 1]} : vector<9x128xf32> to vector<1x128xf32>
    %262 = vector.shape_cast %261 : vector<1x128xf32> to vector<1x1x1x128xf32>
    %263 = vector.broadcast %262 : vector<1x1x1x128xf32> to vector<2x4x4x128xf32>
    %264 = arith.mulf %260, %263 : vector<2x4x4x128xf32>
    %c0_229 = arith.constant 0 : index
    %c0_230 = arith.constant 0 : index
    %c1_231 = arith.constant 1 : index
    %c0_232 = arith.constant 0 : index
    %265 = vector.load %arg14[%c0_229, %c0_230, %c1_231, %c0_232] : memref<2x6x6x128xf32, #tpu.memory_space<vmem>>, vector<2x4x4x128xf32>
    %266 = vector.extract_strided_slice %259 {offsets = [1, 0], sizes = [1, 128], strides = [1, 1]} : vector<9x128xf32> to vector<1x128xf32>
    %267 = vector.shape_cast %266 : vector<1x128xf32> to vector<1x1x1x128xf32>
    %268 = vector.broadcast %267 : vector<1x1x1x128xf32> to vector<2x4x4x128xf32>
    %269 = arith.mulf %265, %268 : vector<2x4x4x128xf32>
    %270 = arith.addf %264, %269 : vector<2x4x4x128xf32>
    %c0_233 = arith.constant 0 : index
    %c0_234 = arith.constant 0 : index
    %c2_235 = arith.constant 2 : index
    %c0_236 = arith.constant 0 : index
    %271 = vector.load %arg14[%c0_233, %c0_234, %c2_235, %c0_236] : memref<2x6x6x128xf32, #tpu.memory_space<vmem>>, vector<2x4x4x128xf32>
    %272 = vector.extract_strided_slice %259 {offsets = [2, 0], sizes = [1, 128], strides = [1, 1]} : vector<9x128xf32> to vector<1x128xf32>
    %273 = vector.shape_cast %272 : vector<1x128xf32> to vector<1x1x1x128xf32>
    %274 = vector.broadcast %273 : vector<1x1x1x128xf32> to vector<2x4x4x128xf32>
    %275 = arith.mulf %271, %274 : vector<2x4x4x128xf32>
    %276 = arith.addf %270, %275 : vector<2x4x4x128xf32>
    %c0_237 = arith.constant 0 : index
    %c1_238 = arith.constant 1 : index
    %c0_239 = arith.constant 0 : index
    %c0_240 = arith.constant 0 : index
    %277 = vector.load %arg14[%c0_237, %c1_238, %c0_239, %c0_240] : memref<2x6x6x128xf32, #tpu.memory_space<vmem>>, vector<2x4x4x128xf32>
    %278 = vector.extract_strided_slice %259 {offsets = [3, 0], sizes = [1, 128], strides = [1, 1]} : vector<9x128xf32> to vector<1x128xf32>
    %279 = vector.shape_cast %278 : vector<1x128xf32> to vector<1x1x1x128xf32>
    %280 = vector.broadcast %279 : vector<1x1x1x128xf32> to vector<2x4x4x128xf32>
    %281 = arith.mulf %277, %280 : vector<2x4x4x128xf32>
    %282 = arith.addf %276, %281 : vector<2x4x4x128xf32>
    %c0_241 = arith.constant 0 : index
    %c1_242 = arith.constant 1 : index
    %c1_243 = arith.constant 1 : index
    %c0_244 = arith.constant 0 : index
    %283 = vector.load %arg14[%c0_241, %c1_242, %c1_243, %c0_244] : memref<2x6x6x128xf32, #tpu.memory_space<vmem>>, vector<2x4x4x128xf32>
    %284 = vector.extract_strided_slice %259 {offsets = [4, 0], sizes = [1, 128], strides = [1, 1]} : vector<9x128xf32> to vector<1x128xf32>
    %285 = vector.shape_cast %284 : vector<1x128xf32> to vector<1x1x1x128xf32>
    %286 = vector.broadcast %285 : vector<1x1x1x128xf32> to vector<2x4x4x128xf32>
    %287 = arith.mulf %283, %286 : vector<2x4x4x128xf32>
    %288 = arith.addf %282, %287 : vector<2x4x4x128xf32>
    %c0_245 = arith.constant 0 : index
    %c1_246 = arith.constant 1 : index
    %c2_247 = arith.constant 2 : index
    %c0_248 = arith.constant 0 : index
    %289 = vector.load %arg14[%c0_245, %c1_246, %c2_247, %c0_248] : memref<2x6x6x128xf32, #tpu.memory_space<vmem>>, vector<2x4x4x128xf32>
    %290 = vector.extract_strided_slice %259 {offsets = [5, 0], sizes = [1, 128], strides = [1, 1]} : vector<9x128xf32> to vector<1x128xf32>
    %291 = vector.shape_cast %290 : vector<1x128xf32> to vector<1x1x1x128xf32>
    %292 = vector.broadcast %291 : vector<1x1x1x128xf32> to vector<2x4x4x128xf32>
    %293 = arith.mulf %289, %292 : vector<2x4x4x128xf32>
    %294 = arith.addf %288, %293 : vector<2x4x4x128xf32>
    %c0_249 = arith.constant 0 : index
    %c2_250 = arith.constant 2 : index
    %c0_251 = arith.constant 0 : index
    %c0_252 = arith.constant 0 : index
    %295 = vector.load %arg14[%c0_249, %c2_250, %c0_251, %c0_252] : memref<2x6x6x128xf32, #tpu.memory_space<vmem>>, vector<2x4x4x128xf32>
    %296 = vector.extract_strided_slice %259 {offsets = [6, 0], sizes = [1, 128], strides = [1, 1]} : vector<9x128xf32> to vector<1x128xf32>
    %297 = vector.shape_cast %296 : vector<1x128xf32> to vector<1x1x1x128xf32>
    %298 = vector.broadcast %297 : vector<1x1x1x128xf32> to vector<2x4x4x128xf32>
    %299 = arith.mulf %295, %298 : vector<2x4x4x128xf32>
    %300 = arith.addf %294, %299 : vector<2x4x4x128xf32>
    %c0_253 = arith.constant 0 : index
    %c2_254 = arith.constant 2 : index
    %c1_255 = arith.constant 1 : index
    %c0_256 = arith.constant 0 : index
    %301 = vector.load %arg14[%c0_253, %c2_254, %c1_255, %c0_256] : memref<2x6x6x128xf32, #tpu.memory_space<vmem>>, vector<2x4x4x128xf32>
    %302 = vector.extract_strided_slice %259 {offsets = [7, 0], sizes = [1, 128], strides = [1, 1]} : vector<9x128xf32> to vector<1x128xf32>
    %303 = vector.shape_cast %302 : vector<1x128xf32> to vector<1x1x1x128xf32>
    %304 = vector.broadcast %303 : vector<1x1x1x128xf32> to vector<2x4x4x128xf32>
    %305 = arith.mulf %301, %304 : vector<2x4x4x128xf32>
    %306 = arith.addf %300, %305 : vector<2x4x4x128xf32>
    %c0_257 = arith.constant 0 : index
    %c2_258 = arith.constant 2 : index
    %c2_259 = arith.constant 2 : index
    %c0_260 = arith.constant 0 : index
    %307 = vector.load %arg14[%c0_257, %c2_258, %c2_259, %c0_260] : memref<2x6x6x128xf32, #tpu.memory_space<vmem>>, vector<2x4x4x128xf32>
    %308 = vector.extract_strided_slice %259 {offsets = [8, 0], sizes = [1, 128], strides = [1, 1]} : vector<9x128xf32> to vector<1x128xf32>
    %309 = vector.shape_cast %308 : vector<1x128xf32> to vector<1x1x1x128xf32>
    %310 = vector.broadcast %309 : vector<1x1x1x128xf32> to vector<2x4x4x128xf32>
    %311 = arith.mulf %307, %310 : vector<2x4x4x128xf32>
    %312 = arith.addf %306, %311 : vector<2x4x4x128xf32>
    %313 = vector.shape_cast %312 : vector<2x4x4x128xf32> to vector<2x4x2x2x128xf32>
    %314 = vector.extract_strided_slice %313 {offsets = [0, 0, 0, 0, 0], sizes = [2, 4, 2, 1, 128], strides = [1, 1, 1, 1, 1]} : vector<2x4x2x2x128xf32> to vector<2x4x2x1x128xf32>
    %315 = vector.shape_cast %314 : vector<2x4x2x1x128xf32> to vector<2x4x2x128xf32>
    %316 = vector.shape_cast %315 : vector<2x4x2x128xf32> to vector<2x2x2x2x128xf32>
    %317 = vector.extract_strided_slice %316 {offsets = [0, 0, 0, 0, 0], sizes = [2, 2, 1, 2, 128], strides = [1, 1, 1, 1, 1]} : vector<2x2x2x2x128xf32> to vector<2x2x1x2x128xf32>
    %318 = vector.shape_cast %317 : vector<2x2x1x2x128xf32> to vector<2x2x2x128xf32>
    %319 = vector.shape_cast %318 : vector<2x2x2x128xf32> to vector<8x128xf32>
    %c3_261 = arith.constant 3 : index
    %c0_262 = arith.constant 0 : index
    %c0_263 = arith.constant 0 : index
    %320 = vector.load %arg5[%c3_261, %c0_262, %c0_263] : memref<10x1x128xf32, #tpu.memory_space<vmem>>, vector<1x1x128xf32>
    %321 = vector.shape_cast %320 : vector<1x1x128xf32> to vector<1x128xf32>
    %322 = vector.broadcast %321 : vector<1x128xf32> to vector<8x128xf32>
    %323 = arith.addf %319, %322 : vector<8x128xf32>
    %cst_264 = arith.constant 0.000000e+00 : f32
    %324 = vector.broadcast %cst_264 : f32 to vector<8x128xf32>
    %325 = arith.maximumf %323, %324 : vector<8x128xf32>
    %326 = arith.truncf %325 : vector<8x128xf32> to vector<8x128xbf16>
    %c3_265 = arith.constant 3 : index
    %c0_266 = arith.constant 0 : index
    %c0_267 = arith.constant 0 : index
    %327 = vector.load %arg6[%c3_265, %c0_266, %c0_267] : memref<10x128x128xbf16, #tpu.memory_space<vmem>>, vector<1x128x128xbf16>
    %328 = vector.shape_cast %327 : vector<1x128x128xbf16> to vector<128x128xbf16>
    %cst_268 = arith.constant dense<0.000000e+00> : vector<8x128xf32>
    %329 = tpu.matmul %326, %328, %cst_268 {dimension_numbers = #tpu.dot_dimension_numbers<[1], [0], [0], [1], [0, 0, 1, 1], [], []>} : vector<8x128xbf16>, vector<128x128xbf16>, vector<8x128xf32> -> vector<8x128xf32>
    %c3_269 = arith.constant 3 : index
    %c0_270 = arith.constant 0 : index
    %c0_271 = arith.constant 0 : index
    %330 = vector.load %arg7[%c3_269, %c0_270, %c0_271] : memref<10x1x128xf32, #tpu.memory_space<vmem>>, vector<1x1x128xf32>
    %331 = vector.shape_cast %330 : vector<1x1x128xf32> to vector<1x128xf32>
    %332 = vector.broadcast %331 : vector<1x128xf32> to vector<8x128xf32>
    %333 = arith.addf %329, %332 : vector<8x128xf32>
    %cst_272 = arith.constant 0.000000e+00 : f32
    %334 = vector.broadcast %cst_272 : f32 to vector<8x128xf32>
    %335 = arith.maximumf %333, %334 : vector<8x128xf32>
    %336 = vector.shape_cast %335 : vector<8x128xf32> to vector<2x2x2x128xf32>
    %c0_273 = arith.constant 0 : index
    %c1_274 = arith.constant 1 : index
    %c1_275 = arith.constant 1 : index
    %c0_276 = arith.constant 0 : index
    %337 = vector.load %arg15[%c0_273, %c1_274, %c1_275, %c0_276] : memref<2x4x4x128xf32, #tpu.memory_space<vmem>>, vector<2x2x2x128xf32>
    tpu.vector_store %arg15[%c0_273, %c1_274, %c1_275, %c0_276], %336 {strides = array<i32>} : memref<2x4x4x128xf32, #tpu.memory_space<vmem>>, vector<2x2x2x128xf32>,
    %c4 = arith.constant 4 : index
    %c0_277 = arith.constant 0 : index
    %c0_278 = arith.constant 0 : index
    %338 = vector.load %arg4[%c4, %c0_277, %c0_278] : memref<10x9x128xf32, #tpu.memory_space<vmem>>, vector<1x9x128xf32>
    %339 = vector.shape_cast %338 : vector<1x9x128xf32> to vector<9x128xf32>
    %c0_279 = arith.constant 0 : index
    %c0_280 = arith.constant 0 : index
    %c0_281 = arith.constant 0 : index
    %c0_282 = arith.constant 0 : index
    %340 = vector.load %arg15[%c0_279, %c0_280, %c0_281, %c0_282] : memref<2x4x4x128xf32, #tpu.memory_space<vmem>>, vector<2x2x2x128xf32>
    %341 = vector.extract_strided_slice %339 {offsets = [0, 0], sizes = [1, 128], strides = [1, 1]} : vector<9x128xf32> to vector<1x128xf32>
    %342 = vector.shape_cast %341 : vector<1x128xf32> to vector<1x1x1x128xf32>
    %343 = vector.broadcast %342 : vector<1x1x1x128xf32> to vector<2x2x2x128xf32>
    %344 = arith.mulf %340, %343 : vector<2x2x2x128xf32>
    %c0_283 = arith.constant 0 : index
    %c0_284 = arith.constant 0 : index
    %c1_285 = arith.constant 1 : index
    %c0_286 = arith.constant 0 : index
    %345 = vector.load %arg15[%c0_283, %c0_284, %c1_285, %c0_286] : memref<2x4x4x128xf32, #tpu.memory_space<vmem>>, vector<2x2x2x128xf32>
    %346 = vector.extract_strided_slice %339 {offsets = [1, 0], sizes = [1, 128], strides = [1, 1]} : vector<9x128xf32> to vector<1x128xf32>
    %347 = vector.shape_cast %346 : vector<1x128xf32> to vector<1x1x1x128xf32>
    %348 = vector.broadcast %347 : vector<1x1x1x128xf32> to vector<2x2x2x128xf32>
    %349 = arith.mulf %345, %348 : vector<2x2x2x128xf32>
    %350 = arith.addf %344, %349 : vector<2x2x2x128xf32>
    %c0_287 = arith.constant 0 : index
    %c0_288 = arith.constant 0 : index
    %c2_289 = arith.constant 2 : index
    %c0_290 = arith.constant 0 : index
    %351 = vector.load %arg15[%c0_287, %c0_288, %c2_289, %c0_290] : memref<2x4x4x128xf32, #tpu.memory_space<vmem>>, vector<2x2x2x128xf32>
    %352 = vector.extract_strided_slice %339 {offsets = [2, 0], sizes = [1, 128], strides = [1, 1]} : vector<9x128xf32> to vector<1x128xf32>
    %353 = vector.shape_cast %352 : vector<1x128xf32> to vector<1x1x1x128xf32>
    %354 = vector.broadcast %353 : vector<1x1x1x128xf32> to vector<2x2x2x128xf32>
    %355 = arith.mulf %351, %354 : vector<2x2x2x128xf32>
    %356 = arith.addf %350, %355 : vector<2x2x2x128xf32>
    %c0_291 = arith.constant 0 : index
    %c1_292 = arith.constant 1 : index
    %c0_293 = arith.constant 0 : index
    %c0_294 = arith.constant 0 : index
    %357 = vector.load %arg15[%c0_291, %c1_292, %c0_293, %c0_294] : memref<2x4x4x128xf32, #tpu.memory_space<vmem>>, vector<2x2x2x128xf32>
    %358 = vector.extract_strided_slice %339 {offsets = [3, 0], sizes = [1, 128], strides = [1, 1]} : vector<9x128xf32> to vector<1x128xf32>
    %359 = vector.shape_cast %358 : vector<1x128xf32> to vector<1x1x1x128xf32>
    %360 = vector.broadcast %359 : vector<1x1x1x128xf32> to vector<2x2x2x128xf32>
    %361 = arith.mulf %357, %360 : vector<2x2x2x128xf32>
    %362 = arith.addf %356, %361 : vector<2x2x2x128xf32>
    %c0_295 = arith.constant 0 : index
    %c1_296 = arith.constant 1 : index
    %c1_297 = arith.constant 1 : index
    %c0_298 = arith.constant 0 : index
    %363 = vector.load %arg15[%c0_295, %c1_296, %c1_297, %c0_298] : memref<2x4x4x128xf32, #tpu.memory_space<vmem>>, vector<2x2x2x128xf32>
    %364 = vector.extract_strided_slice %339 {offsets = [4, 0], sizes = [1, 128], strides = [1, 1]} : vector<9x128xf32> to vector<1x128xf32>
    %365 = vector.shape_cast %364 : vector<1x128xf32> to vector<1x1x1x128xf32>
    %366 = vector.broadcast %365 : vector<1x1x1x128xf32> to vector<2x2x2x128xf32>
    %367 = arith.mulf %363, %366 : vector<2x2x2x128xf32>
    %368 = arith.addf %362, %367 : vector<2x2x2x128xf32>
    %c0_299 = arith.constant 0 : index
    %c1_300 = arith.constant 1 : index
    %c2_301 = arith.constant 2 : index
    %c0_302 = arith.constant 0 : index
    %369 = vector.load %arg15[%c0_299, %c1_300, %c2_301, %c0_302] : memref<2x4x4x128xf32, #tpu.memory_space<vmem>>, vector<2x2x2x128xf32>
    %370 = vector.extract_strided_slice %339 {offsets = [5, 0], sizes = [1, 128], strides = [1, 1]} : vector<9x128xf32> to vector<1x128xf32>
    %371 = vector.shape_cast %370 : vector<1x128xf32> to vector<1x1x1x128xf32>
    %372 = vector.broadcast %371 : vector<1x1x1x128xf32> to vector<2x2x2x128xf32>
    %373 = arith.mulf %369, %372 : vector<2x2x2x128xf32>
    %374 = arith.addf %368, %373 : vector<2x2x2x128xf32>
    %c0_303 = arith.constant 0 : index
    %c2_304 = arith.constant 2 : index
    %c0_305 = arith.constant 0 : index
    %c0_306 = arith.constant 0 : index
    %375 = vector.load %arg15[%c0_303, %c2_304, %c0_305, %c0_306] : memref<2x4x4x128xf32, #tpu.memory_space<vmem>>, vector<2x2x2x128xf32>
    %376 = vector.extract_strided_slice %339 {offsets = [6, 0], sizes = [1, 128], strides = [1, 1]} : vector<9x128xf32> to vector<1x128xf32>
    %377 = vector.shape_cast %376 : vector<1x128xf32> to vector<1x1x1x128xf32>
    %378 = vector.broadcast %377 : vector<1x1x1x128xf32> to vector<2x2x2x128xf32>
    %379 = arith.mulf %375, %378 : vector<2x2x2x128xf32>
    %380 = arith.addf %374, %379 : vector<2x2x2x128xf32>
    %c0_307 = arith.constant 0 : index
    %c2_308 = arith.constant 2 : index
    %c1_309 = arith.constant 1 : index
    %c0_310 = arith.constant 0 : index
    %381 = vector.load %arg15[%c0_307, %c2_308, %c1_309, %c0_310] : memref<2x4x4x128xf32, #tpu.memory_space<vmem>>, vector<2x2x2x128xf32>
    %382 = vector.extract_strided_slice %339 {offsets = [7, 0], sizes = [1, 128], strides = [1, 1]} : vector<9x128xf32> to vector<1x128xf32>
    %383 = vector.shape_cast %382 : vector<1x128xf32> to vector<1x1x1x128xf32>
    %384 = vector.broadcast %383 : vector<1x1x1x128xf32> to vector<2x2x2x128xf32>
    %385 = arith.mulf %381, %384 : vector<2x2x2x128xf32>
    %386 = arith.addf %380, %385 : vector<2x2x2x128xf32>
    %c0_311 = arith.constant 0 : index
    %c2_312 = arith.constant 2 : index
    %c2_313 = arith.constant 2 : index
    %c0_314 = arith.constant 0 : index
    %387 = vector.load %arg15[%c0_311, %c2_312, %c2_313, %c0_314] : memref<2x4x4x128xf32, #tpu.memory_space<vmem>>, vector<2x2x2x128xf32>
    %388 = vector.extract_strided_slice %339 {offsets = [8, 0], sizes = [1, 128], strides = [1, 1]} : vector<9x128xf32> to vector<1x128xf32>
    %389 = vector.shape_cast %388 : vector<1x128xf32> to vector<1x1x1x128xf32>
    %390 = vector.broadcast %389 : vector<1x1x1x128xf32> to vector<2x2x2x128xf32>
    %391 = arith.mulf %387, %390 : vector<2x2x2x128xf32>
    %392 = arith.addf %386, %391 : vector<2x2x2x128xf32>
    %393 = vector.shape_cast %392 : vector<2x2x2x128xf32> to vector<8x128xf32>
    %c4_315 = arith.constant 4 : index
    %c0_316 = arith.constant 0 : index
    %c0_317 = arith.constant 0 : index
    %394 = vector.load %arg5[%c4_315, %c0_316, %c0_317] : memref<10x1x128xf32, #tpu.memory_space<vmem>>, vector<1x1x128xf32>
    %395 = vector.shape_cast %394 : vector<1x1x128xf32> to vector<1x128xf32>
    %396 = vector.broadcast %395 : vector<1x128xf32> to vector<8x128xf32>
    %397 = arith.addf %393, %396 : vector<8x128xf32>
    %cst_318 = arith.constant 0.000000e+00 : f32
    %398 = vector.broadcast %cst_318 : f32 to vector<8x128xf32>
    %399 = arith.maximumf %397, %398 : vector<8x128xf32>
    %400 = arith.truncf %399 : vector<8x128xf32> to vector<8x128xbf16>
    %c4_319 = arith.constant 4 : index
    %c0_320 = arith.constant 0 : index
    %c0_321 = arith.constant 0 : index
    %401 = vector.load %arg6[%c4_319, %c0_320, %c0_321] : memref<10x128x128xbf16, #tpu.memory_space<vmem>>, vector<1x128x128xbf16>
    %402 = vector.shape_cast %401 : vector<1x128x128xbf16> to vector<128x128xbf16>
    %cst_322 = arith.constant dense<0.000000e+00> : vector<8x128xf32>
    %403 = tpu.matmul %400, %402, %cst_322 {dimension_numbers = #tpu.dot_dimension_numbers<[1], [0], [0], [1], [0, 0, 1, 1], [], []>} : vector<8x128xbf16>, vector<128x128xbf16>, vector<8x128xf32> -> vector<8x128xf32>
    %c4_323 = arith.constant 4 : index
    %c0_324 = arith.constant 0 : index
    %c0_325 = arith.constant 0 : index
    %404 = vector.load %arg7[%c4_323, %c0_324, %c0_325] : memref<10x1x128xf32, #tpu.memory_space<vmem>>, vector<1x1x128xf32>
    %405 = vector.shape_cast %404 : vector<1x1x128xf32> to vector<1x128xf32>
    %406 = vector.broadcast %405 : vector<1x128xf32> to vector<8x128xf32>
    %407 = arith.addf %403, %406 : vector<8x128xf32>
    %cst_326 = arith.constant 0.000000e+00 : f32
    %408 = vector.broadcast %cst_326 : f32 to vector<8x128xf32>
    %409 = arith.maximumf %407, %408 : vector<8x128xf32>
    %410 = vector.shape_cast %409 : vector<8x128xf32> to vector<2x2x2x128xf32>
    %c0_327 = arith.constant 0 : index
    %c1_328 = arith.constant 1 : index
    %c1_329 = arith.constant 1 : index
    %c0_330 = arith.constant 0 : index
    %411 = vector.load %arg16[%c0_327, %c1_328, %c1_329, %c0_330] : memref<2x4x4x128xf32, #tpu.memory_space<vmem>>, vector<2x2x2x128xf32>
    tpu.vector_store %arg16[%c0_327, %c1_328, %c1_329, %c0_330], %410 {strides = array<i32>} : memref<2x4x4x128xf32, #tpu.memory_space<vmem>>, vector<2x2x2x128xf32>,
    %c5 = arith.constant 5 : index
    %c0_331 = arith.constant 0 : index
    %c0_332 = arith.constant 0 : index
    %412 = vector.load %arg4[%c5, %c0_331, %c0_332] : memref<10x9x128xf32, #tpu.memory_space<vmem>>, vector<1x9x128xf32>
    %413 = vector.shape_cast %412 : vector<1x9x128xf32> to vector<9x128xf32>
    %c0_333 = arith.constant 0 : index
    %c0_334 = arith.constant 0 : index
    %c0_335 = arith.constant 0 : index
    %c0_336 = arith.constant 0 : index
    %414 = vector.load %arg16[%c0_333, %c0_334, %c0_335, %c0_336] : memref<2x4x4x128xf32, #tpu.memory_space<vmem>>, vector<2x2x2x128xf32>
    %415 = vector.extract_strided_slice %413 {offsets = [0, 0], sizes = [1, 128], strides = [1, 1]} : vector<9x128xf32> to vector<1x128xf32>
    %416 = vector.shape_cast %415 : vector<1x128xf32> to vector<1x1x1x128xf32>
    %417 = vector.broadcast %416 : vector<1x1x1x128xf32> to vector<2x2x2x128xf32>
    %418 = arith.mulf %414, %417 : vector<2x2x2x128xf32>
    %c0_337 = arith.constant 0 : index
    %c0_338 = arith.constant 0 : index
    %c1_339 = arith.constant 1 : index
    %c0_340 = arith.constant 0 : index
    %419 = vector.load %arg16[%c0_337, %c0_338, %c1_339, %c0_340] : memref<2x4x4x128xf32, #tpu.memory_space<vmem>>, vector<2x2x2x128xf32>
    %420 = vector.extract_strided_slice %413 {offsets = [1, 0], sizes = [1, 128], strides = [1, 1]} : vector<9x128xf32> to vector<1x128xf32>
    %421 = vector.shape_cast %420 : vector<1x128xf32> to vector<1x1x1x128xf32>
    %422 = vector.broadcast %421 : vector<1x1x1x128xf32> to vector<2x2x2x128xf32>
    %423 = arith.mulf %419, %422 : vector<2x2x2x128xf32>
    %424 = arith.addf %418, %423 : vector<2x2x2x128xf32>
    %c0_341 = arith.constant 0 : index
    %c0_342 = arith.constant 0 : index
    %c2_343 = arith.constant 2 : index
    %c0_344 = arith.constant 0 : index
    %425 = vector.load %arg16[%c0_341, %c0_342, %c2_343, %c0_344] : memref<2x4x4x128xf32, #tpu.memory_space<vmem>>, vector<2x2x2x128xf32>
    %426 = vector.extract_strided_slice %413 {offsets = [2, 0], sizes = [1, 128], strides = [1, 1]} : vector<9x128xf32> to vector<1x128xf32>
    %427 = vector.shape_cast %426 : vector<1x128xf32> to vector<1x1x1x128xf32>
    %428 = vector.broadcast %427 : vector<1x1x1x128xf32> to vector<2x2x2x128xf32>
    %429 = arith.mulf %425, %428 : vector<2x2x2x128xf32>
    %430 = arith.addf %424, %429 : vector<2x2x2x128xf32>
    %c0_345 = arith.constant 0 : index
    %c1_346 = arith.constant 1 : index
    %c0_347 = arith.constant 0 : index
    %c0_348 = arith.constant 0 : index
    %431 = vector.load %arg16[%c0_345, %c1_346, %c0_347, %c0_348] : memref<2x4x4x128xf32, #tpu.memory_space<vmem>>, vector<2x2x2x128xf32>
    %432 = vector.extract_strided_slice %413 {offsets = [3, 0], sizes = [1, 128], strides = [1, 1]} : vector<9x128xf32> to vector<1x128xf32>
    %433 = vector.shape_cast %432 : vector<1x128xf32> to vector<1x1x1x128xf32>
    %434 = vector.broadcast %433 : vector<1x1x1x128xf32> to vector<2x2x2x128xf32>
    %435 = arith.mulf %431, %434 : vector<2x2x2x128xf32>
    %436 = arith.addf %430, %435 : vector<2x2x2x128xf32>
    %c0_349 = arith.constant 0 : index
    %c1_350 = arith.constant 1 : index
    %c1_351 = arith.constant 1 : index
    %c0_352 = arith.constant 0 : index
    %437 = vector.load %arg16[%c0_349, %c1_350, %c1_351, %c0_352] : memref<2x4x4x128xf32, #tpu.memory_space<vmem>>, vector<2x2x2x128xf32>
    %438 = vector.extract_strided_slice %413 {offsets = [4, 0], sizes = [1, 128], strides = [1, 1]} : vector<9x128xf32> to vector<1x128xf32>
    %439 = vector.shape_cast %438 : vector<1x128xf32> to vector<1x1x1x128xf32>
    %440 = vector.broadcast %439 : vector<1x1x1x128xf32> to vector<2x2x2x128xf32>
    %441 = arith.mulf %437, %440 : vector<2x2x2x128xf32>
    %442 = arith.addf %436, %441 : vector<2x2x2x128xf32>
    %c0_353 = arith.constant 0 : index
    %c1_354 = arith.constant 1 : index
    %c2_355 = arith.constant 2 : index
    %c0_356 = arith.constant 0 : index
    %443 = vector.load %arg16[%c0_353, %c1_354, %c2_355, %c0_356] : memref<2x4x4x128xf32, #tpu.memory_space<vmem>>, vector<2x2x2x128xf32>
    %444 = vector.extract_strided_slice %413 {offsets = [5, 0], sizes = [1, 128], strides = [1, 1]} : vector<9x128xf32> to vector<1x128xf32>
    %445 = vector.shape_cast %444 : vector<1x128xf32> to vector<1x1x1x128xf32>
    %446 = vector.broadcast %445 : vector<1x1x1x128xf32> to vector<2x2x2x128xf32>
    %447 = arith.mulf %443, %446 : vector<2x2x2x128xf32>
    %448 = arith.addf %442, %447 : vector<2x2x2x128xf32>
    %c0_357 = arith.constant 0 : index
    %c2_358 = arith.constant 2 : index
    %c0_359 = arith.constant 0 : index
    %c0_360 = arith.constant 0 : index
    %449 = vector.load %arg16[%c0_357, %c2_358, %c0_359, %c0_360] : memref<2x4x4x128xf32, #tpu.memory_space<vmem>>, vector<2x2x2x128xf32>
    %450 = vector.extract_strided_slice %413 {offsets = [6, 0], sizes = [1, 128], strides = [1, 1]} : vector<9x128xf32> to vector<1x128xf32>
    %451 = vector.shape_cast %450 : vector<1x128xf32> to vector<1x1x1x128xf32>
    %452 = vector.broadcast %451 : vector<1x1x1x128xf32> to vector<2x2x2x128xf32>
    %453 = arith.mulf %449, %452 : vector<2x2x2x128xf32>
    %454 = arith.addf %448, %453 : vector<2x2x2x128xf32>
    %c0_361 = arith.constant 0 : index
    %c2_362 = arith.constant 2 : index
    %c1_363 = arith.constant 1 : index
    %c0_364 = arith.constant 0 : index
    %455 = vector.load %arg16[%c0_361, %c2_362, %c1_363, %c0_364] : memref<2x4x4x128xf32, #tpu.memory_space<vmem>>, vector<2x2x2x128xf32>
    %456 = vector.extract_strided_slice %413 {offsets = [7, 0], sizes = [1, 128], strides = [1, 1]} : vector<9x128xf32> to vector<1x128xf32>
    %457 = vector.shape_cast %456 : vector<1x128xf32> to vector<1x1x1x128xf32>
    %458 = vector.broadcast %457 : vector<1x1x1x128xf32> to vector<2x2x2x128xf32>
    %459 = arith.mulf %455, %458 : vector<2x2x2x128xf32>
    %460 = arith.addf %454, %459 : vector<2x2x2x128xf32>
    %c0_365 = arith.constant 0 : index
    %c2_366 = arith.constant 2 : index
    %c2_367 = arith.constant 2 : index
    %c0_368 = arith.constant 0 : index
    %461 = vector.load %arg16[%c0_365, %c2_366, %c2_367, %c0_368] : memref<2x4x4x128xf32, #tpu.memory_space<vmem>>, vector<2x2x2x128xf32>
    %462 = vector.extract_strided_slice %413 {offsets = [8, 0], sizes = [1, 128], strides = [1, 1]} : vector<9x128xf32> to vector<1x128xf32>
    %463 = vector.shape_cast %462 : vector<1x128xf32> to vector<1x1x1x128xf32>
    %464 = vector.broadcast %463 : vector<1x1x1x128xf32> to vector<2x2x2x128xf32>
    %465 = arith.mulf %461, %464 : vector<2x2x2x128xf32>
    %466 = arith.addf %460, %465 : vector<2x2x2x128xf32>
    %467 = vector.shape_cast %466 : vector<2x2x2x128xf32> to vector<2x2x1x2x128xf32>
    %468 = vector.extract_strided_slice %467 {offsets = [0, 0, 0, 0, 0], sizes = [2, 2, 1, 1, 128], strides = [1, 1, 1, 1, 1]} : vector<2x2x1x2x128xf32> to vector<2x2x1x1x128xf32>
    %469 = vector.shape_cast %468 : vector<2x2x1x1x128xf32> to vector<2x2x1x128xf32>
    %470 = vector.shape_cast %469 : vector<2x2x1x128xf32> to vector<2x1x2x1x128xf32>
    %471 = vector.extract_strided_slice %470 {offsets = [0, 0, 0, 0, 0], sizes = [2, 1, 1, 1, 128], strides = [1, 1, 1, 1, 1]} : vector<2x1x2x1x128xf32> to vector<2x1x1x1x128xf32>
    %472 = vector.shape_cast %471 : vector<2x1x1x1x128xf32> to vector<2x1x1x128xf32>
    %473 = vector.shape_cast %472 : vector<2x1x1x128xf32> to vector<2x128xf32>
    %c5_369 = arith.constant 5 : index
    %c0_370 = arith.constant 0 : index
    %c0_371 = arith.constant 0 : index
    %474 = vector.load %arg5[%c5_369, %c0_370, %c0_371] : memref<10x1x128xf32, #tpu.memory_space<vmem>>, vector<1x1x128xf32>
    %475 = vector.shape_cast %474 : vector<1x1x128xf32> to vector<1x128xf32>
    %476 = vector.broadcast %475 : vector<1x128xf32> to vector<2x128xf32>
    %477 = arith.addf %473, %476 : vector<2x128xf32>
    %cst_372 = arith.constant 0.000000e+00 : f32
    %478 = vector.broadcast %cst_372 : f32 to vector<2x128xf32>
    %479 = arith.maximumf %477, %478 : vector<2x128xf32>
    %480 = arith.truncf %479 : vector<2x128xf32> to vector<2x128xbf16>
    %c5_373 = arith.constant 5 : index
    %c0_374 = arith.constant 0 : index
    %c0_375 = arith.constant 0 : index
    %481 = vector.load %arg6[%c5_373, %c0_374, %c0_375] : memref<10x128x128xbf16, #tpu.memory_space<vmem>>, vector<1x128x128xbf16>
    %482 = vector.shape_cast %481 : vector<1x128x128xbf16> to vector<128x128xbf16>
    %cst_376 = arith.constant dense<0.000000e+00> : vector<2x128xf32>
    %483 = tpu.matmul %480, %482, %cst_376 {dimension_numbers = #tpu.dot_dimension_numbers<[1], [0], [0], [1], [0, 0, 1, 1], [], []>} : vector<2x128xbf16>, vector<128x128xbf16>, vector<2x128xf32> -> vector<2x128xf32>
    %c5_377 = arith.constant 5 : index
    %c0_378 = arith.constant 0 : index
    %c0_379 = arith.constant 0 : index
    %484 = vector.load %arg7[%c5_377, %c0_378, %c0_379] : memref<10x1x128xf32, #tpu.memory_space<vmem>>, vector<1x1x128xf32>
    %485 = vector.shape_cast %484 : vector<1x1x128xf32> to vector<1x128xf32>
    %486 = vector.broadcast %485 : vector<1x128xf32> to vector<2x128xf32>
    %487 = arith.addf %483, %486 : vector<2x128xf32>
    %cst_380 = arith.constant 0.000000e+00 : f32
    %488 = vector.broadcast %cst_380 : f32 to vector<2x128xf32>
    %489 = arith.maximumf %487, %488 : vector<2x128xf32>
    %490 = vector.shape_cast %489 : vector<2x128xf32> to vector<2x1x1x128xf32>
    %c0_381 = arith.constant 0 : index
    %c1_382 = arith.constant 1 : index
    %c1_383 = arith.constant 1 : index
    %c0_384 = arith.constant 0 : index
    %491 = vector.load %arg17[%c0_381, %c1_382, %c1_383, %c0_384] : memref<2x3x3x128xf32, #tpu.memory_space<vmem>>, vector<2x1x1x128xf32>
    tpu.vector_store %arg17[%c0_381, %c1_382, %c1_383, %c0_384], %490 {strides = array<i32>} : memref<2x3x3x128xf32, #tpu.memory_space<vmem>>, vector<2x1x1x128xf32>,
    %c6 = arith.constant 6 : index
    %c0_385 = arith.constant 0 : index
    %c0_386 = arith.constant 0 : index
    %492 = vector.load %arg4[%c6, %c0_385, %c0_386] : memref<10x9x128xf32, #tpu.memory_space<vmem>>, vector<1x9x128xf32>
    %493 = vector.shape_cast %492 : vector<1x9x128xf32> to vector<9x128xf32>
    %c0_387 = arith.constant 0 : index
    %c0_388 = arith.constant 0 : index
    %c0_389 = arith.constant 0 : index
    %c0_390 = arith.constant 0 : index
    %494 = vector.load %arg17[%c0_387, %c0_388, %c0_389, %c0_390] : memref<2x3x3x128xf32, #tpu.memory_space<vmem>>, vector<2x1x1x128xf32>
    %495 = vector.extract_strided_slice %493 {offsets = [0, 0], sizes = [1, 128], strides = [1, 1]} : vector<9x128xf32> to vector<1x128xf32>
    %496 = vector.shape_cast %495 : vector<1x128xf32> to vector<1x1x1x128xf32>
    %497 = vector.broadcast %496 : vector<1x1x1x128xf32> to vector<2x1x1x128xf32>
    %498 = arith.mulf %494, %497 : vector<2x1x1x128xf32>
    %c0_391 = arith.constant 0 : index
    %c0_392 = arith.constant 0 : index
    %c1_393 = arith.constant 1 : index
    %c0_394 = arith.constant 0 : index
    %499 = vector.load %arg17[%c0_391, %c0_392, %c1_393, %c0_394] : memref<2x3x3x128xf32, #tpu.memory_space<vmem>>, vector<2x1x1x128xf32>
    %500 = vector.extract_strided_slice %493 {offsets = [1, 0], sizes = [1, 128], strides = [1, 1]} : vector<9x128xf32> to vector<1x128xf32>
    %501 = vector.shape_cast %500 : vector<1x128xf32> to vector<1x1x1x128xf32>
    %502 = vector.broadcast %501 : vector<1x1x1x128xf32> to vector<2x1x1x128xf32>
    %503 = arith.mulf %499, %502 : vector<2x1x1x128xf32>
    %504 = arith.addf %498, %503 : vector<2x1x1x128xf32>
    %c0_395 = arith.constant 0 : index
    %c0_396 = arith.constant 0 : index
    %c2_397 = arith.constant 2 : index
    %c0_398 = arith.constant 0 : index
    %505 = vector.load %arg17[%c0_395, %c0_396, %c2_397, %c0_398] : memref<2x3x3x128xf32, #tpu.memory_space<vmem>>, vector<2x1x1x128xf32>
    %506 = vector.extract_strided_slice %493 {offsets = [2, 0], sizes = [1, 128], strides = [1, 1]} : vector<9x128xf32> to vector<1x128xf32>
    %507 = vector.shape_cast %506 : vector<1x128xf32> to vector<1x1x1x128xf32>
    %508 = vector.broadcast %507 : vector<1x1x1x128xf32> to vector<2x1x1x128xf32>
    %509 = arith.mulf %505, %508 : vector<2x1x1x128xf32>
    %510 = arith.addf %504, %509 : vector<2x1x1x128xf32>
    %c0_399 = arith.constant 0 : index
    %c1_400 = arith.constant 1 : index
    %c0_401 = arith.constant 0 : index
    %c0_402 = arith.constant 0 : index
    %511 = vector.load %arg17[%c0_399, %c1_400, %c0_401, %c0_402] : memref<2x3x3x128xf32, #tpu.memory_space<vmem>>, vector<2x1x1x128xf32>
    %512 = vector.extract_strided_slice %493 {offsets = [3, 0], sizes = [1, 128], strides = [1, 1]} : vector<9x128xf32> to vector<1x128xf32>
    %513 = vector.shape_cast %512 : vector<1x128xf32> to vector<1x1x1x128xf32>
    %514 = vector.broadcast %513 : vector<1x1x1x128xf32> to vector<2x1x1x128xf32>
    %515 = arith.mulf %511, %514 : vector<2x1x1x128xf32>
    %516 = arith.addf %510, %515 : vector<2x1x1x128xf32>
    %c0_403 = arith.constant 0 : index
    %c1_404 = arith.constant 1 : index
    %c1_405 = arith.constant 1 : index
    %c0_406 = arith.constant 0 : index
    %517 = vector.load %arg17[%c0_403, %c1_404, %c1_405, %c0_406] : memref<2x3x3x128xf32, #tpu.memory_space<vmem>>, vector<2x1x1x128xf32>
    %518 = vector.extract_strided_slice %493 {offsets = [4, 0], sizes = [1, 128], strides = [1, 1]} : vector<9x128xf32> to vector<1x128xf32>
    %519 = vector.shape_cast %518 : vector<1x128xf32> to vector<1x1x1x128xf32>
    %520 = vector.broadcast %519 : vector<1x1x1x128xf32> to vector<2x1x1x128xf32>
    %521 = arith.mulf %517, %520 : vector<2x1x1x128xf32>
    %522 = arith.addf %516, %521 : vector<2x1x1x128xf32>
    %c0_407 = arith.constant 0 : index
    %c1_408 = arith.constant 1 : index
    %c2_409 = arith.constant 2 : index
    %c0_410 = arith.constant 0 : index
    %523 = vector.load %arg17[%c0_407, %c1_408, %c2_409, %c0_410] : memref<2x3x3x128xf32, #tpu.memory_space<vmem>>, vector<2x1x1x128xf32>
    %524 = vector.extract_strided_slice %493 {offsets = [5, 0], sizes = [1, 128], strides = [1, 1]} : vector<9x128xf32> to vector<1x128xf32>
    %525 = vector.shape_cast %524 : vector<1x128xf32> to vector<1x1x1x128xf32>
    %526 = vector.broadcast %525 : vector<1x1x1x128xf32> to vector<2x1x1x128xf32>
    %527 = arith.mulf %523, %526 : vector<2x1x1x128xf32>
    %528 = arith.addf %522, %527 : vector<2x1x1x128xf32>
    %c0_411 = arith.constant 0 : index
    %c2_412 = arith.constant 2 : index
    %c0_413 = arith.constant 0 : index
    %c0_414 = arith.constant 0 : index
    %529 = vector.load %arg17[%c0_411, %c2_412, %c0_413, %c0_414] : memref<2x3x3x128xf32, #tpu.memory_space<vmem>>, vector<2x1x1x128xf32>
    %530 = vector.extract_strided_slice %493 {offsets = [6, 0], sizes = [1, 128], strides = [1, 1]} : vector<9x128xf32> to vector<1x128xf32>
    %531 = vector.shape_cast %530 : vector<1x128xf32> to vector<1x1x1x128xf32>
    %532 = vector.broadcast %531 : vector<1x1x1x128xf32> to vector<2x1x1x128xf32>
    %533 = arith.mulf %529, %532 : vector<2x1x1x128xf32>
    %534 = arith.addf %528, %533 : vector<2x1x1x128xf32>
    %c0_415 = arith.constant 0 : index
    %c2_416 = arith.constant 2 : index
    %c1_417 = arith.constant 1 : index
    %c0_418 = arith.constant 0 : index
    %535 = vector.load %arg17[%c0_415, %c2_416, %c1_417, %c0_418] : memref<2x3x3x128xf32, #tpu.memory_space<vmem>>, vector<2x1x1x128xf32>
    %536 = vector.extract_strided_slice %493 {offsets = [7, 0], sizes = [1, 128], strides = [1, 1]} : vector<9x128xf32> to vector<1x128xf32>
    %537 = vector.shape_cast %536 : vector<1x128xf32> to vector<1x1x1x128xf32>
    %538 = vector.broadcast %537 : vector<1x1x1x128xf32> to vector<2x1x1x128xf32>
    %539 = arith.mulf %535, %538 : vector<2x1x1x128xf32>
    %540 = arith.addf %534, %539 : vector<2x1x1x128xf32>
    %c0_419 = arith.constant 0 : index
    %c2_420 = arith.constant 2 : index
    %c2_421 = arith.constant 2 : index
    %c0_422 = arith.constant 0 : index
    %541 = vector.load %arg17[%c0_419, %c2_420, %c2_421, %c0_422] : memref<2x3x3x128xf32, #tpu.memory_space<vmem>>, vector<2x1x1x128xf32>
    %542 = vector.extract_strided_slice %493 {offsets = [8, 0], sizes = [1, 128], strides = [1, 1]} : vector<9x128xf32> to vector<1x128xf32>
    %543 = vector.shape_cast %542 : vector<1x128xf32> to vector<1x1x1x128xf32>
    %544 = vector.broadcast %543 : vector<1x1x1x128xf32> to vector<2x1x1x128xf32>
    %545 = arith.mulf %541, %544 : vector<2x1x1x128xf32>
    %546 = arith.addf %540, %545 : vector<2x1x1x128xf32>
    %547 = vector.shape_cast %546 : vector<2x1x1x128xf32> to vector<2x128xf32>
    %c6_423 = arith.constant 6 : index
    %c0_424 = arith.constant 0 : index
    %c0_425 = arith.constant 0 : index
    %548 = vector.load %arg5[%c6_423, %c0_424, %c0_425] : memref<10x1x128xf32, #tpu.memory_space<vmem>>, vector<1x1x128xf32>
    %549 = vector.shape_cast %548 : vector<1x1x128xf32> to vector<1x128xf32>
    %550 = vector.broadcast %549 : vector<1x128xf32> to vector<2x128xf32>
    %551 = arith.addf %547, %550 : vector<2x128xf32>
    %cst_426 = arith.constant 0.000000e+00 : f32
    %552 = vector.broadcast %cst_426 : f32 to vector<2x128xf32>
    %553 = arith.maximumf %551, %552 : vector<2x128xf32>
    %554 = arith.truncf %553 : vector<2x128xf32> to vector<2x128xbf16>
    %c6_427 = arith.constant 6 : index
    %c0_428 = arith.constant 0 : index
    %c0_429 = arith.constant 0 : index
    %555 = vector.load %arg6[%c6_427, %c0_428, %c0_429] : memref<10x128x128xbf16, #tpu.memory_space<vmem>>, vector<1x128x128xbf16>
    %556 = vector.shape_cast %555 : vector<1x128x128xbf16> to vector<128x128xbf16>
    %cst_430 = arith.constant dense<0.000000e+00> : vector<2x128xf32>
    %557 = tpu.matmul %554, %556, %cst_430 {dimension_numbers = #tpu.dot_dimension_numbers<[1], [0], [0], [1], [0, 0, 1, 1], [], []>} : vector<2x128xbf16>, vector<128x128xbf16>, vector<2x128xf32> -> vector<2x128xf32>
    %c6_431 = arith.constant 6 : index
    %c0_432 = arith.constant 0 : index
    %c0_433 = arith.constant 0 : index
    %558 = vector.load %arg7[%c6_431, %c0_432, %c0_433] : memref<10x1x128xf32, #tpu.memory_space<vmem>>, vector<1x1x128xf32>
    %559 = vector.shape_cast %558 : vector<1x1x128xf32> to vector<1x128xf32>
    %560 = vector.broadcast %559 : vector<1x128xf32> to vector<2x128xf32>
    %561 = arith.addf %557, %560 : vector<2x128xf32>
    %cst_434 = arith.constant 0.000000e+00 : f32
    %562 = vector.broadcast %cst_434 : f32 to vector<2x128xf32>
    %563 = arith.maximumf %561, %562 : vector<2x128xf32>
    %564 = vector.shape_cast %563 : vector<2x128xf32> to vector<2x1x1x128xf32>
    %c0_435 = arith.constant 0 : index
    %c1_436 = arith.constant 1 : index
    %c1_437 = arith.constant 1 : index
    %c0_438 = arith.constant 0 : index
    %565 = vector.load %arg18[%c0_435, %c1_436, %c1_437, %c0_438] : memref<2x3x3x128xf32, #tpu.memory_space<vmem>>, vector<2x1x1x128xf32>
    tpu.vector_store %arg18[%c0_435, %c1_436, %c1_437, %c0_438], %564 {strides = array<i32>} : memref<2x3x3x128xf32, #tpu.memory_space<vmem>>, vector<2x1x1x128xf32>,
    %c7 = arith.constant 7 : index
    %c0_439 = arith.constant 0 : index
    %c0_440 = arith.constant 0 : index
    %566 = vector.load %arg4[%c7, %c0_439, %c0_440] : memref<10x9x128xf32, #tpu.memory_space<vmem>>, vector<1x9x128xf32>
    %567 = vector.shape_cast %566 : vector<1x9x128xf32> to vector<9x128xf32>
    %c0_441 = arith.constant 0 : index
    %c0_442 = arith.constant 0 : index
    %c0_443 = arith.constant 0 : index
    %c0_444 = arith.constant 0 : index
    %568 = vector.load %arg18[%c0_441, %c0_442, %c0_443, %c0_444] : memref<2x3x3x128xf32, #tpu.memory_space<vmem>>, vector<2x1x1x128xf32>
    %569 = vector.extract_strided_slice %567 {offsets = [0, 0], sizes = [1, 128], strides = [1, 1]} : vector<9x128xf32> to vector<1x128xf32>
    %570 = vector.shape_cast %569 : vector<1x128xf32> to vector<1x1x1x128xf32>
    %571 = vector.broadcast %570 : vector<1x1x1x128xf32> to vector<2x1x1x128xf32>
    %572 = arith.mulf %568, %571 : vector<2x1x1x128xf32>
    %c0_445 = arith.constant 0 : index
    %c0_446 = arith.constant 0 : index
    %c1_447 = arith.constant 1 : index
    %c0_448 = arith.constant 0 : index
    %573 = vector.load %arg18[%c0_445, %c0_446, %c1_447, %c0_448] : memref<2x3x3x128xf32, #tpu.memory_space<vmem>>, vector<2x1x1x128xf32>
    %574 = vector.extract_strided_slice %567 {offsets = [1, 0], sizes = [1, 128], strides = [1, 1]} : vector<9x128xf32> to vector<1x128xf32>
    %575 = vector.shape_cast %574 : vector<1x128xf32> to vector<1x1x1x128xf32>
    %576 = vector.broadcast %575 : vector<1x1x1x128xf32> to vector<2x1x1x128xf32>
    %577 = arith.mulf %573, %576 : vector<2x1x1x128xf32>
    %578 = arith.addf %572, %577 : vector<2x1x1x128xf32>
    %c0_449 = arith.constant 0 : index
    %c0_450 = arith.constant 0 : index
    %c2_451 = arith.constant 2 : index
    %c0_452 = arith.constant 0 : index
    %579 = vector.load %arg18[%c0_449, %c0_450, %c2_451, %c0_452] : memref<2x3x3x128xf32, #tpu.memory_space<vmem>>, vector<2x1x1x128xf32>
    %580 = vector.extract_strided_slice %567 {offsets = [2, 0], sizes = [1, 128], strides = [1, 1]} : vector<9x128xf32> to vector<1x128xf32>
    %581 = vector.shape_cast %580 : vector<1x128xf32> to vector<1x1x1x128xf32>
    %582 = vector.broadcast %581 : vector<1x1x1x128xf32> to vector<2x1x1x128xf32>
    %583 = arith.mulf %579, %582 : vector<2x1x1x128xf32>
    %584 = arith.addf %578, %583 : vector<2x1x1x128xf32>
    %c0_453 = arith.constant 0 : index
    %c1_454 = arith.constant 1 : index
    %c0_455 = arith.constant 0 : index
    %c0_456 = arith.constant 0 : index
    %585 = vector.load %arg18[%c0_453, %c1_454, %c0_455, %c0_456] : memref<2x3x3x128xf32, #tpu.memory_space<vmem>>, vector<2x1x1x128xf32>
    %586 = vector.extract_strided_slice %567 {offsets = [3, 0], sizes = [1, 128], strides = [1, 1]} : vector<9x128xf32> to vector<1x128xf32>
    %587 = vector.shape_cast %586 : vector<1x128xf32> to vector<1x1x1x128xf32>
    %588 = vector.broadcast %587 : vector<1x1x1x128xf32> to vector<2x1x1x128xf32>
    %589 = arith.mulf %585, %588 : vector<2x1x1x128xf32>
    %590 = arith.addf %584, %589 : vector<2x1x1x128xf32>
    %c0_457 = arith.constant 0 : index
    %c1_458 = arith.constant 1 : index
    %c1_459 = arith.constant 1 : index
    %c0_460 = arith.constant 0 : index
    %591 = vector.load %arg18[%c0_457, %c1_458, %c1_459, %c0_460] : memref<2x3x3x128xf32, #tpu.memory_space<vmem>>, vector<2x1x1x128xf32>
    %592 = vector.extract_strided_slice %567 {offsets = [4, 0], sizes = [1, 128], strides = [1, 1]} : vector<9x128xf32> to vector<1x128xf32>
    %593 = vector.shape_cast %592 : vector<1x128xf32> to vector<1x1x1x128xf32>
    %594 = vector.broadcast %593 : vector<1x1x1x128xf32> to vector<2x1x1x128xf32>
    %595 = arith.mulf %591, %594 : vector<2x1x1x128xf32>
    %596 = arith.addf %590, %595 : vector<2x1x1x128xf32>
    %c0_461 = arith.constant 0 : index
    %c1_462 = arith.constant 1 : index
    %c2_463 = arith.constant 2 : index
    %c0_464 = arith.constant 0 : index
    %597 = vector.load %arg18[%c0_461, %c1_462, %c2_463, %c0_464] : memref<2x3x3x128xf32, #tpu.memory_space<vmem>>, vector<2x1x1x128xf32>
    %598 = vector.extract_strided_slice %567 {offsets = [5, 0], sizes = [1, 128], strides = [1, 1]} : vector<9x128xf32> to vector<1x128xf32>
    %599 = vector.shape_cast %598 : vector<1x128xf32> to vector<1x1x1x128xf32>
    %600 = vector.broadcast %599 : vector<1x1x1x128xf32> to vector<2x1x1x128xf32>
    %601 = arith.mulf %597, %600 : vector<2x1x1x128xf32>
    %602 = arith.addf %596, %601 : vector<2x1x1x128xf32>
    %c0_465 = arith.constant 0 : index
    %c2_466 = arith.constant 2 : index
    %c0_467 = arith.constant 0 : index
    %c0_468 = arith.constant 0 : index
    %603 = vector.load %arg18[%c0_465, %c2_466, %c0_467, %c0_468] : memref<2x3x3x128xf32, #tpu.memory_space<vmem>>, vector<2x1x1x128xf32>
    %604 = vector.extract_strided_slice %567 {offsets = [6, 0], sizes = [1, 128], strides = [1, 1]} : vector<9x128xf32> to vector<1x128xf32>
    %605 = vector.shape_cast %604 : vector<1x128xf32> to vector<1x1x1x128xf32>
    %606 = vector.broadcast %605 : vector<1x1x1x128xf32> to vector<2x1x1x128xf32>
    %607 = arith.mulf %603, %606 : vector<2x1x1x128xf32>
    %608 = arith.addf %602, %607 : vector<2x1x1x128xf32>
    %c0_469 = arith.constant 0 : index
    %c2_470 = arith.constant 2 : index
    %c1_471 = arith.constant 1 : index
    %c0_472 = arith.constant 0 : index
    %609 = vector.load %arg18[%c0_469, %c2_470, %c1_471, %c0_472] : memref<2x3x3x128xf32, #tpu.memory_space<vmem>>, vector<2x1x1x128xf32>
    %610 = vector.extract_strided_slice %567 {offsets = [7, 0], sizes = [1, 128], strides = [1, 1]} : vector<9x128xf32> to vector<1x128xf32>
    %611 = vector.shape_cast %610 : vector<1x128xf32> to vector<1x1x1x128xf32>
    %612 = vector.broadcast %611 : vector<1x1x1x128xf32> to vector<2x1x1x128xf32>
    %613 = arith.mulf %609, %612 : vector<2x1x1x128xf32>
    %614 = arith.addf %608, %613 : vector<2x1x1x128xf32>
    %c0_473 = arith.constant 0 : index
    %c2_474 = arith.constant 2 : index
    %c2_475 = arith.constant 2 : index
    %c0_476 = arith.constant 0 : index
    %615 = vector.load %arg18[%c0_473, %c2_474, %c2_475, %c0_476] : memref<2x3x3x128xf32, #tpu.memory_space<vmem>>, vector<2x1x1x128xf32>
    %616 = vector.extract_strided_slice %567 {offsets = [8, 0], sizes = [1, 128], strides = [1, 1]} : vector<9x128xf32> to vector<1x128xf32>
    %617 = vector.shape_cast %616 : vector<1x128xf32> to vector<1x1x1x128xf32>
    %618 = vector.broadcast %617 : vector<1x1x1x128xf32> to vector<2x1x1x128xf32>
    %619 = arith.mulf %615, %618 : vector<2x1x1x128xf32>
    %620 = arith.addf %614, %619 : vector<2x1x1x128xf32>
    %621 = vector.shape_cast %620 : vector<2x1x1x128xf32> to vector<2x128xf32>
    %c7_477 = arith.constant 7 : index
    %c0_478 = arith.constant 0 : index
    %c0_479 = arith.constant 0 : index
    %622 = vector.load %arg5[%c7_477, %c0_478, %c0_479] : memref<10x1x128xf32, #tpu.memory_space<vmem>>, vector<1x1x128xf32>
    %623 = vector.shape_cast %622 : vector<1x1x128xf32> to vector<1x128xf32>
    %624 = vector.broadcast %623 : vector<1x128xf32> to vector<2x128xf32>
    %625 = arith.addf %621, %624 : vector<2x128xf32>
    %cst_480 = arith.constant 0.000000e+00 : f32
    %626 = vector.broadcast %cst_480 : f32 to vector<2x128xf32>
    %627 = arith.maximumf %625, %626 : vector<2x128xf32>
    %628 = arith.truncf %627 : vector<2x128xf32> to vector<2x128xbf16>
    %c7_481 = arith.constant 7 : index
    %c0_482 = arith.constant 0 : index
    %c0_483 = arith.constant 0 : index
    %629 = vector.load %arg6[%c7_481, %c0_482, %c0_483] : memref<10x128x128xbf16, #tpu.memory_space<vmem>>, vector<1x128x128xbf16>
    %630 = vector.shape_cast %629 : vector<1x128x128xbf16> to vector<128x128xbf16>
    %cst_484 = arith.constant dense<0.000000e+00> : vector<2x128xf32>
    %631 = tpu.matmul %628, %630, %cst_484 {dimension_numbers = #tpu.dot_dimension_numbers<[1], [0], [0], [1], [0, 0, 1, 1], [], []>} : vector<2x128xbf16>, vector<128x128xbf16>, vector<2x128xf32> -> vector<2x128xf32>
    %c7_485 = arith.constant 7 : index
    %c0_486 = arith.constant 0 : index
    %c0_487 = arith.constant 0 : index
    %632 = vector.load %arg7[%c7_485, %c0_486, %c0_487] : memref<10x1x128xf32, #tpu.memory_space<vmem>>, vector<1x1x128xf32>
    %633 = vector.shape_cast %632 : vector<1x1x128xf32> to vector<1x128xf32>
    %634 = vector.broadcast %633 : vector<1x128xf32> to vector<2x128xf32>
    %635 = arith.addf %631, %634 : vector<2x128xf32>
    %cst_488 = arith.constant 0.000000e+00 : f32
    %636 = vector.broadcast %cst_488 : f32 to vector<2x128xf32>
    %637 = arith.maximumf %635, %636 : vector<2x128xf32>
    %638 = vector.shape_cast %637 : vector<2x128xf32> to vector<2x1x1x128xf32>
    %c0_489 = arith.constant 0 : index
    %c1_490 = arith.constant 1 : index
    %c1_491 = arith.constant 1 : index
    %c0_492 = arith.constant 0 : index
    %639 = vector.load %arg19[%c0_489, %c1_490, %c1_491, %c0_492] : memref<2x3x3x128xf32, #tpu.memory_space<vmem>>, vector<2x1x1x128xf32>
    tpu.vector_store %arg19[%c0_489, %c1_490, %c1_491, %c0_492], %638 {strides = array<i32>} : memref<2x3x3x128xf32, #tpu.memory_space<vmem>>, vector<2x1x1x128xf32>,
    %c8 = arith.constant 8 : index
    %c0_493 = arith.constant 0 : index
    %c0_494 = arith.constant 0 : index
    %640 = vector.load %arg4[%c8, %c0_493, %c0_494] : memref<10x9x128xf32, #tpu.memory_space<vmem>>, vector<1x9x128xf32>
    %641 = vector.shape_cast %640 : vector<1x9x128xf32> to vector<9x128xf32>
    %c0_495 = arith.constant 0 : index
    %c0_496 = arith.constant 0 : index
    %c0_497 = arith.constant 0 : index
    %c0_498 = arith.constant 0 : index
    %642 = vector.load %arg19[%c0_495, %c0_496, %c0_497, %c0_498] : memref<2x3x3x128xf32, #tpu.memory_space<vmem>>, vector<2x1x1x128xf32>
    %643 = vector.extract_strided_slice %641 {offsets = [0, 0], sizes = [1, 128], strides = [1, 1]} : vector<9x128xf32> to vector<1x128xf32>
    %644 = vector.shape_cast %643 : vector<1x128xf32> to vector<1x1x1x128xf32>
    %645 = vector.broadcast %644 : vector<1x1x1x128xf32> to vector<2x1x1x128xf32>
    %646 = arith.mulf %642, %645 : vector<2x1x1x128xf32>
    %c0_499 = arith.constant 0 : index
    %c0_500 = arith.constant 0 : index
    %c1_501 = arith.constant 1 : index
    %c0_502 = arith.constant 0 : index
    %647 = vector.load %arg19[%c0_499, %c0_500, %c1_501, %c0_502] : memref<2x3x3x128xf32, #tpu.memory_space<vmem>>, vector<2x1x1x128xf32>
    %648 = vector.extract_strided_slice %641 {offsets = [1, 0], sizes = [1, 128], strides = [1, 1]} : vector<9x128xf32> to vector<1x128xf32>
    %649 = vector.shape_cast %648 : vector<1x128xf32> to vector<1x1x1x128xf32>
    %650 = vector.broadcast %649 : vector<1x1x1x128xf32> to vector<2x1x1x128xf32>
    %651 = arith.mulf %647, %650 : vector<2x1x1x128xf32>
    %652 = arith.addf %646, %651 : vector<2x1x1x128xf32>
    %c0_503 = arith.constant 0 : index
    %c0_504 = arith.constant 0 : index
    %c2_505 = arith.constant 2 : index
    %c0_506 = arith.constant 0 : index
    %653 = vector.load %arg19[%c0_503, %c0_504, %c2_505, %c0_506] : memref<2x3x3x128xf32, #tpu.memory_space<vmem>>, vector<2x1x1x128xf32>
    %654 = vector.extract_strided_slice %641 {offsets = [2, 0], sizes = [1, 128], strides = [1, 1]} : vector<9x128xf32> to vector<1x128xf32>
    %655 = vector.shape_cast %654 : vector<1x128xf32> to vector<1x1x1x128xf32>
    %656 = vector.broadcast %655 : vector<1x1x1x128xf32> to vector<2x1x1x128xf32>
    %657 = arith.mulf %653, %656 : vector<2x1x1x128xf32>
    %658 = arith.addf %652, %657 : vector<2x1x1x128xf32>
    %c0_507 = arith.constant 0 : index
    %c1_508 = arith.constant 1 : index
    %c0_509 = arith.constant 0 : index
    %c0_510 = arith.constant 0 : index
    %659 = vector.load %arg19[%c0_507, %c1_508, %c0_509, %c0_510] : memref<2x3x3x128xf32, #tpu.memory_space<vmem>>, vector<2x1x1x128xf32>
    %660 = vector.extract_strided_slice %641 {offsets = [3, 0], sizes = [1, 128], strides = [1, 1]} : vector<9x128xf32> to vector<1x128xf32>
    %661 = vector.shape_cast %660 : vector<1x128xf32> to vector<1x1x1x128xf32>
    %662 = vector.broadcast %661 : vector<1x1x1x128xf32> to vector<2x1x1x128xf32>
    %663 = arith.mulf %659, %662 : vector<2x1x1x128xf32>
    %664 = arith.addf %658, %663 : vector<2x1x1x128xf32>
    %c0_511 = arith.constant 0 : index
    %c1_512 = arith.constant 1 : index
    %c1_513 = arith.constant 1 : index
    %c0_514 = arith.constant 0 : index
    %665 = vector.load %arg19[%c0_511, %c1_512, %c1_513, %c0_514] : memref<2x3x3x128xf32, #tpu.memory_space<vmem>>, vector<2x1x1x128xf32>
    %666 = vector.extract_strided_slice %641 {offsets = [4, 0], sizes = [1, 128], strides = [1, 1]} : vector<9x128xf32> to vector<1x128xf32>
    %667 = vector.shape_cast %666 : vector<1x128xf32> to vector<1x1x1x128xf32>
    %668 = vector.broadcast %667 : vector<1x1x1x128xf32> to vector<2x1x1x128xf32>
    %669 = arith.mulf %665, %668 : vector<2x1x1x128xf32>
    %670 = arith.addf %664, %669 : vector<2x1x1x128xf32>
    %c0_515 = arith.constant 0 : index
    %c1_516 = arith.constant 1 : index
    %c2_517 = arith.constant 2 : index
    %c0_518 = arith.constant 0 : index
    %671 = vector.load %arg19[%c0_515, %c1_516, %c2_517, %c0_518] : memref<2x3x3x128xf32, #tpu.memory_space<vmem>>, vector<2x1x1x128xf32>
    %672 = vector.extract_strided_slice %641 {offsets = [5, 0], sizes = [1, 128], strides = [1, 1]} : vector<9x128xf32> to vector<1x128xf32>
    %673 = vector.shape_cast %672 : vector<1x128xf32> to vector<1x1x1x128xf32>
    %674 = vector.broadcast %673 : vector<1x1x1x128xf32> to vector<2x1x1x128xf32>
    %675 = arith.mulf %671, %674 : vector<2x1x1x128xf32>
    %676 = arith.addf %670, %675 : vector<2x1x1x128xf32>
    %c0_519 = arith.constant 0 : index
    %c2_520 = arith.constant 2 : index
    %c0_521 = arith.constant 0 : index
    %c0_522 = arith.constant 0 : index
    %677 = vector.load %arg19[%c0_519, %c2_520, %c0_521, %c0_522] : memref<2x3x3x128xf32, #tpu.memory_space<vmem>>, vector<2x1x1x128xf32>
    %678 = vector.extract_strided_slice %641 {offsets = [6, 0], sizes = [1, 128], strides = [1, 1]} : vector<9x128xf32> to vector<1x128xf32>
    %679 = vector.shape_cast %678 : vector<1x128xf32> to vector<1x1x1x128xf32>
    %680 = vector.broadcast %679 : vector<1x1x1x128xf32> to vector<2x1x1x128xf32>
    %681 = arith.mulf %677, %680 : vector<2x1x1x128xf32>
    %682 = arith.addf %676, %681 : vector<2x1x1x128xf32>
    %c0_523 = arith.constant 0 : index
    %c2_524 = arith.constant 2 : index
    %c1_525 = arith.constant 1 : index
    %c0_526 = arith.constant 0 : index
    %683 = vector.load %arg19[%c0_523, %c2_524, %c1_525, %c0_526] : memref<2x3x3x128xf32, #tpu.memory_space<vmem>>, vector<2x1x1x128xf32>
    %684 = vector.extract_strided_slice %641 {offsets = [7, 0], sizes = [1, 128], strides = [1, 1]} : vector<9x128xf32> to vector<1x128xf32>
    %685 = vector.shape_cast %684 : vector<1x128xf32> to vector<1x1x1x128xf32>
    %686 = vector.broadcast %685 : vector<1x1x1x128xf32> to vector<2x1x1x128xf32>
    %687 = arith.mulf %683, %686 : vector<2x1x1x128xf32>
    %688 = arith.addf %682, %687 : vector<2x1x1x128xf32>
    %c0_527 = arith.constant 0 : index
    %c2_528 = arith.constant 2 : index
    %c2_529 = arith.constant 2 : index
    %c0_530 = arith.constant 0 : index
    %689 = vector.load %arg19[%c0_527, %c2_528, %c2_529, %c0_530] : memref<2x3x3x128xf32, #tpu.memory_space<vmem>>, vector<2x1x1x128xf32>
    %690 = vector.extract_strided_slice %641 {offsets = [8, 0], sizes = [1, 128], strides = [1, 1]} : vector<9x128xf32> to vector<1x128xf32>
    %691 = vector.shape_cast %690 : vector<1x128xf32> to vector<1x1x1x128xf32>
    %692 = vector.broadcast %691 : vector<1x1x1x128xf32> to vector<2x1x1x128xf32>
    %693 = arith.mulf %689, %692 : vector<2x1x1x128xf32>
    %694 = arith.addf %688, %693 : vector<2x1x1x128xf32>
    %695 = vector.shape_cast %694 : vector<2x1x1x128xf32> to vector<2x128xf32>
    %c8_531 = arith.constant 8 : index
    %c0_532 = arith.constant 0 : index
    %c0_533 = arith.constant 0 : index
    %696 = vector.load %arg5[%c8_531, %c0_532, %c0_533] : memref<10x1x128xf32, #tpu.memory_space<vmem>>, vector<1x1x128xf32>
    %697 = vector.shape_cast %696 : vector<1x1x128xf32> to vector<1x128xf32>
    %698 = vector.broadcast %697 : vector<1x128xf32> to vector<2x128xf32>
    %699 = arith.addf %695, %698 : vector<2x128xf32>
    %cst_534 = arith.constant 0.000000e+00 : f32
    %700 = vector.broadcast %cst_534 : f32 to vector<2x128xf32>
    %701 = arith.maximumf %699, %700 : vector<2x128xf32>
    %702 = arith.truncf %701 : vector<2x128xf32> to vector<2x128xbf16>
    %c8_535 = arith.constant 8 : index
    %c0_536 = arith.constant 0 : index
    %c0_537 = arith.constant 0 : index
    %703 = vector.load %arg6[%c8_535, %c0_536, %c0_537] : memref<10x128x128xbf16, #tpu.memory_space<vmem>>, vector<1x128x128xbf16>
    %704 = vector.shape_cast %703 : vector<1x128x128xbf16> to vector<128x128xbf16>
    %cst_538 = arith.constant dense<0.000000e+00> : vector<2x128xf32>
    %705 = tpu.matmul %702, %704, %cst_538 {dimension_numbers = #tpu.dot_dimension_numbers<[1], [0], [0], [1], [0, 0, 1, 1], [], []>} : vector<2x128xbf16>, vector<128x128xbf16>, vector<2x128xf32> -> vector<2x128xf32>
    %c8_539 = arith.constant 8 : index
    %c0_540 = arith.constant 0 : index
    %c0_541 = arith.constant 0 : index
    %706 = vector.load %arg7[%c8_539, %c0_540, %c0_541] : memref<10x1x128xf32, #tpu.memory_space<vmem>>, vector<1x1x128xf32>
    %707 = vector.shape_cast %706 : vector<1x1x128xf32> to vector<1x128xf32>
    %708 = vector.broadcast %707 : vector<1x128xf32> to vector<2x128xf32>
    %709 = arith.addf %705, %708 : vector<2x128xf32>
    %cst_542 = arith.constant 0.000000e+00 : f32
    %710 = vector.broadcast %cst_542 : f32 to vector<2x128xf32>
    %711 = arith.maximumf %709, %710 : vector<2x128xf32>
    %712 = vector.shape_cast %711 : vector<2x128xf32> to vector<2x1x1x128xf32>
    %c0_543 = arith.constant 0 : index
    %c1_544 = arith.constant 1 : index
    %c1_545 = arith.constant 1 : index
    %c0_546 = arith.constant 0 : index
    %713 = vector.load %arg20[%c0_543, %c1_544, %c1_545, %c0_546] : memref<2x3x3x128xf32, #tpu.memory_space<vmem>>, vector<2x1x1x128xf32>
    tpu.vector_store %arg20[%c0_543, %c1_544, %c1_545, %c0_546], %712 {strides = array<i32>} : memref<2x3x3x128xf32, #tpu.memory_space<vmem>>, vector<2x1x1x128xf32>,
    %c9 = arith.constant 9 : index
    %c0_547 = arith.constant 0 : index
    %c0_548 = arith.constant 0 : index
    %714 = vector.load %arg4[%c9, %c0_547, %c0_548] : memref<10x9x128xf32, #tpu.memory_space<vmem>>, vector<1x9x128xf32>
    %715 = vector.shape_cast %714 : vector<1x9x128xf32> to vector<9x128xf32>
    %c0_549 = arith.constant 0 : index
    %c0_550 = arith.constant 0 : index
    %c0_551 = arith.constant 0 : index
    %c0_552 = arith.constant 0 : index
    %716 = vector.load %arg20[%c0_549, %c0_550, %c0_551, %c0_552] : memref<2x3x3x128xf32, #tpu.memory_space<vmem>>, vector<2x1x1x128xf32>
    %717 = vector.extract_strided_slice %715 {offsets = [0, 0], sizes = [1, 128], strides = [1, 1]} : vector<9x128xf32> to vector<1x128xf32>
    %718 = vector.shape_cast %717 : vector<1x128xf32> to vector<1x1x1x128xf32>
    %719 = vector.broadcast %718 : vector<1x1x1x128xf32> to vector<2x1x1x128xf32>
    %720 = arith.mulf %716, %719 : vector<2x1x1x128xf32>
    %c0_553 = arith.constant 0 : index
    %c0_554 = arith.constant 0 : index
    %c1_555 = arith.constant 1 : index
    %c0_556 = arith.constant 0 : index
    %721 = vector.load %arg20[%c0_553, %c0_554, %c1_555, %c0_556] : memref<2x3x3x128xf32, #tpu.memory_space<vmem>>, vector<2x1x1x128xf32>
    %722 = vector.extract_strided_slice %715 {offsets = [1, 0], sizes = [1, 128], strides = [1, 1]} : vector<9x128xf32> to vector<1x128xf32>
    %723 = vector.shape_cast %722 : vector<1x128xf32> to vector<1x1x1x128xf32>
    %724 = vector.broadcast %723 : vector<1x1x1x128xf32> to vector<2x1x1x128xf32>
    %725 = arith.mulf %721, %724 : vector<2x1x1x128xf32>
    %726 = arith.addf %720, %725 : vector<2x1x1x128xf32>
    %c0_557 = arith.constant 0 : index
    %c0_558 = arith.constant 0 : index
    %c2_559 = arith.constant 2 : index
    %c0_560 = arith.constant 0 : index
    %727 = vector.load %arg20[%c0_557, %c0_558, %c2_559, %c0_560] : memref<2x3x3x128xf32, #tpu.memory_space<vmem>>, vector<2x1x1x128xf32>
    %728 = vector.extract_strided_slice %715 {offsets = [2, 0], sizes = [1, 128], strides = [1, 1]} : vector<9x128xf32> to vector<1x128xf32>
    %729 = vector.shape_cast %728 : vector<1x128xf32> to vector<1x1x1x128xf32>
    %730 = vector.broadcast %729 : vector<1x1x1x128xf32> to vector<2x1x1x128xf32>
    %731 = arith.mulf %727, %730 : vector<2x1x1x128xf32>
    %732 = arith.addf %726, %731 : vector<2x1x1x128xf32>
    %c0_561 = arith.constant 0 : index
    %c1_562 = arith.constant 1 : index
    %c0_563 = arith.constant 0 : index
    %c0_564 = arith.constant 0 : index
    %733 = vector.load %arg20[%c0_561, %c1_562, %c0_563, %c0_564] : memref<2x3x3x128xf32, #tpu.memory_space<vmem>>, vector<2x1x1x128xf32>
    %734 = vector.extract_strided_slice %715 {offsets = [3, 0], sizes = [1, 128], strides = [1, 1]} : vector<9x128xf32> to vector<1x128xf32>
    %735 = vector.shape_cast %734 : vector<1x128xf32> to vector<1x1x1x128xf32>
    %736 = vector.broadcast %735 : vector<1x1x1x128xf32> to vector<2x1x1x128xf32>
    %737 = arith.mulf %733, %736 : vector<2x1x1x128xf32>
    %738 = arith.addf %732, %737 : vector<2x1x1x128xf32>
    %c0_565 = arith.constant 0 : index
    %c1_566 = arith.constant 1 : index
    %c1_567 = arith.constant 1 : index
    %c0_568 = arith.constant 0 : index
    %739 = vector.load %arg20[%c0_565, %c1_566, %c1_567, %c0_568] : memref<2x3x3x128xf32, #tpu.memory_space<vmem>>, vector<2x1x1x128xf32>
    %740 = vector.extract_strided_slice %715 {offsets = [4, 0], sizes = [1, 128], strides = [1, 1]} : vector<9x128xf32> to vector<1x128xf32>
    %741 = vector.shape_cast %740 : vector<1x128xf32> to vector<1x1x1x128xf32>
    %742 = vector.broadcast %741 : vector<1x1x1x128xf32> to vector<2x1x1x128xf32>
    %743 = arith.mulf %739, %742 : vector<2x1x1x128xf32>
    %744 = arith.addf %738, %743 : vector<2x1x1x128xf32>
    %c0_569 = arith.constant 0 : index
    %c1_570 = arith.constant 1 : index
    %c2_571 = arith.constant 2 : index
    %c0_572 = arith.constant 0 : index
    %745 = vector.load %arg20[%c0_569, %c1_570, %c2_571, %c0_572] : memref<2x3x3x128xf32, #tpu.memory_space<vmem>>, vector<2x1x1x128xf32>
    %746 = vector.extract_strided_slice %715 {offsets = [5, 0], sizes = [1, 128], strides = [1, 1]} : vector<9x128xf32> to vector<1x128xf32>
    %747 = vector.shape_cast %746 : vector<1x128xf32> to vector<1x1x1x128xf32>
    %748 = vector.broadcast %747 : vector<1x1x1x128xf32> to vector<2x1x1x128xf32>
    %749 = arith.mulf %745, %748 : vector<2x1x1x128xf32>
    %750 = arith.addf %744, %749 : vector<2x1x1x128xf32>
    %c0_573 = arith.constant 0 : index
    %c2_574 = arith.constant 2 : index
    %c0_575 = arith.constant 0 : index
    %c0_576 = arith.constant 0 : index
    %751 = vector.load %arg20[%c0_573, %c2_574, %c0_575, %c0_576] : memref<2x3x3x128xf32, #tpu.memory_space<vmem>>, vector<2x1x1x128xf32>
    %752 = vector.extract_strided_slice %715 {offsets = [6, 0], sizes = [1, 128], strides = [1, 1]} : vector<9x128xf32> to vector<1x128xf32>
    %753 = vector.shape_cast %752 : vector<1x128xf32> to vector<1x1x1x128xf32>
    %754 = vector.broadcast %753 : vector<1x1x1x128xf32> to vector<2x1x1x128xf32>
    %755 = arith.mulf %751, %754 : vector<2x1x1x128xf32>
    %756 = arith.addf %750, %755 : vector<2x1x1x128xf32>
    %c0_577 = arith.constant 0 : index
    %c2_578 = arith.constant 2 : index
    %c1_579 = arith.constant 1 : index
    %c0_580 = arith.constant 0 : index
    %757 = vector.load %arg20[%c0_577, %c2_578, %c1_579, %c0_580] : memref<2x3x3x128xf32, #tpu.memory_space<vmem>>, vector<2x1x1x128xf32>
    %758 = vector.extract_strided_slice %715 {offsets = [7, 0], sizes = [1, 128], strides = [1, 1]} : vector<9x128xf32> to vector<1x128xf32>
    %759 = vector.shape_cast %758 : vector<1x128xf32> to vector<1x1x1x128xf32>
    %760 = vector.broadcast %759 : vector<1x1x1x128xf32> to vector<2x1x1x128xf32>
    %761 = arith.mulf %757, %760 : vector<2x1x1x128xf32>
    %762 = arith.addf %756, %761 : vector<2x1x1x128xf32>
    %c0_581 = arith.constant 0 : index
    %c2_582 = arith.constant 2 : index
    %c2_583 = arith.constant 2 : index
    %c0_584 = arith.constant 0 : index
    %763 = vector.load %arg20[%c0_581, %c2_582, %c2_583, %c0_584] : memref<2x3x3x128xf32, #tpu.memory_space<vmem>>, vector<2x1x1x128xf32>
    %764 = vector.extract_strided_slice %715 {offsets = [8, 0], sizes = [1, 128], strides = [1, 1]} : vector<9x128xf32> to vector<1x128xf32>
    %765 = vector.shape_cast %764 : vector<1x128xf32> to vector<1x1x1x128xf32>
    %766 = vector.broadcast %765 : vector<1x1x1x128xf32> to vector<2x1x1x128xf32>
    %767 = arith.mulf %763, %766 : vector<2x1x1x128xf32>
    %768 = arith.addf %762, %767 : vector<2x1x1x128xf32>
    %769 = vector.shape_cast %768 : vector<2x1x1x128xf32> to vector<2x128xf32>
    %c9_585 = arith.constant 9 : index
    %c0_586 = arith.constant 0 : index
    %c0_587 = arith.constant 0 : index
    %770 = vector.load %arg5[%c9_585, %c0_586, %c0_587] : memref<10x1x128xf32, #tpu.memory_space<vmem>>, vector<1x1x128xf32>
    %771 = vector.shape_cast %770 : vector<1x1x128xf32> to vector<1x128xf32>
    %772 = vector.broadcast %771 : vector<1x128xf32> to vector<2x128xf32>
    %773 = arith.addf %769, %772 : vector<2x128xf32>
    %cst_588 = arith.constant 0.000000e+00 : f32
    %774 = vector.broadcast %cst_588 : f32 to vector<2x128xf32>
    %775 = arith.maximumf %773, %774 : vector<2x128xf32>
    %776 = arith.truncf %775 : vector<2x128xf32> to vector<2x128xbf16>
    %c9_589 = arith.constant 9 : index
    %c0_590 = arith.constant 0 : index
    %c0_591 = arith.constant 0 : index
    %777 = vector.load %arg6[%c9_589, %c0_590, %c0_591] : memref<10x128x128xbf16, #tpu.memory_space<vmem>>, vector<1x128x128xbf16>
    %778 = vector.shape_cast %777 : vector<1x128x128xbf16> to vector<128x128xbf16>
    %cst_592 = arith.constant dense<0.000000e+00> : vector<2x128xf32>
    %779 = tpu.matmul %776, %778, %cst_592 {dimension_numbers = #tpu.dot_dimension_numbers<[1], [0], [0], [1], [0, 0, 1, 1], [], []>} : vector<2x128xbf16>, vector<128x128xbf16>, vector<2x128xf32> -> vector<2x128xf32>
    %c9_593 = arith.constant 9 : index
    %c0_594 = arith.constant 0 : index
    %c0_595 = arith.constant 0 : index
    %780 = vector.load %arg7[%c9_593, %c0_594, %c0_595] : memref<10x1x128xf32, #tpu.memory_space<vmem>>, vector<1x1x128xf32>
    %781 = vector.shape_cast %780 : vector<1x1x128xf32> to vector<1x128xf32>
    %782 = vector.broadcast %781 : vector<1x128xf32> to vector<2x128xf32>
    %783 = arith.addf %779, %782 : vector<2x128xf32>
    %cst_596 = arith.constant 0.000000e+00 : f32
    %784 = vector.broadcast %cst_596 : f32 to vector<2x128xf32>
    %785 = arith.maximumf %783, %784 : vector<2x128xf32>
    %786 = arith.truncf %785 : vector<2x128xf32> to vector<2x128xbf16>
    %c0_597 = arith.constant 0 : index
    %c0_598 = arith.constant 0 : index
    %787 = vector.load %arg8[%c0_597, %c0_598] : memref<128x128xbf16, #tpu.memory_space<vmem>>, vector<128x128xbf16>
    %cst_599 = arith.constant dense<0.000000e+00> : vector<2x128xf32>
    %788 = tpu.matmul %786, %787, %cst_599 {dimension_numbers = #tpu.dot_dimension_numbers<[1], [0], [0], [1], [0, 0, 1, 1], [], []>} : vector<2x128xbf16>, vector<128x128xbf16>, vector<2x128xf32> -> vector<2x128xf32>
    %c0_600 = arith.constant 0 : index
    %c0_601 = arith.constant 0 : index
    %789 = vector.load %arg9[%c0_600, %c0_601] : memref<1x128xf32, #tpu.memory_space<vmem>>, vector<1x128xf32>
    %790 = vector.broadcast %789 : vector<1x128xf32> to vector<2x128xf32>
    %791 = arith.addf %788, %790 : vector<2x128xf32>
    %c0_602 = arith.constant 0 : index
    %c0_603 = arith.constant 0 : index
    %792 = vector.load %arg10[%c0_602, %c0_603] : memref<2x128xf32, #tpu.memory_space<vmem>>, vector<2x128xf32>
    tpu.vector_store %arg10[%c0_602, %c0_603], %791 {strides = array<i32>} : memref<2x128xf32, #tpu.memory_space<vmem>>, vector<2x128xf32>,
    return
  }
  func.func @transform_0(%arg0: i32) -> (i32, i32) {
    %c0_i32 = arith.constant 0 : i32
    %c0_i32_0 = arith.constant 0 : i32
    return %arg0, %c0_i32 : i32, i32
  }
  func.func @transform_1(%arg0: i32) -> (i32, i32) {
    %c0_i32 = arith.constant 0 : i32
    %c0_i32_0 = arith.constant 0 : i32
    %c0_i32_1 = arith.constant 0 : i32
    return %c0_i32, %c0_i32_0 : i32, i32
  }
  func.func @transform_2(%arg0: i32) -> (i32, i32) {
    %c0_i32 = arith.constant 0 : i32
    %c0_i32_0 = arith.constant 0 : i32
    %c0_i32_1 = arith.constant 0 : i32
    return %c0_i32, %c0_i32_0 : i32, i32
  }
  func.func @transform_3(%arg0: i32) -> (i32, i32, i32) {
    %c0_i32 = arith.constant 0 : i32
    %c0_i32_0 = arith.constant 0 : i32
    %c0_i32_1 = arith.constant 0 : i32
    %c0_i32_2 = arith.constant 0 : i32
    return %c0_i32, %c0_i32_0, %c0_i32_1 : i32, i32, i32
  }
  func.func @transform_4(%arg0: i32) -> (i32, i32, i32) {
    %c0_i32 = arith.constant 0 : i32
    %c0_i32_0 = arith.constant 0 : i32
    %c0_i32_1 = arith.constant 0 : i32
    %c0_i32_2 = arith.constant 0 : i32
    return %c0_i32, %c0_i32_0, %c0_i32_1 : i32, i32, i32
  }
  func.func @transform_5(%arg0: i32) -> (i32, i32, i32) {
    %c0_i32 = arith.constant 0 : i32
    %c0_i32_0 = arith.constant 0 : i32
    %c0_i32_1 = arith.constant 0 : i32
    %c0_i32_2 = arith.constant 0 : i32
    return %c0_i32, %c0_i32_0, %c0_i32_1 : i32, i32, i32
  }
  func.func @transform_6(%arg0: i32) -> (i32, i32, i32) {
    %c0_i32 = arith.constant 0 : i32
    %c0_i32_0 = arith.constant 0 : i32
    %c0_i32_1 = arith.constant 0 : i32
    %c0_i32_2 = arith.constant 0 : i32
    return %c0_i32, %c0_i32_0, %c0_i32_1 : i32, i32, i32
  }
  func.func @transform_7(%arg0: i32) -> (i32, i32) {
    %c0_i32 = arith.constant 0 : i32
    %c0_i32_0 = arith.constant 0 : i32
    %c0_i32_1 = arith.constant 0 : i32
    return %c0_i32, %c0_i32_0 : i32, i32
  }
  func.func @transform_8(%arg0: i32) -> (i32, i32) {
    %c0_i32 = arith.constant 0 : i32
    %c0_i32_0 = arith.constant 0 : i32
    %c0_i32_1 = arith.constant 0 : i32
    return %c0_i32, %c0_i32_0 : i32, i32
  }
  func.func @transform_9(%arg0: i32) -> (i32, i32) {
    %c0_i32 = arith.constant 0 : i32
    %c0_i32_0 = arith.constant 0 : i32
    return %arg0, %c0_i32 : i32, i32
  }
}

</mosaic_0001>

<bundles_post_ra>
// kernel: mobilenet_v1_forward.1
= control target key start
LH: loop header
LB: loop body
LE: loop exit
PB: predicated region body
PF: predicated region fallthrough
CT: control target
= control target key end

     0   :  { %vm257_vm0 = vcmask 261120   ;;  %v5275_v3 = vmov 0.0   ;;  %s6960_s0 = inlined_call_operand.vmem [shape: bf16[128,32], index: 0, kind: input, shape index: {}]   ;;  %s6961_s1 = inlined_call_operand.vmem [shape: bf16[32,128], index: 1, kind: input, shape index: {}]   ;;  %s6962_s2 = inlined_call_operand.vmem [shape: f32[1,128], index: 2, kind: input, shape index: {}]   ;;  %s6963_s3 = inlined_call_operand.vmem [shape: f32[10,9,128], index: 3, kind: input, shape index: {}]   ;;  %s6964_s4 = inlined_call_operand.vmem [shape: f32[10,1,128], index: 4, kind: input, shape index: {}]   ;;  %s6965_s5 = inlined_call_operand.vmem [shape: bf16[10,128,128], index: 5, kind: input, shape index: {}]   ;;  %s6966_s6 = inlined_call_operand.vmem [shape: f32[10,1,128], index: 6, kind: input, shape index: {}]   ;;  %s6967_s7 = inlined_call_operand.vmem [shape: bf16[128,128], index: 7, kind: input, shape index: {}]   ;;  %s6968_s8 = inlined_call_operand.vmem [shape: f32[1,128], index: 8, kind: input, shape index: {}]   ;;  %s6969_s9 = inlined_call_operand.hbm [shape: f32[2,128], index: 9, kind: output, shape index: {}]  }
   0x1   :  { %v5333_v0 = vld [vmem:[%s6961_s1] sm:$0xff]   ;;  %v5338_v1 = vld [vmem:[%s6961_s1 + $0x8] sm:$0xff]   ;;  %40 = vst [vmem:[#allocation2 + $0x30] sm:$0xff] %v5275_v3  ;;  %41 = vst [vmem:[#allocation2 + $0x38] sm:$0x3] %v5275_v3 }
   0x2   :  { %4892 = vmatprep.subr.bf16.mxu0 %v5333_v0  ;;  %v5344_v2 = vld [vmem:[%s6960_s0] sm:$0xff]   ;;  %92 = vst [vmem:[#allocation3 + $0x90] sm:$0xff] %v5275_v3  ;;  %34 = vst [vmem:[#allocation2] sm:$0xff] %v5275_v3  ;;  %v5152_v4 = vld [vmem:[%s6960_s0 + $0x8] sm:$0xff]  }
   0x3   :  { %35 = vst [vmem:[#allocation2 + $0x8] sm:$0x3] %v5275_v3  ;;  %36 = vst [vmem:[#allocation2 + $0x10] sm:$0xff] %v5275_v3  ;;  %4893 = vmatpush3.bf16.msra.mxu0 %v5333_v0  ;;  %4896 = vmatprep.mubr.msk.bf16.mxu0 %vm257_vm0, %v5344_v2  ;;  %v5153_v5 = vld [vmem:[%s6960_s0 + $0x10] sm:$0xff]   ;;  %v5154_v6 = vld [vmem:[%s6960_s0 + $0x18] sm:$0xff]  }
   0x4   :  { %37 = vst [vmem:[#allocation2 + $0x18] sm:$0x3] %v5275_v3  ;;  %38 = vst [vmem:[#allocation2 + $0x20] sm:$0xff] %v5275_v3  ;;  %4894 = vmatprep.subr.bf16.mxu0 %v5338_v1  ;;  %v5155_v7 = vld [vmem:[%s6960_s0 + $0x20] sm:$0xff]   ;;  %v5156_v8 = vld [vmem:[%s6960_s0 + $0x28] sm:$0xff]  }
   0x5   :  { %39 = vst [vmem:[#allocation2 + $0x28] sm:$0x3] %v5275_v3  ;;  %42 = vst [vmem:[#allocation2 + $0x40] sm:$0xff] %v5275_v3  ;;  %v5157_v9 = vld [vmem:[%s6960_s0 + $0x30] sm:$0xff]   ;;  %v5158_v10 = vld [vmem:[%s6960_s0 + $0x38] sm:$0xff]  }
   0x6   :  { %43 = vst [vmem:[#allocation2 + $0x48] sm:$0x3] %v5275_v3  ;;  %44 = vst [vmem:[#allocation2 + $0x50] sm:$0xff] %v5275_v3 }
   0x7   :  { %45 = vst [vmem:[#allocation2 + $0x58] sm:$0x3] %v5275_v3  ;;  %46 = vst [vmem:[#allocation2 + $0x60] sm:$0xff] %v5275_v3  ;;  %4895 = vmatpush3.bf16.msra.mxu0 %v5338_v1 }
   0x8   :  { %47 = vst [vmem:[#allocation2 + $0x68] sm:$0x3] %v5275_v3  ;;  %48 = vst [vmem:[#allocation2 + $0x70] sm:$0xff] %v5275_v3 }
   0x9   :  { %49 = vst [vmem:[#allocation2 + $0x78] sm:$0x3] %v5275_v3  ;;  %50 = vst [vmem:[#allocation2 + $0x80] sm:$0xff] %v5275_v3 }
   0xa   :  { %51 = vst [vmem:[#allocation2 + $0x88] sm:$0x3] %v5275_v3  ;;  %52 = vst [vmem:[#allocation2 + $0x90] sm:$0xff] %v5275_v3  ;;  %4897 = vmatmul.mubr.msk.bf16.vlgmr.msra.gmra.mrb[0].mxu0 %vm257_vm0, %v5152_v4 }
   0xb   :  { %53 = vst [vmem:[#allocation2 + $0x98] sm:$0x3] %v5275_v3  ;;  %54 = vst [vmem:[#allocation2 + $0xa0] sm:$0xff] %v5275_v3  ;;  %4900 = vmatprep.mubr.msk.bf16.mxu0 %vm257_vm0, %v5153_v5 }
   0xc   :  { %55 = vst [vmem:[#allocation2 + $0xa8] sm:$0x3] %v5275_v3  ;;  %56 = vst [vmem:[#allocation2 + $0xb0] sm:$0xff] %v5275_v3 }
   0xd   :  { %57 = vst [vmem:[#allocation2 + $0xb8] sm:$0x3] %v5275_v3  ;;  %58 = vst [vmem:[#allocation2 + $0xc0] sm:$0xff] %v5275_v3 }
   0xe   :  { %59 = vst [vmem:[#allocation2 + $0xc8] sm:$0x3] %v5275_v3  ;;  %60 = vst [vmem:[#allocation2 + $0xd0] sm:$0xff] %v5275_v3 }
   0xf   :  { %61 = vst [vmem:[#allocation2 + $0xd8] sm:$0x3] %v5275_v3  ;;  %62 = vst [vmem:[#allocation2 + $0xe0] sm:$0xff] %v5275_v3 }
  0x10   :  { %63 = vst [vmem:[#allocation2 + $0xe8] sm:$0x3] %v5275_v3  ;;  %64 = vst [vmem:[#allocation2 + $0xf0] sm:$0xff] %v5275_v3 }
  0x11   :  { %65 = vst [vmem:[#allocation2 + $0xf8] sm:$0x3] %v5275_v3  ;;  %66 = vst [vmem:[#allocation2 + $0x100] sm:$0xff] %v5275_v3 }
  0x12   :  { %67 = vst [vmem:[#allocation2 + $0x108] sm:$0x3] %v5275_v3  ;;  %68 = vst [vmem:[#allocation2 + $0x110] sm:$0xff] %v5275_v3  ;;  %4901 = vmatmul.mubr.msk.bf16.gmra.mrb[4].mxu0 %vm257_vm0, %v5154_v6 }
  0x13   :  { %69 = vst [vmem:[#allocation2 + $0x118] sm:$0x3] %v5275_v3  ;;  %70 = vst [vmem:[#allocation2 + $0x120] sm:$0xff] %v5275_v3  ;;  %4904 = vmatprep.mubr.msk.bf16.mxu0 %vm257_vm0, %v5155_v7 }
  0x14   :  { %71 = vst [vmem:[#allocation2 + $0x128] sm:$0x3] %v5275_v3  ;;  %72 = vst [vmem:[#allocation2 + $0x130] sm:$0xff] %v5275_v3 }
  0x15   :  { %73 = vst [vmem:[#allocation2 + $0x138] sm:$0x3] %v5275_v3  ;;  %74 = vst [vmem:[#allocation3] sm:$0xff] %v5275_v3 }
  0x16   :  { %75 = vst [vmem:[#allocation3 + $0x8] sm:$0x3] %v5275_v3  ;;  %76 = vst [vmem:[#allocation3 + $0x10] sm:$0xff] %v5275_v3 }
  0x17   :  { %77 = vst [vmem:[#allocation3 + $0x18] sm:$0x3] %v5275_v3  ;;  %78 = vst [vmem:[#allocation3 + $0x20] sm:$0xff] %v5275_v3 }
  0x18   :  { %79 = vst [vmem:[#allocation3 + $0x28] sm:$0x3] %v5275_v3  ;;  %80 = vst [vmem:[#allocation3 + $0x30] sm:$0xff] %v5275_v3 }
  0x19   :  { %81 = vst [vmem:[#allocation3 + $0x38] sm:$0x3] %v5275_v3  ;;  %82 = vst [vmem:[#allocation3 + $0x40] sm:$0xff] %v5275_v3 }
  0x1a   :  { %83 = vst [vmem:[#allocation3 + $0x48] sm:$0x3] %v5275_v3  ;;  %84 = vst [vmem:[#allocation3 + $0x50] sm:$0xff] %v5275_v3  ;;  %4905 = vmatmul.mubr.msk.bf16.gmra.mrb[8].mxu0 %vm257_vm0, %v5156_v8 }
  0x1b   :  { %85 = vst [vmem:[#allocation3 + $0x58] sm:$0x3] %v5275_v3  ;;  %86 = vst [vmem:[#allocation3 + $0x60] sm:$0xff] %v5275_v3  ;;  %4908 = vmatprep.mubr.msk.bf16.mxu0 %vm257_vm0, %v5157_v9 }
  0x1c   :  { %87 = vst [vmem:[#allocation3 + $0x68] sm:$0x3] %v5275_v3  ;;  %88 = vst [vmem:[#allocation3 + $0x70] sm:$0xff] %v5275_v3 }
  0x1d   :  { %89 = vst [vmem:[#allocation3 + $0x78] sm:$0x3] %v5275_v3  ;;  %90 = vst [vmem:[#allocation3 + $0x80] sm:$0xff] %v5275_v3 }
  0x1e   :  { %91 = vst [vmem:[#allocation3 + $0x88] sm:$0x3] %v5275_v3  ;;  %94 = vst [vmem:[#allocation3 + $0xa0] sm:$0xff] %v5275_v3 }
  0x1f   :  { %95 = vst [vmem:[#allocation3 + $0xa8] sm:$0x3] %v5275_v3  ;;  %96 = vst [vmem:[#allocation3 + $0xb0] sm:$0xff] %v5275_v3 }
  0x20   :  { %97 = vst [vmem:[#allocation3 + $0xb8] sm:$0x3] %v5275_v3  ;;  %98 = vst [vmem:[#allocation3 + $0xc0] sm:$0xff] %v5275_v3 }
  0x21   :  { %99 = vst [vmem:[#allocation3 + $0xc8] sm:$0x3] %v5275_v3  ;;  %100 = vst [vmem:[#allocation3 + $0xd0] sm:$0xff] %v5275_v3 }
  0x22   :  { %101 = vst [vmem:[#allocation3 + $0xd8] sm:$0x3] %v5275_v3  ;;  %102 = vst [vmem:[#allocation3 + $0xe0] sm:$0xff] %v5275_v3  ;;  %4909 = vmatmul.mubr.msk.bf16.gmra.mrb[12].mxu0 %vm257_vm0, %v5158_v10 }
  0x23   :  { %103 = vst [vmem:[#allocation3 + $0xe8] sm:$0x3] %v5275_v3  ;;  %104 = vst [vmem:[#allocation3 + $0xf0] sm:$0xff] %v5275_v3 }
  0x24   :  { %105 = vst [vmem:[#allocation3 + $0xf8] sm:$0x3] %v5275_v3  ;;  %106 = vst [vmem:[#allocation3 + $0x100] sm:$0xff] %v5275_v3 }
  0x25   :  { %107 = vst [vmem:[#allocation3 + $0x108] sm:$0x3] %v5275_v3  ;;  %108 = vst [vmem:[#allocation3 + $0x110] sm:$0xff] %v5275_v3 }
  0x26   :  { %109 = vst [vmem:[#allocation3 + $0x118] sm:$0x3] %v5275_v3  ;;  %110 = vst [vmem:[#allocation3 + $0x120] sm:$0xff] %v5275_v3 }
  0x27   :  { %111 = vst [vmem:[#allocation3 + $0x128] sm:$0x3] %v5275_v3  ;;  %114 = vst [vmem:[#allocation4] sm:$0x3f] %v5275_v3 }
  0x28   :  { %115 = vst [vmem:[#allocation4 + $0x8] sm:$0x3f] %v5275_v3  ;;  %116 = vst [vmem:[#allocation4 + $0x10] sm:$0x3f] %v5275_v3 }
  0x29   :  { %117 = vst [vmem:[#allocation4 + $0x18] sm:$0x3f] %v5275_v3  ;;  %118 = vst [vmem:[#allocation4 + $0x20] sm:$0x3f] %v5275_v3 }
  0x2a   :  { %119 = vst [vmem:[#allocation4 + $0x28] sm:$0x3f] %v5275_v3  ;;  %120 = vst [vmem:[#allocation4 + $0x30] sm:$0x3f] %v5275_v3 }
  0x2b   :  { %121 = vst [vmem:[#allocation4 + $0x38] sm:$0x3f] %v5275_v3  ;;  %122 = vst [vmem:[#allocation4 + $0x40] sm:$0x3f] %v5275_v3 }
  0x2c   :  { %123 = vst [vmem:[#allocation4 + $0x48] sm:$0x3f] %v5275_v3  ;;  %124 = vst [vmem:[#allocation4 + $0x50] sm:$0x3f] %v5275_v3 }
  0x2d   :  { %125 = vst [vmem:[#allocation4 + $0x58] sm:$0x3f] %v5275_v3  ;;  %126 = vst [vmem:[#allocation5] sm:$0x3f] %v5275_v3 }
  0x2e   :  { %127 = vst [vmem:[#allocation5 + $0x8] sm:$0x3f] %v5275_v3  ;;  %128 = vst [vmem:[#allocation5 + $0x10] sm:$0x3f] %v5275_v3 }
  0x2f   :  { %129 = vst [vmem:[#allocation5 + $0x18] sm:$0x3f] %v5275_v3  ;;  %130 = vst [vmem:[#allocation5 + $0x20] sm:$0x3f] %v5275_v3 }
  0x30   :  { %132 = vst [vmem:[#allocation5 + $0x30] sm:$0x3f] %v5275_v3  ;;  %133 = vst [vmem:[#allocation5 + $0x38] sm:$0x3f] %v5275_v3 }
  0x31   :  { %134 = vst [vmem:[#allocation5 + $0x40] sm:$0x3f] %v5275_v3  ;;  %135 = vst [vmem:[#allocation5 + $0x48] sm:$0x3f] %v5275_v3 }
  0x32   :  { %136 = vst [vmem:[#allocation5 + $0x50] sm:$0x3f] %v5275_v3  ;;  %138 = vst [vmem:[#allocation6] sm:$0xf] %v5275_v3 }
  0x33   :  { %139 = vst [vmem:[#allocation6 + $0x4] sm:$0xf] %v5275_v3  ;;  %140 = vst [vmem:[#allocation6 + $0x8] sm:$0xf] %v5275_v3 }
  0x34   :  { %141 = vst [vmem:[#allocation6 + $0xc] sm:$0xf] %v5275_v3  ;;  %142 = vst [vmem:[#allocation6 + $0x10] sm:$0xf] %v5275_v3 }
  0x35   :  { %143 = vst [vmem:[#allocation6 + $0x14] sm:$0xf] %v5275_v3  ;;  %144 = vst [vmem:[#allocation6 + $0x18] sm:$0xf] %v5275_v3 }
  0x36   :  { %145 = vst [vmem:[#allocation6 + $0x1c] sm:$0xf] %v5275_v3  ;;  %146 = vst [vmem:[#allocation7] sm:$0xf] %v5275_v3 }
  0x37   :  { %147 = vst [vmem:[#allocation7 + $0x4] sm:$0xf] %v5275_v3  ;;  %148 = vst [vmem:[#allocation7 + $0x8] sm:$0xf] %v5275_v3 }
  0x38   :  { %150 = vst [vmem:[#allocation7 + $0x10] sm:$0xf] %v5275_v3  ;;  %151 = vst [vmem:[#allocation7 + $0x14] sm:$0xf] %v5275_v3 }
  0x39   :  { %152 = vst [vmem:[#allocation7 + $0x18] sm:$0xf] %v5275_v3  ;;  %154 = vst [vmem:[#allocation8] sm:$0x7] %v5275_v3 }
  0x3a   :  { %155 = vst [vmem:[#allocation8 + $0x4] sm:$0x7] %v5275_v3  ;;  %156 = vst [vmem:[#allocation8 + $0x8] sm:$0x7] %v5275_v3 }
  0x3b   :  { %157 = vst [vmem:[#allocation8 + $0xc] sm:$0x7] %v5275_v3  ;;  %158 = vst [vmem:[#allocation8 + $0x10] sm:$0x7] %v5275_v3 }
  0x3c   :  { %159 = vst [vmem:[#allocation8 + $0x14] sm:$0x7] %v5275_v3  ;;  %160 = vst [vmem:[#allocation9] sm:$0x7] %v5275_v3 }
  0x3d   :  { %161 = vst [vmem:[#allocation9 + $0x4] sm:$0x7] %v5275_v3  ;;  %162 = vst [vmem:[#allocation9 + $0x8] sm:$0x7] %v5275_v3 }
  0x3e   :  { %163 = vst [vmem:[#allocation9 + $0xc] sm:$0x7] %v5275_v3  ;;  %164 = vst [vmem:[#allocation9 + $0x10] sm:$0x7] %v5275_v3 }
  0x3f   :  { %165 = vst [vmem:[#allocation9 + $0x14] sm:$0x7] %v5275_v3  ;;  %166 = vst [vmem:[#allocation10] sm:$0x7] %v5275_v3 }
  0x40   :  { %167 = vst [vmem:[#allocation10 + $0x4] sm:$0x7] %v5275_v3  ;;  %168 = vst [vmem:[#allocation10 + $0x8] sm:$0x7] %v5275_v3 }
  0x41   :  { %169 = vst [vmem:[#allocation10 + $0xc] sm:$0x7] %v5275_v3  ;;  %170 = vst [vmem:[#allocation10 + $0x10] sm:$0x7] %v5275_v3 }
  0x42   :  { %171 = vst [vmem:[#allocation10 + $0x14] sm:$0x7] %v5275_v3  ;;  %172 = vst [vmem:[#allocation11] sm:$0x7] %v5275_v3 }
  0x43   :  { %173 = vst [vmem:[#allocation11 + $0x4] sm:$0x7] %v5275_v3  ;;  %174 = vst [vmem:[#allocation11 + $0x8] sm:$0x7] %v5275_v3 }
  0x44   :  { %175 = vst [vmem:[#allocation11 + $0xc] sm:$0x7] %v5275_v3  ;;  %176 = vst [vmem:[#allocation11 + $0x10] sm:$0x7] %v5275_v3 }
  0x45   :  { %177 = vst [vmem:[#allocation11 + $0x14] sm:$0x7] %v5275_v3 }
  0x46   :  { %14 = vsyncpa [#allocation13], 0  ;;  %v5159_v11 = vld [vmem:[%s6965_s5] sm:$0xff]   ;;  %v5160_v12 = vld [vmem:[%s6965_s5 + $0x8] sm:$0xff]   ;;  %v430_v19 = vlaneseq  ;;  %vm1761_vm1 = vcmask 1041409   ;;  %vm1764_vm2 = vcmask 1042434  }
  0x47   :  { %4912 = vmatprep.subr.bf16.mxu1 %v5159_v11  ;;  %v5161_v13 = vld [vmem:[%s6965_s5 + $0x10] sm:$0xff]   ;;  %v5162_v14 = vld [vmem:[%s6965_s5 + $0x18] sm:$0xff]   ;;  %v5163_v15 = vld [vmem:[%s6965_s5 + $0x20] sm:$0xff]   ;;  %vm1767_vm3 = vcmask 1043459   ;;  %vm1770_vm4 = vcmask 1044484   ;;  %vm1773_vm5 = vcmask 1045509  }
  0x48   :  { %4913 = vmatpush3.bf16.msra.mxu1 %v5159_v11  ;;  %v5164_v16 = vld [vmem:[%s6965_s5 + $0x28] sm:$0xff]   ;;  %v5165_v17 = vld [vmem:[%s6965_s5 + $0x30] sm:$0xff]   ;;  %v5166_v18 = vld [vmem:[%s6965_s5 + $0x38] sm:$0xff]   ;;  %v5540_v20 = vshrl.u32 %v430_v19, 7  ;;  %vm1776_vm6 = vcmask 1046534   ;;  %vm1779_vm7 = vcmask 1047559  }
  0x49   :  { %4914 = vmatprep.subr.bf16.mxu1 %v5160_v12  ;;  %v412_v23 = vld [vmem:[%s6963_s3] sm:$0xff]  ;;  %v770_v58 = vld [vmem:[#allocation2 + $0x91] sm:$0xff]  ;;  %v5604_v62 = vld [vmem:[%s6963_s3 + $0x8] ss:$0 sm:$0xff]  ;;  %vm5277_vm8 = vmmov 0  }
  0x4a   :  { %6995 = vst [vmem:[#allocation15_spill] sm:$0xff] %v5540_v20  ;;  %v5543_v21 = vsub.s32 0, %v5540_v20  ;;  %v5546_v22 = vsub.s32 1, %v5540_v20  ;;  %v5555_v25 = vsub.s32 2, %v5540_v20  ;;  %v450_v26 = vld [vmem:[#allocation2 + $0x1] sm:$0xff]  ;;  %v5573_v38 = vsub.s32 4, %v5540_v20 }
  0x4b   :  { %v458_v28 = vld [vmem:[#allocation2 + $0xa1] sm:$0xff]  ;;  %v5563_v29 = vld [vmem:[%s6962_s2] ss:$0 sm:$0xff]  ;;  %v5576_v39 = vsub.s32 7, %v5540_v20  ;;  %v5580_v43 = vsub.s32 3, %v5540_v20  ;;  %v5583_v44 = vsub.s32 5, %v5540_v20 }
  0x4c   :  { %4915 = vmatpush3.bf16.msra.mxu1 %v5160_v12  ;;  %6996 = vst [vmem:[#allocation16_spill] sm:$0xff] %v5543_v21  ;;  %6997 = vst [vmem:[#allocation17_spill] sm:$0xff] %v5546_v22  ;;  %v5552_v24 = vrot.slane %v412_v23, %v5543_v21  ;;  %v5558_v27 = vrot.slane %v412_v23, %v5546_v22  ;;  %v5568_v32 = vrot.slane %v412_v23, %v5555_v25  ;;  %v502_v34 = vld [vmem:[#allocation2 + $0x2] sm:$0xff]  ;;  %v822_v59 = vld [vmem:[#allocation2 + $0x92] sm:$0xff] }
  0x4d   :  { %4916 = vmatprep.subr.bf16.mxu1 %v5161_v13  ;;  %6998 = vst [vmem:[#allocation18_spill] sm:$0xff] %v5555_v25  ;;  %6999 = vst [vmem:[#allocation19_spill] sm:$0xff] %v5573_v38  ;;  %v510_v40 = vld [vmem:[#allocation2 + $0xa2] sm:$0xff]  ;;  %v5586_v45 = vsub.s32 6, %v5540_v20  ;;  %v5593_v56 = vrot.slane %v412_v23, %v5573_v38  ;;  %v5596_v57 = vrot.slane %v412_v23, %v5576_v39 }
  0x4e   :  { %v434_v30 = vmul.f32 0.0, %v5552_v24  ;;  %v470_v31 = vmul.f32 %v5558_v27, %v450_v26  ;;  %v478_v35 = vmul.f32 %v5558_v27, %v458_v28  ;;  %7000 = vst [vmem:[#allocation20_spill] sm:$0xff] %v5576_v39  ;;  %7001 = vst [vmem:[#allocation21_spill] sm:$0xff] %v5580_v43  ;;  %v522_v50 = vmul.f32 %v5568_v32, %v502_v34 }
  0x4f   :  { %7002 = vst [vmem:[#allocation22_spill] sm:$0xff] %v5583_v44  ;;  %7003 = vst [vmem:[#allocation23_spill] sm:$0xff] %v5586_v45  ;;  %v530_v54 = vmul.f32 %v5568_v32, %v510_v40  ;;  %v5599_v61 = vrot.slane %v412_v23, %v5586_v45  ;;  %v5607_v0 = vrot.slane %v412_v23, %v5580_v43 }
  0x50   :  { %4917 = vmatpush3.bf16.msra.mxu1 %v5161_v13  ;;  %v486_v49 = vadd.f32 %v470_v31, %v434_v30  ;;  %v494_v53 = vadd.f32 %v478_v35, %v434_v30  ;;  %v5610_v1 = vrot.slane %v412_v23, %v5583_v44  ;;  %v5616_v4 = vmul.f32 %v5596_v57, %v770_v58 }
  0x51   :  { %4918 = vmatprep.subr.bf16.mxu1 %v5162_v14  ;;  %v5613_v3 = vmul.f32 0.0, %v5599_v61  ;;  %v5619_v5 = vmul.f32 %v5604_v62, %v822_v59 }
  0x52   :  { %v538_v63 = vadd.f32 %v522_v50, %v486_v49  ;;  %v5621_v6 = vadd.f32 %v530_v54, %v494_v53 }
  0x54   :  { %4919 = vmatpush3.bf16.msra.mxu1 %v5162_v14 }
  0x55   :  { %4920 = vmatprep.subr.bf16.mxu1 %v5163_v15 }
  0x58   :  { %4921 = vmatpush3.bf16.msra.mxu1 %v5163_v15 }
  0x59   :  { %4922 = vmatprep.subr.bf16.mxu1 %v5164_v16 }
  0x5c   :  { %4923 = vmatpush3.bf16.msra.mxu1 %v5164_v16 }
  0x5d   :  { %4924 = vmatprep.subr.bf16.mxu1 %v5165_v17 }
  0x60   :  { %4925 = vmatpush3.bf16.msra.mxu1 %v5165_v17 }
  0x61   :  { %4926 = vmatprep.subr.bf16.mxu1 %v5166_v18 }
  0x64   :  { %4927 = vmatpush3.bf16.msra.mxu1 %v5166_v18 }
  0xdd   :  { %v4898_v33 = vpop.f32.mrb[0].mxu0 }
  0xde   :  { %v325_v36 = vadd.f32 %v4898_v33, %v5563_v29  ;;  %v316_v37 = vpop.f32.mrb[1].mxu0 }
  0xdf   :  { %v317_v41 = vadd.f32 %v5563_v29, %v316_v37  ;;  %v4899_v42 = vpop.f32.mrb[2].mxu0 }
  0xe0   :  { %v381_v46 = vmax.f32 %v325_v36, 0.0  ;;  %v328_v47 = vadd.f32 %v4899_v42, %v5563_v29  ;;  %v319_v48 = vpop.f32.mrb[3].mxu0 }
  0xe1   :  { %v379_v51 = vmax.f32 %v317_v41, 0.0  ;;  %v320_v52 = vadd.f32 %v5563_v29, %v319_v48 }
  0xe2   :  { %398 = vst [vmem:[#allocation2 + $0x31] sm:$0xff] %v381_v46  ;;  %v382_v55 = vmax.f32 %v328_v47, 0.0  ;;  %v5625_v9 = vmul.f32 %v5596_v57, %v381_v46  ;;  %v473_v10 = vmul.f32 %v5558_v27, %v381_v46  ;;  %v5629_v11 = vmul.f32 %v5593_v56, %v381_v46 }
  0xe3   :  { %396 = vst [vmem:[#allocation2 + $0x11] sm:$0xff] %v379_v51  ;;  %v380_v60 = vmax.f32 %v320_v52, 0.0  ;;  %v471_v14 = vmul.f32 %v5558_v27, %v379_v51  ;;  %v626_v15 = vmul.f32 %v5593_v56, %v379_v51 }
  0xe4   :  { %399 = vst [vmem:[#allocation2 + $0x41] sm:$0xff] %v382_v55  ;;  %v5635_v16 = vmul.f32 %v5593_v56, %v382_v55  ;;  %v5641_v23 = vmul.f32 %v5596_v57, %v382_v55  ;;  %v5644_v26 = vmul.f32 %v5558_v27, %v382_v55 }
  0xe5   :  { %397 = vst [vmem:[#allocation2 + $0x21] sm:$0xff] %v380_v60  ;;  %v4902_v2 = vpop.f32.mrb[4].mxu0  ;;  %v627_v31 = vmul.f32 %v5593_v56, %v380_v60  ;;  %v5651_v34 = vmul.f32 %v5596_v57, %v380_v60  ;;  %v472_v46 = vmul.f32 %v5558_v27, %v380_v60 }
  0xe6   :  { %v341_v7 = vadd.f32 %v4902_v2, %v5563_v29  ;;  %v332_v8 = vpop.f32.mrb[5].mxu0 }
  0xe7   :  { %v333_v12 = vadd.f32 %v5563_v29, %v332_v8  ;;  %v4903_v13 = vpop.f32.mrb[6].mxu0 }
  0xe8   :  { %v5637_v17 = vmax.f32 %v341_v7, 0.0  ;;  %v344_v18 = vadd.f32 %v4903_v13, %v5563_v29  ;;  %v335_v19 = vpop.f32.mrb[7].mxu0 }
  0xe9   :  { %v5646_v28 = vmax.f32 %v333_v12, 0.0  ;;  %v336_v30 = vadd.f32 %v5563_v29, %v335_v19  ;;  %v712_v33 = vld [vmem:[#allocation2 + $0x30] sm:$0xff] }
  0xea   :  { %v816_v35 = vld [vmem:[#allocation2 + $0x32] sm:$0xff]  ;;  %402 = vst [vmem:[#allocation2 + $0x71] sm:$0xff] %v5637_v17  ;;  %v5654_v36 = vmax.f32 %v344_v18, 0.0  ;;  %v5657_v41 = vmul.f32 %v5599_v61, %v712_v33  ;;  %v437_v42 = vmul.f32 %v712_v33, %v5552_v24  ;;  %v576_v8 = vmul.f32 %v712_v33, %v5607_v0 }
  0xeb   :  { %v415_v37 = vld [vmem:[#allocation2 + $0x10] sm:$0xff]  ;;  %400 = vst [vmem:[#allocation2 + $0x51] sm:$0xff] %v5646_v28  ;;  %v5662_v47 = vmax.f32 %v336_v30, 0.0  ;;  %v5667_v50 = vmul.f32 %v5604_v62, %v816_v35  ;;  %v525_v58 = vmul.f32 %v816_v35, %v5568_v32 }
  0xec   :  { %v503_v40 = vld [vmem:[#allocation2 + $0x12] sm:$0xff]  ;;  %v435_v48 = vmul.f32 %v5552_v24, %v415_v37  ;;  %v574_v49 = vmul.f32 %v5607_v0, %v415_v37  ;;  %403 = vst [vmem:[#allocation2 + $0x81] sm:$0xff] %v5654_v36  ;;  %v555_v52 = vld [vmem:[#allocation2 + $0x20] sm:$0xff]  ;;  %v489_v55 = vadd.f32 %v473_v10, %v437_v42 }
  0xed   :  { %v523_v51 = vmul.f32 %v5568_v32, %v503_v40  ;;  %v659_v53 = vld [vmem:[#allocation2 + $0x22] sm:$0xff]  ;;  %v678_v54 = vmul.f32 %v5610_v1, %v503_v40  ;;  %401 = vst [vmem:[#allocation2 + $0x61] sm:$0xff] %v5662_v47  ;;  %v4906_v59 = vpop.f32.mrb[8].mxu0  ;;  %v575_v2 = vmul.f32 %v5607_v0, %v555_v52  ;;  %v731_v19 = vmul.f32 %v5599_v61, %v555_v52 }
  0xee   :  { %v487_v60 = vadd.f32 %v471_v14, %v435_v48  ;;  %v590_v7 = vadd.f32 %v574_v49, %v538_v63  ;;  %v357_v12 = vadd.f32 %v4906_v59, %v5563_v29  ;;  %v348_v13 = vpop.f32.mrb[9].mxu0  ;;  %v679_v18 = vmul.f32 %v5610_v1, %v659_v53  ;;  %v557_v48 = vld [vmem:[#allocation2 + $0x40] sm:$0xff] }
  0xef   :  { %v436_v10 = vmul.f32 %v555_v52, %v5552_v24  ;;  %v349_v30 = vadd.f32 %v5563_v29, %v348_v13  ;;  %v4907_v37 = vpop.f32.mrb[10].mxu0  ;;  %v524_v14 = vmul.f32 %v659_v53, %v5568_v32  ;;  %v541_v20 = vadd.f32 %v525_v58, %v489_v55  ;;  %v661_v13 = vld [vmem:[#allocation2 + $0x42] sm:$0xff] }
  0xf0   :  { %v539_v40 = vadd.f32 %v523_v51, %v487_v60  ;;  %v642_v42 = vadd.f32 %v626_v15, %v590_v7  ;;  %v5682_v63 = vmax.f32 %v357_v12, 0.0  ;;  %v360_v33 = vadd.f32 %v4907_v37, %v5563_v29  ;;  %v351_v49 = vpop.f32.mrb[11].mxu0 }
  0xf1   :  { %v488_v59 = vadd.f32 %v472_v46, %v436_v10  ;;  %v5685_v39 = vmax.f32 %v349_v30, 0.0  ;;  %v352_v45 = vadd.f32 %v5563_v29, %v351_v49  ;;  %v835_v51 = vmul.f32 %v5604_v62, %v659_v53 }
  0xf2   :  { %v591_v52 = vadd.f32 %v575_v2, %v539_v40  ;;  %v694_v44 = vadd.f32 %v678_v54, %v642_v42  ;;  %406 = vst [vmem:[#allocation2 + $0xd1] sm:$0xff] %v5682_v63  ;;  %v5689_v15 = vmax.f32 %v360_v33, 0.0  ;;  %v577_v7 = vmul.f32 %v5607_v0, %v557_v48  ;;  %v714_v12 = vld [vmem:[#allocation2 + $0x50] sm:$0xff] }
  0xf3   :  { %v540_v60 = vadd.f32 %v524_v14, %v488_v59  ;;  %404 = vst [vmem:[#allocation2 + $0xb1] sm:$0xff] %v5685_v39  ;;  %v5694_v46 = vmax.f32 %v352_v45, 0.0  ;;  %v680_v2 = vmul.f32 %v816_v35, %v5610_v1  ;;  %v681_v30 = vmul.f32 %v5610_v1, %v661_v13 }
  0xf4   :  { %v643_v55 = vadd.f32 %v627_v31, %v591_v52  ;;  %v747_v58 = vadd.f32 %v731_v19, %v694_v44  ;;  %407 = vst [vmem:[#allocation2 + $0xe1] sm:$0xff] %v5689_v15  ;;  %v593_v10 = vadd.f32 %v577_v7, %v541_v20  ;;  %v733_v53 = vmul.f32 %v5599_v61, %v557_v48  ;;  %v5709_v20 = vld [vmem:[%s6964_s4] ss:$0 sm:$0xff] }
  0xf5   :  { %v592_v54 = vadd.f32 %v576_v8, %v540_v60  ;;  %405 = vst [vmem:[#allocation2 + $0xc1] sm:$0xff] %v5694_v46  ;;  %v4910_v37 = vpop.f32.mrb[12].mxu0  ;;  %v734_v45 = vmul.f32 %v5599_v61, %v714_v12  ;;  %v786_v44 = vmul.f32 %v5596_v57, %v5646_v28  ;;  %v438_v59 = vmul.f32 %v557_v48, %v5552_v24 }
  0xf6   :  { %v695_v40 = vadd.f32 %v679_v18, %v643_v55  ;;  %v799_v42 = vadd.f32 %v5651_v34, %v747_v58  ;;  %v373_v31 = vadd.f32 %v4910_v37, %v5563_v29  ;;  %v364_v35 = vpop.f32.mrb[13].mxu0  ;;  %v645_v19 = vadd.f32 %v5635_v16, %v593_v10 }
  0xf7   :  { %v644_v8 = vadd.f32 %v5629_v11, %v592_v54  ;;  %v837_v18 = vmul.f32 %v5604_v62, %v661_v13  ;;  %v365_v34 = vadd.f32 %v5563_v29, %v364_v35  ;;  %v4911_v14 = vpop.f32.mrb[14].mxu0  ;;  %v818_v11 = vld [vmem:[#allocation2 + $0x52] sm:$0xff]  ;;  %v559_v35 = vld [vmem:[#allocation2 + $0x60] sm:$0xff] }
  0xf8   :  { %v748_v33 = vadd.f32 %v5657_v41, %v695_v40  ;;  %v851_v49 = vadd.f32 %v835_v51, %v799_v42  ;;  %v5717_v52 = vmax.f32 %v373_v31, 0.0  ;;  %v376_v60 = vadd.f32 %v4911_v14, %v5563_v29  ;;  %v367_v7 = vpop.f32.mrb[15].mxu0 }
  0xf9   :  { %v696_v55 = vadd.f32 %v680_v2, %v644_v8  ;;  %v697_v58 = vadd.f32 %v681_v30, %v645_v19  ;;  %v5720_v54 = vmax.f32 %v365_v34, 0.0  ;;  %v368_v16 = vadd.f32 %v5563_v29, %v367_v7 }
  0xfa   :  { %v800_v10 = vadd.f32 %v5625_v9, %v748_v33  ;;  %v874_v37 = vadd.f32 %v5709_v20, %v851_v49  ;;  %410 = vst [vmem:[#allocation2 + $0x111] sm:$0xff] %v5717_v52  ;;  %v5726_v41 = vmax.f32 %v376_v60, 0.0  ;;  %v439_v40 = vmul.f32 %v714_v12, %v5552_v24 }
  0xfb   :  { %v749_v48 = vadd.f32 %v733_v53, %v696_v55  ;;  %v750_v51 = vadd.f32 %v734_v45, %v697_v58  ;;  %408 = vst [vmem:[#allocation2 + $0xf1] sm:$0xff] %v5720_v54  ;;  %v5730_v2 = vmax.f32 %v368_v16, 0.0  ;;  %v838_v29 = vmul.f32 %v5604_v62, %v818_v11  ;;  %v716_v16 = vld [vmem:[#allocation2 + $0x70] sm:$0xff] }
  0xfc   :  { %v852_v30 = vadd.f32 %v5667_v50, %v800_v10  ;;  %v475_v9 = vmul.f32 %v5558_v27, %v5646_v28  ;;  %411 = vst [vmem:[#allocation2 + $0x121] sm:$0xff] %v5726_v41  ;;  %v490_v53 = vadd.f32 %v5644_v26, %v438_v59  ;;  %v526_v45 = vmul.f32 %v661_v13, %v5568_v32 }
  0xfd   :  { %v801_v42 = vadd.f32 %v5641_v23, %v749_v48  ;;  %v802_v31 = vadd.f32 %v786_v44, %v750_v51  ;;  %409 = vst [vmem:[#allocation2 + $0x101] sm:$0xff] %v5730_v2  ;;  %v527_v19 = vmul.f32 %v818_v11, %v5568_v32  ;;  %v578_v34 = vmul.f32 %v714_v12, %v5607_v0  ;;  %v663_v23 = vld [vmem:[#allocation2 + $0x62] sm:$0xff] }
  0xfe   :  { %v875_v8 = vadd.f32 %v5709_v20, %v852_v30  ;;  %v491_v50 = vadd.f32 %v475_v9, %v439_v40  ;;  %v890_v14 = vmax.f32 %v874_v37, 0.0  ;;  %v542_v60 = vadd.f32 %v526_v45, %v490_v53  ;;  %v820_v53 = vld [vmem:[#allocation2 + $0x72] sm:$0xff] }
  0xff   :  { %v853_v33 = vadd.f32 %v837_v18, %v801_v42  ;;  %v854_v49 = vadd.f32 %v838_v29, %v802_v31  ;;  %v579_v26 = vmul.f32 %v5607_v0, %v559_v35  ;;  %v630_v13 = vmul.f32 %v5593_v56, %v5646_v28 }
 0x100   :  { %v891_v44 = vmax.f32 %v875_v8, 0.0  ;;  %v543_v7 = vadd.f32 %v527_v19, %v491_v50  ;;  %v594_v58 = vadd.f32 %v578_v34, %v542_v60  ;;  %v631_v12 = vmul.f32 %v5593_v56, %v5662_v47 }
 0x101   :  { %v876_v59 = vadd.f32 %v5709_v20, %v853_v33  ;;  %v877_v55 = vadd.f32 %v5709_v20, %v854_v49  ;;  %v682_v37 = vmul.f32 %v818_v11, %v5610_v1  ;;  %v683_v48 = vmul.f32 %v5610_v1, %v663_v23  ;;  %v561_v49 = vld [vmem:[#allocation2 + $0x80] sm:$0xff] }
 0x102   :  { %v906_v18 = vpack.c.bf16 %v891_v44, %v890_v14  ;;  %v595_v10 = vadd.f32 %v579_v26, %v543_v7  ;;  %v646_v30 = vadd.f32 %v630_v13, %v594_v58  ;;  %v735_v28 = vmul.f32 %v5599_v61, %v559_v35  ;;  %v665_v58 = vld [vmem:[#allocation2 + $0x82] sm:$0xff] }
 0x103   :  { %v892_v51 = vmax.f32 %v876_v59, 0.0  ;;  %v893_v40 = vmax.f32 %v877_v55, 0.0  ;;  %v736_v9 = vmul.f32 %v5599_v61, %v716_v16  ;;  %v787_v42 = vmul.f32 %v5596_v57, %v5662_v47 }
 0x104   :  { %4928 = vmatprep.mubr.bf16.mxu1 %v906_v18  ;;  %v647_v29 = vadd.f32 %v631_v12, %v595_v10  ;;  %v788_v31 = vmul.f32 %v5596_v57, %v5637_v17  ;;  %v698_v11 = vadd.f32 %v682_v37, %v646_v30  ;;  %v839_v8 = vmul.f32 %v5604_v62, %v663_v23  ;;  %v423_v37 = vld [vmem:[#allocation2 + $0xb0] sm:$0xff] }
 0x105   :  { %v907_v45 = vpack.c.bf16 %v893_v40, %v892_v51  ;;  %v440_v50 = vmul.f32 %v559_v35, %v5552_v24  ;;  %v441_v34 = vmul.f32 %v716_v16, %v5552_v24  ;;  %v476_v14 = vmul.f32 %v5558_v27, %v5662_v47 }
 0x106   :  { %v699_v19 = vadd.f32 %v683_v48, %v647_v29  ;;  %v477_v33 = vmul.f32 %v5558_v27, %v5637_v17  ;;  %v751_v60 = vadd.f32 %v735_v28, %v698_v11  ;;  %v840_v44 = vmul.f32 %v5604_v62, %v820_v53 }
 0x107   :  { %4929 = vmatmul.mubr.bf16.vlgmr.msra.gmra.mrb[0].mxu1 %v907_v45  ;;  %v528_v7 = vmul.f32 %v663_v23, %v5568_v32  ;;  %v529_v26 = vmul.f32 %v820_v53, %v5568_v32  ;;  %v492_v35 = vadd.f32 %v476_v14, %v440_v50  ;;  %v580_v55 = vmul.f32 %v716_v16, %v5607_v0  ;;  %v563_v50 = vld [vmem:[#allocation2 + $0xc0] sm:$0xff] }
 0x108   :  { %v752_v13 = vadd.f32 %v736_v9, %v699_v19  ;;  %v493_v59 = vadd.f32 %v477_v33, %v441_v34  ;;  %v803_v12 = vadd.f32 %v787_v42, %v751_v60  ;;  %v581_v47 = vmul.f32 %v5607_v0, %v561_v49  ;;  %v511_v9 = vld [vmem:[#allocation2 + $0xb2] sm:$0xff] }
 0x109   :  { %v632_v18 = vmul.f32 %v5593_v56, %v5637_v17  ;;  %v633_v10 = vmul.f32 %v5593_v56, %v5654_v36  ;;  %v544_v23 = vadd.f32 %v528_v7, %v492_v35  ;;  %v684_v40 = vmul.f32 %v820_v53, %v5610_v1 }
 0x10a   :  { %v804_v48 = vadd.f32 %v788_v31, %v752_v13  ;;  %v545_v51 = vadd.f32 %v529_v26, %v493_v59  ;;  %v855_v30 = vadd.f32 %v839_v8, %v803_v12  ;;  %v685_v28 = vmul.f32 %v5610_v1, %v665_v58  ;;  %v667_v26 = vld [vmem:[#allocation2 + $0xc2] sm:$0xff] }
 0x10b   :  { %v737_v16 = vmul.f32 %v5599_v61, %v561_v49  ;;  %v789_v29 = vmul.f32 %v5596_v57, %v5654_v36  ;;  %v596_v17 = vadd.f32 %v580_v55, %v544_v23  ;;  %v443_v11 = vmul.f32 %v5552_v24, %v423_v37 }
 0x10c   :  { %v856_v42 = vadd.f32 %v840_v44, %v804_v48  ;;  %v597_v45 = vadd.f32 %v581_v47, %v545_v51  ;;  %v878_v31 = vadd.f32 %v5709_v20, %v855_v30  ;;  %v841_v19 = vmul.f32 %v5604_v62, %v665_v58  ;;  %v720_v58 = vld [vmem:[#allocation2 + $0xd0] sm:$0xff] }
 0x10d   :  { %v479_v53 = vmul.f32 %v5558_v27, %v5685_v39  ;;  %v582_v8 = vmul.f32 %v5607_v0, %v423_v37  ;;  %v648_v14 = vadd.f32 %v632_v18, %v596_v17  ;;  %v531_v33 = vmul.f32 %v5568_v32, %v511_v9 }
 0x10e   :  { %v879_v34 = vadd.f32 %v5709_v20, %v856_v42  ;;  %v649_v36 = vadd.f32 %v633_v10, %v597_v45  ;;  %v583_v60 = vmul.f32 %v5607_v0, %v563_v50  ;;  %v634_v7 = vmul.f32 %v5593_v56, %v5685_v39 }
 0x10f   :  { %v495_v49 = vadd.f32 %v479_v53, %v443_v11  ;;  %v598_v44 = vadd.f32 %v582_v8, %v5621_v6  ;;  %v894_v13 = vmax.f32 %v878_v31, 0.0  ;;  %v700_v59 = vadd.f32 %v684_v40, %v648_v14 }
 0x110   :  { %v895_v35 = vmax.f32 %v879_v34, 0.0  ;;  %v701_v55 = vadd.f32 %v685_v28, %v649_v36  ;;  %v635_v47 = vmul.f32 %v5593_v56, %v5694_v46  ;;  %v686_v10 = vmul.f32 %v5610_v1, %v511_v9  ;;  %v824_v9 = vld [vmem:[#allocation2 + $0xd2] sm:$0xff] }
 0x111   :  { %v547_v12 = vadd.f32 %v531_v33, %v495_v49  ;;  %v650_v18 = vadd.f32 %v634_v7, %v598_v44  ;;  %v753_v48 = vadd.f32 %v737_v16, %v700_v59  ;;  %v687_v23 = vmul.f32 %v5610_v1, %v667_v26 }
 0x112   :  { %v908_v37 = vpack.c.bf16 %v895_v35, %v894_v13  ;;  %v754_v6 = vadd.f32 %v5613_v3, %v701_v55  ;;  %v739_v30 = vmul.f32 %v5599_v61, %v563_v50  ;;  %v740_v40 = vmul.f32 %v5599_v61, %v720_v58 }
 0x113   :  { %v599_v39 = vadd.f32 %v583_v60, %v547_v12  ;;  %v702_v51 = vadd.f32 %v686_v10, %v650_v18  ;;  %v805_v28 = vadd.f32 %v789_v29, %v753_v48  ;;  %v791_v17 = vmul.f32 %v5596_v57, %v5694_v46 }
 0x114   :  { %4932 = vmatprep.mubr.bf16.mxu1 %v908_v37  ;;  %v806_v42 = vadd.f32 %v5616_v4, %v754_v6  ;;  %v792_v16 = vmul.f32 %v5596_v57, %v5682_v63  ;;  %v843_v31 = vmul.f32 %v5604_v62, %v667_v26  ;;  %v444_v53 = vmul.f32 %v563_v50, %v5552_v24  ;;  %v669_v6 = vld [vmem:[#allocation2 + $0xe2] sm:$0xff] }
 0x115   :  { %v651_v45 = vadd.f32 %v635_v47, %v599_v39  ;;  %v755_v11 = vadd.f32 %v739_v30, %v702_v51  ;;  %v857_v8 = vadd.f32 %v841_v19, %v805_v28  ;;  %v445_v29 = vmul.f32 %v720_v58, %v5552_v24  ;;  %v722_v51 = vld [vmem:[#allocation2 + $0xf0] sm:$0xff] }
 0x116   :  { %v858_v34 = vadd.f32 %v5619_v5, %v806_v42  ;;  %v480_v4 = vmul.f32 %v5558_v27, %v5694_v46  ;;  %v844_v33 = vmul.f32 %v5604_v62, %v824_v9  ;;  %v481_v49 = vmul.f32 %v5558_v27, %v5682_v63  ;;  %v565_v5 = vld [vmem:[#allocation2 + $0xe0] sm:$0xff] }
 0x117   :  { %v703_v14 = vadd.f32 %v687_v23, %v651_v45  ;;  %v807_v36 = vadd.f32 %v791_v17, %v755_v11  ;;  %v880_v60 = vadd.f32 %v5709_v20, %v857_v8  ;;  %v532_v19 = vmul.f32 %v667_v26, %v5568_v32  ;;  %v826_v8 = vld [vmem:[#allocation2 + $0xf2] sm:$0xff] }
 0x118   :  { %v881_v44 = vadd.f32 %v5709_v20, %v858_v34  ;;  %v496_v50 = vadd.f32 %v480_v4, %v444_v53  ;;  %v497_v35 = vadd.f32 %v481_v49, %v445_v29  ;;  %v533_v46 = vmul.f32 %v824_v9, %v5568_v32 }
 0x119   :  { %v756_v7 = vadd.f32 %v740_v40, %v703_v14  ;;  %v859_v13 = vadd.f32 %v843_v31, %v807_v36  ;;  %v896_v59 = vmax.f32 %v880_v60, 0.0  ;;  %v584_v47 = vmul.f32 %v720_v58, %v5607_v0 }
 0x11a   :  { %v897_v55 = vmax.f32 %v881_v44, 0.0  ;;  %v548_v12 = vadd.f32 %v532_v19, %v496_v50  ;;  %v549_v37 = vadd.f32 %v533_v46, %v497_v35  ;;  %v585_v48 = vmul.f32 %v5607_v0, %v565_v5  ;;  %v567_v19 = vld [vmem:[#allocation2 + $0x100] sm:$0xff] }
 0x11b   :  { %v808_v18 = vadd.f32 %v792_v16, %v756_v7  ;;  %v882_v10 = vadd.f32 %v5709_v20, %v859_v13  ;;  %v636_v39 = vmul.f32 %v5593_v56, %v5682_v63  ;;  %v637_v28 = vmul.f32 %v5593_v56, %v5689_v15 }
 0x11c   :  { %v909_v23 = vpack.c.bf16 %v897_v55, %v896_v59  ;;  %v600_v26 = vadd.f32 %v584_v47, %v548_v12  ;;  %v601_v40 = vadd.f32 %v585_v48, %v549_v37  ;;  %v688_v58 = vmul.f32 %v824_v9, %v5610_v1  ;;  %v671_v37 = vld [vmem:[#allocation2 + $0x102] sm:$0xff]  ;;  %v724_v48 = vld [vmem:[#allocation2 + $0x110] sm:$0xff] }
 0x11d   :  { %v860_v30 = vadd.f32 %v844_v33, %v808_v18  ;;  %v898_v42 = vmax.f32 %v882_v10, 0.0  ;;  %v689_v16 = vmul.f32 %v5610_v1, %v669_v6  ;;  %v741_v45 = vmul.f32 %v5599_v61, %v565_v5 }
 0x11e   :  { %4933 = vmatmul.mubr.bf16.gmra.mrb[4].mxu1 %v909_v23  ;;  %v652_v17 = vadd.f32 %v636_v39, %v600_v26  ;;  %v653_v31 = vadd.f32 %v637_v28, %v601_v40  ;;  %v742_v63 = vmul.f32 %v5599_v61, %v722_v51  ;;  %v793_v53 = vmul.f32 %v5596_v57, %v5689_v15 }
 0x11f   :  { %v883_v11 = vadd.f32 %v5709_v20, %v860_v30  ;;  %v794_v9 = vmul.f32 %v5596_v57, %v5720_v54  ;;  %v446_v29 = vmul.f32 %v565_v5, %v5552_v24  ;;  %v447_v4 = vmul.f32 %v722_v51, %v5552_v24 }
 0x120   :  { %v704_v34 = vadd.f32 %v688_v58, %v652_v17  ;;  %v705_v36 = vadd.f32 %v689_v16, %v653_v31  ;;  %v482_v33 = vmul.f32 %v5558_v27, %v5689_v15  ;;  %v483_v49 = vmul.f32 %v5558_v27, %v5720_v54 }
 0x121   :  { %v899_v14 = vmax.f32 %v883_v11, 0.0  ;;  %v534_v44 = vmul.f32 %v669_v6, %v5568_v32  ;;  %v535_v50 = vmul.f32 %v826_v8, %v5568_v32  ;;  %v586_v7 = vmul.f32 %v722_v51, %v5607_v0  ;;  %v828_v11 = vld [vmem:[#allocation2 + $0x112] sm:$0xff] }
 0x122   :  { %v757_v60 = vadd.f32 %v741_v45, %v704_v34  ;;  %v758_v5 = vadd.f32 %v742_v63, %v705_v36  ;;  %v498_v35 = vadd.f32 %v482_v33, %v446_v29  ;;  %v499_v46 = vadd.f32 %v483_v49, %v447_v4  ;;  %v569_v36 = vld [vmem:[#allocation2 + $0x120] sm:$0xff] }
 0x123   :  { %v910_v13 = vpack.c.bf16 %v899_v14, %v898_v42  ;;  %v845_v55 = vmul.f32 %v5604_v62, %v669_v6  ;;  %v846_v15 = vmul.f32 %v5604_v62, %v826_v8  ;;  %v587_v10 = vmul.f32 %v5607_v0, %v567_v19 }
 0x124   :  { %v809_v59 = vadd.f32 %v793_v53, %v757_v60  ;;  %v810_v12 = vadd.f32 %v794_v9, %v758_v5  ;;  %v550_v47 = vadd.f32 %v534_v44, %v498_v35  ;;  %v551_v18 = vadd.f32 %v535_v50, %v499_v46 }
 0x125   :  { %4936 = vmatprep.mubr.bf16.mxu1 %v910_v13  ;;  %v638_v26 = vmul.f32 %v5593_v56, %v5720_v54  ;;  %v639_v39 = vmul.f32 %v5593_v56, %v5730_v2  ;;  %v690_v40 = vmul.f32 %v826_v8, %v5610_v1  ;;  %v691_v58 = vmul.f32 %v5610_v1, %v671_v37 }
 0x126   :  { %v861_v23 = vadd.f32 %v845_v55, %v809_v59  ;;  %v862_v51 = vadd.f32 %v846_v15, %v810_v12  ;;  %v602_v30 = vadd.f32 %v586_v7, %v550_v47  ;;  %v603_v6 = vadd.f32 %v587_v10, %v551_v18 }
 0x127   :  { %v743_v42 = vmul.f32 %v5599_v61, %v567_v19  ;;  %v744_v17 = vmul.f32 %v5599_v61, %v724_v48  ;;  %v448_v31 = vmul.f32 %v567_v19, %v5552_v24  ;;  %v449_v53 = vmul.f32 %v724_v48, %v5552_v24 }
 0x128   :  { %v884_v28 = vadd.f32 %v5709_v20, %v861_v23  ;;  %v885_v16 = vadd.f32 %v5709_v20, %v862_v51  ;;  %v654_v45 = vadd.f32 %v638_v26, %v602_v30  ;;  %v655_v54 = vadd.f32 %v639_v39, %v603_v6  ;;  %v778_v23 = vld [vmem:[#allocation2 + $0x131] sm:$0xff] }
 0x129   :  { %v484_v8 = vmul.f32 %v5558_v27, %v5730_v2  ;;  %v485_v34 = vmul.f32 %v5558_v27, %v5717_v52  ;;  %v795_v14 = vmul.f32 %v5596_v57, %v5730_v2  ;;  %v536_v60 = vmul.f32 %v671_v37, %v5568_v32  ;;  %v830_v6 = vld [vmem:[#allocation2 + $0x132] sm:$0xff] }
 0x12a   :  { %v900_v63 = vmax.f32 %v884_v28, 0.0  ;;  %v901_v9 = vmax.f32 %v885_v16, 0.0  ;;  %v706_v29 = vadd.f32 %v690_v40, %v654_v45  ;;  %v707_v4 = vadd.f32 %v691_v58, %v655_v54 }
 0x12b   :  { %v500_v33 = vadd.f32 %v484_v8, %v448_v31  ;;  %v501_v49 = vadd.f32 %v485_v34, %v449_v53  ;;  %v537_v44 = vmul.f32 %v828_v11, %v5568_v32  ;;  %v796_v7 = vmul.f32 %v5596_v57, %v5717_v52  ;;  %v673_v32 = vld [vmem:[#allocation2 + $0x122] sm:$0xff] }
 0x12c   :  { %v911_v24 = vpack.c.bf16 %v901_v9, %v900_v63  ;;  %v759_v50 = vadd.f32 %v743_v42, %v706_v29  ;;  %v760_v19 = vadd.f32 %v744_v17, %v707_v4  ;;  %v588_v5 = vmul.f32 %v724_v48, %v5607_v0  ;;  %v5171_v4 = vld [vmem:[%s6965_s5 + $0x60] sm:$0xff]  }
 0x12d   :  { %v552_v27 = vadd.f32 %v536_v60, %v500_v33  ;;  %v553_v13 = vadd.f32 %v537_v44, %v501_v49  ;;  %v589_v35 = vmul.f32 %v5607_v0, %v569_v36  ;;  %v847_v59 = vmul.f32 %v5604_v62, %v671_v37  ;;  %v5174_v33 = vld [vmem:[%s6965_s5 + $0x78] sm:$0xff]   ;;  %v5247_v49 = vld [vmem:[#allocation3 + $0x90] sm:$0xff]  ;;  %v5915_v60 = vld [vmem:[%s6966_s6] ss:$0 sm:$0xff] }
 0x12e   :  { %4937 = vmatmul.mubr.bf16.gmra.mrb[8].mxu1 %v911_v24  ;;  %v811_v2 = vadd.f32 %v795_v14, %v759_v50  ;;  %v812_v46 = vadd.f32 %v796_v7, %v760_v19  ;;  %v848_v55 = vmul.f32 %v5604_v62, %v828_v11  ;;  %v640_v47 = vmul.f32 %v5593_v56, %v5717_v52  ;;  %v5172_v14 = vld [vmem:[%s6965_s5 + $0x68] sm:$0xff]   ;;  %v4478_v44 = vld [vmem:[%s6963_s3 + $0x10] sm:$0xff] }
 0x12f   :  { %v604_v15 = vadd.f32 %v588_v5, %v552_v27  ;;  %v605_v12 = vadd.f32 %v589_v35, %v553_v13  ;;  %v641_v18 = vmul.f32 %v5593_v56, %v5726_v41  ;;  %v692_v39 = vmul.f32 %v828_v11, %v5610_v1  ;;  %v1138_v27 = vld [vmem:[#allocation3 + $0x1] sm:$0xff] }
 0x130   :  { %v863_v10 = vadd.f32 %v847_v59, %v811_v2  ;;  %v864_v48 = vadd.f32 %v848_v55, %v812_v46  ;;  %v693_v37 = vmul.f32 %v5610_v1, %v673_v32  ;;  %v745_v52 = vmul.f32 %v5599_v61, %v569_v36  ;;  %v5173_v36 = vld [vmem:[%s6965_s5 + $0x70] sm:$0xff]  }
 0x131   :  { %v656_v0 = vadd.f32 %v640_v47, %v604_v15  ;;  %v657_v26 = vadd.f32 %v641_v18, %v605_v12  ;;  %v798_v56 = vmul.f32 %v5596_v57, %v778_v23  ;;  %v797_v45 = vmul.f32 %v5596_v57, %v5726_v41  ;;  %v5167_v57 = vld [vmem:[%s6965_s5 + $0x40] sm:$0xff]   ;;  %v5168_v41 = vld [vmem:[%s6965_s5 + $0x48] sm:$0xff]  }
 0x132   :  { %v886_v51 = vadd.f32 %v5709_v20, %v863_v10  ;;  %v887_v30 = vadd.f32 %v5709_v20, %v864_v48  ;;  %v850_v1 = vmul.f32 %v5604_v62, %v830_v6  ;;  %v849_v63 = vmul.f32 %v5604_v62, %v673_v32  ;;  %4944 = vmatprep.subr.bf16.mxu0 %v5167_v57  ;;  %v5169_v62 = vld [vmem:[%s6965_s5 + $0x50] sm:$0xff]   ;;  %v1166_v10 = vld [vmem:[#allocation3 + $0x2] sm:$0xff] }
 0x133   :  { %v708_v40 = vadd.f32 %v692_v39, %v656_v0  ;;  %v709_v28 = vadd.f32 %v693_v37, %v657_v26  ;;  %4945 = vmatpush3.bf16.msra.mxu0 %v5167_v57  ;;  %v5921_v50 = vrot.slane %v4478_v44, %v5543_v21  ;;  %v5926_v35 = vrot.slane %v4478_v44, %v5546_v22  ;;  %v7007_v57 = vld [vmem:[#allocation15_spill] sm:$0xff] }
 0x134   :  { %v902_v58 = vmax.f32 %v886_v51, 0.0  ;;  %v903_v42 = vmax.f32 %v887_v30, 0.0  ;;  %4946 = vmatprep.subr.bf16.mxu0 %v5168_v41  ;;  %v5930_v59 = vrot.slane %v4478_v44, %v5555_v25  ;;  %v5940_v26 = vrot.slane %v4478_v44, %v5580_v43 }
 0x135   :  { %v761_v17 = vadd.f32 %v745_v52, %v708_v40  ;;  %v762_v16 = vadd.f32 %v5613_v3, %v709_v28  ;;  %v1134_v12 = vmul.f32 %v5247_v49, %v5921_v50  ;;  %v1150_v47 = vmul.f32 %v5926_v35, %v1138_v27  ;;  %v7004_v28 = vld [vmem:[#allocation22_spill] sm:$0xff] }
 0x136   :  { %v912_v54 = vpack.c.bf16 %v903_v42, %v902_v58  ;;  %v1178_v0 = vmul.f32 %v5930_v59, %v1166_v10  ;;  %v5276_v39 = vmov 1983009808   ;;  %v5943_v51 = vrot.slane %v4478_v44, %v5573_v38  ;;  %v7005_v58 = vld [vmem:[#allocation23_spill] sm:$0xff] }
 0x137   :  { %v813_v11 = vadd.f32 %v797_v45, %v761_v17  ;;  %v814_v31 = vadd.f32 %v798_v56, %v762_v16  ;;  %4947 = vmatpush3.bf16.msra.mxu0 %v5168_v41  ;;  %v1158_v23 = vadd.f32 %v1150_v47, %v1134_v12  ;;  %v1373_v37 = vunpack.c.l.s4 %v5276_v39 }
 0x138   :  { %4940 = vmatprep.mubr.bf16.mxu1 %v912_v54  ;;  %4948 = vmatprep.subr.bf16.mxu0 %v5169_v62  ;;  %v5947_v52 = vrot.slane %v4478_v44, %v7004_v28  ;;  %v5950_v42 = vrot.slane %v4478_v44, %v7005_v58 }
 0x139   :  { %v865_v53 = vadd.f32 %v849_v63, %v813_v11  ;;  %v866_v61 = vadd.f32 %v850_v1, %v814_v31  ;;  %v1186_v30 = vadd.f32 %v1178_v0, %v1158_v23  ;;  %v1374_v56 = vunpack.c.0.s8 %v1373_v37  ;;  %v1142_v1 = vld [vmem:[#allocation3 + $0xa1] sm:$0xff] }
 0x13b   :  { %v888_v8 = vadd.f32 %v5709_v20, %v865_v53  ;;  %v889_v34 = vadd.f32 %v5709_v20, %v866_v61  ;;  %v5170_v20 = vld [vmem:[%s6965_s5 + $0x58] sm:$0xff]   ;;  %4949 = vmatpush3.bf16.msra.mxu0 %v5169_v62  ;;  %v7006_v53 = vld [vmem:[#allocation20_spill] sm:$0xff]  ;;  %v5961_v41 = vsub.s32 %v1374_v56, %v7007_v57  ;;  %v1154_v62 = vmul.f32 %v5926_v35, %v1142_v1 }
 0x13c   :  { %4950 = vmatprep.subr.bf16.mxu0 %v5170_v20  ;;  %v5956_v61 = vrot.slane %v4478_v44, %v7006_v53  ;;  %v4482_v44 = vld [vmem:[%s6964_s4 + $0x1] ss:$0 sm:$0xff] }
 0x13d   :  { %v904_v9 = vmax.f32 %v888_v8, 0.0  ;;  %v905_v29 = vmax.f32 %v889_v34, 0.0  ;;  %v5979_v10 = vrot.slane %v4482_v44, %v5961_v41 }
 0x13f   :  { %v913_v3 = vpack.c.bf16 %v905_v29, %v904_v9  ;;  %4951 = vmatpush3.bf16.msra.mxu0 %v5170_v20  ;;  %v1170_v20 = vld [vmem:[#allocation3 + $0xa2] sm:$0xff] }
 0x140   :  { %4952 = vmatprep.subr.bf16.mxu0 %v5171_v4 }
 0x141   :  { %4941 = vmatmul.mubr.bf16.gmra.mrb[12].mxu1 %v913_v3 }
 0x143   :  { %4953 = vmatpush3.bf16.msra.mxu0 %v5171_v4 }
 0x144   :  { %4954 = vmatprep.subr.bf16.mxu0 %v5172_v14 }
 0x147   :  { %4955 = vmatpush3.bf16.msra.mxu0 %v5172_v14 }
 0x148   :  { %4956 = vmatprep.subr.bf16.mxu0 %v5173_v36 }
 0x14b   :  { %4957 = vmatpush3.bf16.msra.mxu0 %v5173_v36 }
 0x14c   :  { %4958 = vmatprep.subr.bf16.mxu0 %v5174_v33 }
 0x14f   :  { %4959 = vmatpush3.bf16.msra.mxu0 %v5174_v33 }
 0x150   :  { %4984 = vmatprep.subr.bf16.mxu0 %v5247_v49 }
 0x1da   :  { %v4930_v24 = vpop.f32.mrb[0].mxu1 }
 0x1db   :  { %v1028_v19 = vadd.f32 %v4930_v24, %v5915_v60  ;;  %v1019_v7 = vpop.f32.mrb[1].mxu1  ;;  %v5972_v24 = vld [vmem:[%s6963_s3 + $0x18] ss:$0 sm:$0xff] }
 0x1dc   :  { %v1020_v13 = vadd.f32 %v5915_v60, %v1019_v7  ;;  %v4931_v5 = vpop.f32.mrb[2].mxu1 }
 0x1dd   :  { %v1084_v2 = vmax.f32 %v1028_v19, 0.0  ;;  %v1031_v46 = vadd.f32 %v4931_v5, %v5915_v60  ;;  %v1022_v55 = vpop.f32.mrb[3].mxu1  ;;  %v1546_v19 = vcombine.high %v4482_v44, %v4482_v44 }
 0x1de   :  { %v1082_v32 = vmax.f32 %v1020_v13, 0.0  ;;  %v1023_v15 = vadd.f32 %v5915_v60, %v1022_v55 }
 0x1df   :  { %1101 = vst [vmem:[#allocation3 + $0x31] sm:$0xff] %v1084_v2  ;;  %v5935_v18 = vmax.f32 %v1031_v46, 0.0  ;;  %v1235_v13 = vmul.f32 %v5943_v51, %v1084_v2 }
 0x1e0   :  { %1099 = vst [vmem:[#allocation3 + $0x11] sm:$0xff] %v1082_v32  ;;  %v1083_v48 = vmax.f32 %v1023_v15, 0.0  ;;  %v1234_v63 = vmul.f32 %v5943_v51, %v1082_v32  ;;  %v1162_v32 = vadd.f32 %v1154_v62, %v1134_v12  ;;  %v1182_v15 = vmul.f32 %v5930_v59, %v1170_v20 }
 0x1e1   :  { %1102 = vst [vmem:[#allocation3 + $0x41] sm:$0xff] %v5935_v18 }
 0x1e2   :  { %1100 = vst [vmem:[#allocation3 + $0x21] sm:$0xff] %v1083_v48  ;;  %v1151_v11 = vmul.f32 %v5926_v35, %v1083_v48  ;;  %v1319_v46 = vmul.f32 %v5956_v61, %v1083_v48 }
 0x1e6   :  { %v1195_v8 = vld [vmem:[#allocation3 + $0x30] sm:$0xff] }
 0x1e7   :  { %v1194_v6 = vld [vmem:[#allocation3 + $0x10] sm:$0xff]  ;;  %v1207_v14 = vmul.f32 %v5940_v26, %v1195_v8  ;;  %v5995_v8 = vcombine.high %v5979_v10, %v5979_v10 }
 0x1e8   :  { %v1206_v40 = vmul.f32 %v5940_v26, %v1194_v6  ;;  %v1250_v45 = vld [vmem:[#allocation3 + $0x12] sm:$0xff]  ;;  %v1120_v7 = vld [vmem:[#allocation3 + $0x40] sm:$0xff] }
 0x1e9   :  { %v1119_v17 = vld [vmem:[#allocation3 + $0x20] sm:$0xff]  ;;  %v1262_v3 = vmul.f32 %v5947_v52, %v1250_v45  ;;  %v1251_v36 = vld [vmem:[#allocation3 + $0x32] sm:$0xff]  ;;  %v1132_v2 = vmul.f32 %v5921_v50, %v1120_v7  ;;  %v1292_v12 = vmul.f32 %v5950_v42, %v1120_v7 }
 0x1ea   :  { %v1167_v16 = vld [vmem:[#allocation3 + $0x22] sm:$0xff]  ;;  %v1131_v54 = vmul.f32 %v5921_v50, %v1119_v17  ;;  %v1214_v31 = vadd.f32 %v1206_v40, %v1186_v30  ;;  %v1291_v49 = vmul.f32 %v5950_v42, %v1119_v17  ;;  %v1263_v47 = vmul.f32 %v5947_v52, %v1251_v36 }
 0x1eb   :  { %v1179_v9 = vmul.f32 %v5930_v59, %v1167_v16  ;;  %v1347_v30 = vmul.f32 %v5972_v24, %v1167_v16  ;;  %v5987_v40 = vrot.slane %v1546_v19, %v5961_v41  ;;  %v1168_v16 = vld [vmem:[#allocation3 + $0x42] sm:$0xff] }
 0x1ec   :  { %v1159_v34 = vadd.f32 %v1151_v11, %v1131_v54  ;;  %v1242_v29 = vadd.f32 %v1234_v63, %v1214_v31  ;;  %v1152_v11 = vmul.f32 %v5926_v35, %v5935_v18 }
 0x1ee   :  { %v1187_v4 = vadd.f32 %v1179_v9, %v1159_v34  ;;  %v1270_v33 = vadd.f32 %v1262_v3, %v1242_v29  ;;  %v1320_v29 = vmul.f32 %v5956_v61, %v5935_v18  ;;  %v1160_v36 = vadd.f32 %v1152_v11, %v1132_v2 }
 0x1ef   :  { %v6009_v18 = vadd.f32 %v1182_v15, %v1162_v32 }
 0x1f0   :  { %v1215_v27 = vadd.f32 %v1207_v14, %v1187_v4  ;;  %v1299_v5 = vadd.f32 %v1291_v49, %v1270_v33  ;;  %v6002_v4 = vcombine.high %v5987_v40, %v5987_v40  ;;  %v6005_v14 = vrot.slane %v5979_v10, 1 }
 0x1f1   :  { %v4934_v55 = vpop.f32.mrb[4].mxu1  ;;  %v1348_v49 = vmul.f32 %v5972_v24, %v1168_v16 }
 0x1f2   :  { %v1044_v23 = vadd.f32 %v4934_v55, %v5915_v60  ;;  %v1035_v0 = vpop.f32.mrb[5].mxu1  ;;  %v1243_v39 = vadd.f32 %v1235_v13, %v1215_v27  ;;  %v1327_v37 = vadd.f32 %v1319_v46, %v1299_v5  ;;  %7008 = vst [vmem:[#allocation24_spill] sm:$0xff] %v6002_v4  ;;  %v1180_v27 = vmul.f32 %v5930_v59, %v1168_v16 }
 0x1f3   :  { %v1036_v48 = vadd.f32 %v5915_v60, %v1035_v0  ;;  %v4935_v6 = vpop.f32.mrb[6].mxu1  ;;  %v6014_v46 = vrot.slane %v5995_v8, 1  ;;  %v6017_v55 = vrot.slane %v5987_v40, 1 }
 0x1f4   :  { %v1088_v56 = vmax.f32 %v1044_v23, 0.0  ;;  %v1047_v17 = vadd.f32 %v4935_v6, %v5915_v60  ;;  %v1038_v45 = vpop.f32.mrb[7].mxu1  ;;  %v1271_v1 = vadd.f32 %v1263_v47, %v1243_v39  ;;  %v1355_v54 = vadd.f32 %v1347_v30, %v1327_v37 }
 0x1f5   :  { %v1086_v31 = vmax.f32 %v1036_v48, 0.0  ;;  %v1039_v63 = vadd.f32 %v5915_v60, %v1038_v45  ;;  %7009 = vst [vmem:[#allocation25_spill] sm:$0xff] %v6017_v55  ;;  %v1188_v15 = vadd.f32 %v1180_v27, %v1160_v36  ;;  %v6025_v37 = vrot.slane %v6002_v4, 1 }
 0x1f6   :  { %1105 = vst [vmem:[#allocation3 + $0x71] sm:$0xff] %v1088_v56  ;;  %v1089_v34 = vmax.f32 %v1047_v17, 0.0  ;;  %v1300_v9 = vadd.f32 %v1292_v12, %v1271_v1  ;;  %v1371_v3 = vcombine.high %v1355_v54, %v1355_v54  ;;  %v1378_v20 = vrot.slane %v1355_v54, %v5961_v41 }
 0x1f7   :  { %1103 = vst [vmem:[#allocation3 + $0x51] sm:$0xff] %v1086_v31  ;;  %v1087_v62 = vmax.f32 %v1039_v63, 0.0  ;;  %v1236_v48 = vmul.f32 %v5943_v51, %v1086_v31  ;;  %v1237_v6 = vmul.f32 %v5943_v51, %v1088_v56 }
 0x1f8   :  { %1106 = vst [vmem:[#allocation3 + $0x81] sm:$0xff] %v1089_v34  ;;  %v1328_v33 = vadd.f32 %v1320_v29, %v1300_v9  ;;  %v1385_v44 = vrot.slane %v1371_v3, %v5961_v41  ;;  %v1386_v19 = vcombine.high %v1378_v20, %v1378_v20  ;;  %v1575_v7 = vadd.f32 %v5979_v10, %v1378_v20 }
 0x1f9   :  { %1104 = vst [vmem:[#allocation3 + $0x61] sm:$0xff] %v1087_v62  ;;  %v1153_v30 = vmul.f32 %v5926_v35, %v1087_v62  ;;  %v6031_v12 = vmul.f32 %v5956_v61, %v1089_v34  ;;  %v1321_v54 = vmul.f32 %v5956_v61, %v1087_v62 }
 0x1fa   :  { %v1356_v13 = vadd.f32 %v1348_v49, %v1328_v33  ;;  %v1387_v5 = vcombine.high %v1385_v44, %v1385_v44  ;;  %v1576_v47 = vadd.f32 %v6005_v14, %v1386_v19  ;;  %v6021_v23 = vadd.f32 %v5995_v8, %v1385_v44 }
 0x1fb   :  { %v1607_v32 = vmax.f32 %v1575_v7, 0.0 }
 0x1fc   :  { %v1388_v0 = vcombine.high %v1356_v13, %v1356_v13  ;;  %v1395_v39 = vrot.slane %v1356_v13, %v5961_v41  ;;  %v1578_v63 = vadd.f32 %v6014_v46, %v1387_v5  ;;  %v1608_v3 = vmax.f32 %v1576_v47, 0.0 }
 0x1fd   :  { %v1197_v2 = vld [vmem:[#allocation3 + $0x70] sm:$0xff]  ;;  %v1609_v31 = vmax.f32 %v6021_v23, 0.0  ;;  %v6038_v56 = vpack.c.bf16 %v1607_v32, %v1607_v32 }
 0x1fe   :  { %v1196_v17 = vld [vmem:[#allocation3 + $0x50] sm:$0xff]  ;;  %v1402_v11 = vrot.slane %v1388_v0, %v5961_v41  ;;  %v1403_v16 = vcombine.high %v1395_v39, %v1395_v39  ;;  %v1209_v36 = vmul.f32 %v5940_v26, %v1197_v2  ;;  %v1579_v62 = vadd.f32 %v5987_v40, %v1395_v39 }
 0x1ff   :  { %v1252_v45 = vld [vmem:[#allocation3 + $0x52] sm:$0xff]  ;;  %v1208_v9 = vmul.f32 %v5940_v26, %v1196_v17  ;;  %v1282_v29 = vld [vmem:[#allocation3 + $0x80] sm:$0xff]  ;;  %v1610_v32 = vmax.f32 %v1578_v63, 0.0 }
 0x200   :  { %v1253_v1 = vld [vmem:[#allocation3 + $0x72] sm:$0xff]  ;;  %v1121_v34 = vld [vmem:[#allocation3 + $0x60] sm:$0xff]  ;;  %v1404_v33 = vcombine.high %v1402_v11, %v1402_v11  ;;  %v1580_v49 = vadd.f32 %v6017_v55, %v1403_v16  ;;  %v1264_v7 = vmul.f32 %v5947_v52, %v1252_v45  ;;  %v1294_v47 = vmul.f32 %v5950_v42, %v1282_v29 }
 0x201   :  { %v1169_v20 = vld [vmem:[#allocation3 + $0x62] sm:$0xff]  ;;  %v1133_v44 = vmul.f32 %v5921_v50, %v1121_v34  ;;  %v1216_v19 = vadd.f32 %v1208_v9, %v1188_v15  ;;  %v1265_v27 = vmul.f32 %v5947_v52, %v1253_v1  ;;  %v4938_v13 = vpop.f32.mrb[8].mxu1  ;;  %v1581_v23 = vadd.f32 %v6002_v4, %v1402_v11 }
 0x202   :  { %v1181_v5 = vmul.f32 %v5930_v59, %v1169_v20  ;;  %v6050_v0 = vadd.f32 %v4938_v13, %v5915_v60  ;;  %v1051_v39 = vpop.f32.mrb[9].mxu1  ;;  %v1582_v15 = vadd.f32 %v6025_v37, %v1404_v33  ;;  %v1293_v1 = vmul.f32 %v5950_v42, %v1121_v34 }
 0x203   :  { %v1161_v2 = vadd.f32 %v1153_v30, %v1133_v44  ;;  %v1244_v17 = vadd.f32 %v1236_v48, %v1216_v19  ;;  %v1052_v45 = vadd.f32 %v5915_v60, %v1051_v39  ;;  %v4939_v16 = vpop.f32.mrb[10].mxu1  ;;  %v1611_v9 = vmax.f32 %v1579_v62, 0.0 }
 0x204   :  { %v1612_v57 = vmax.f32 %v1580_v49, 0.0  ;;  %v6980_v29 = vmax.f32 %v6050_v0, 0.0  ;;  %v1063_v11 = vadd.f32 %v4939_v16, %v5915_v60  ;;  %v1054_v63 = vpop.f32.mrb[11].mxu1  ;;  %v1613_v48 = vmax.f32 %v1581_v23, 0.0  ;;  %v1338_v49 = vld [vmem:[#allocation3 + $0x82] sm:$0xff] }
 0x205   :  { %v1189_v28 = vadd.f32 %v1181_v5, %v1161_v2  ;;  %v1272_v13 = vadd.f32 %v1264_v7, %v1244_v17  ;;  %v1090_v38 = vmax.f32 %v1052_v45, 0.0  ;;  %v1055_v30 = vadd.f32 %v5915_v60, %v1054_v63 }
 0x206   :  { %v1640_v44 = vpack.c.bf16 %v1608_v3, %v1608_v3  ;;  %1109 = vst [vmem:[#allocation3 + $0xd1] sm:$0xff] %v6980_v29  ;;  %v6060_v33 = vmax.f32 %v1063_v11, 0.0  ;;  %v1614_v19 = vmax.f32 %v1582_v15, 0.0  ;;  %v1641_v16 = vpack.c.bf16 %v1609_v31, %v1609_v31 }
 0x207   :  { %v1217_v34 = vadd.f32 %v1209_v36, %v1189_v28  ;;  %v1301_v62 = vadd.f32 %v1293_v1, %v1272_v13  ;;  %1107 = vst [vmem:[#allocation3 + $0xb1] sm:$0xff] %v1090_v38  ;;  %v1091_v39 = vmax.f32 %v1055_v30, 0.0  ;;  %v1642_v5 = vpack.c.bf16 %v1610_v32, %v1610_v32 }
 0x208   :  { %v1643_v7 = vpack.c.bf16 %v1611_v9, %v1611_v9  ;;  %1110 = vst [vmem:[#allocation3 + $0xe1] sm:$0xff] %v6060_v33  ;;  %v1349_v3 = vmul.f32 %v5972_v24, %v1169_v20  ;;  %v1644_v17 = vpack.c.bf16 %v1612_v57, %v1612_v57  ;;  %v6065_v45 = vmul.f32 %v5943_v51, %v1090_v38 }
 0x209   :  { %v1245_v2 = vadd.f32 %v1237_v6, %v1217_v34  ;;  %v1329_v23 = vadd.f32 %v1321_v54, %v1301_v62  ;;  %1108 = vst [vmem:[#allocation3 + $0xc1] sm:$0xff] %v1091_v39  ;;  %v1350_v28 = vmul.f32 %v5972_v24, %v1338_v49  ;;  %v6068_v36 = vpack.c.bf16 %v1613_v48, %v1613_v48 }
 0x20a   :  { %v1729_v15 = vunpack.c.l.b16 %v1640_v44  ;;  %v1156_v31 = vmul.f32 %v5926_v35, %v6060_v33  ;;  %v6072_v9 = vpack.c.bf16 %v1614_v19, %v1614_v19  ;;  %v6075_v6 = vmul.f32 %v5926_v35, %v1091_v39 }
 0x20b   :  { %v1273_v32 = vadd.f32 %v1265_v27, %v1245_v2  ;;  %v1357_v1 = vadd.f32 %v1349_v3, %v1329_v23  ;;  %v1730_v57 = vunpack.c.l.b16 %v1641_v16  ;;  %v1731_v54 = vunpack.c.l.b16 %v1642_v5 }
 0x20c   :  { %v1732_v38 = vunpack.c.l.b16 %v1643_v7  ;;  %v1733_v13 = vunpack.c.l.b16 %v1644_v17  ;;  %v6079_v48 = vmul.f32 %v5956_v61, %v1091_v39  ;;  %v1728_v27 = vunpack.c.l.b16 %v6038_v56 }
 0x20d   :  { %v1302_v20 = vadd.f32 %v1294_v47, %v1273_v32  ;;  %v1405_v11 = vcombine.high %v1357_v1, %v1357_v1  ;;  %v1412_v63 = vrot.slane %v1357_v1, %v5961_v41  ;;  %v1199_v30 = vld [vmem:[#allocation3 + $0xd0] sm:$0xff]  ;;  %v1760_v34 = vrot.slane %v1729_v15, 7 }
 0x20e   :  { %v1198_v62 = vld [vmem:[#allocation3 + $0xb0] sm:$0xff]  ;;  %v6091_v23 = vrot.slane %v1730_v57, 6  ;;  %v6093_v56 = vrot.slane %v1731_v54, 5  ;;  %v6095_v3 = vrot.slane %v1732_v38, 4  ;;  %v6098_v17 = vmul.f32 %v5940_v26, %v1199_v30 }
 0x20f   :  { %v1254_v49 = vld [vmem:[#allocation3 + $0xb2] sm:$0xff]  ;;  %v1330_v19 = vadd.f32 %v6031_v12, %v1302_v20  ;;  %v1419_v16 = vrot.slane %v1405_v11, %v5961_v41  ;;  %v1420_v47 = vcombine.high %v1412_v63, %v1412_v63  ;;  %v1210_v7 = vmul.f32 %v5940_v26, %v1198_v62  ;;  %v6087_v2 = vld [vmem:[#allocation3 + $0xe0] sm:$0xff] }
 0x210   :  { %v6089_v39 = vld [vmem:[#allocation3 + $0xe2] sm:$0xff]  ;;  %v6102_v1 = vrot.slane %v1733_v13, 3  ;;  %v6105_v20 = vmul.f32 %v5947_v52, %v1254_v49  ;;  %v1136_v57 = vmul.f32 %v5921_v50, %v6087_v2  ;;  %v1583_v54 = vadd.f32 %v5979_v10, %v1412_v63 }
 0x211   :  { %v6100_v12 = vld [vmem:[#allocation3 + $0xc0] sm:$0xff]  ;;  %v1358_v15 = vadd.f32 %v1350_v28, %v1330_v19  ;;  %v1421_v32 = vcombine.high %v1419_v16, %v1419_v16  ;;  %v6113_v38 = vsel %vm1761_vm1, %v1760_v34, %v1728_v27  ;;  %v1184_v30 = vmul.f32 %v5930_v59, %v6089_v39 }
 0x212   :  { %v6109_v11 = vld [vmem:[#allocation3 + $0xc2] sm:$0xff]  ;;  %v1584_v62 = vadd.f32 %v6005_v14, %v1420_v47  ;;  %v1218_v49 = vadd.f32 %v1210_v7, %v6009_v18  ;;  %v1135_v19 = vmul.f32 %v5921_v50, %v6100_v12  ;;  %v1585_v29 = vadd.f32 %v5995_v8, %v1419_v16 }
 0x213   :  { %v1422_v28 = vcombine.high %v1358_v15, %v1358_v15  ;;  %v1429_v13 = vrot.slane %v1358_v15, %v5961_v41  ;;  %v1586_v63 = vadd.f32 %v6014_v46, %v1421_v32  ;;  %v6126_v27 = vmul.f32 %v5930_v59, %v6109_v11 }
 0x214   :  { %v4942_v34 = vpop.f32.mrb[12].mxu1  ;;  %v1164_v47 = vadd.f32 %v1156_v31, %v1136_v57  ;;  %v1615_v43 = vmax.f32 %v1583_v54, 0.0  ;;  %v1616_v16 = vmax.f32 %v1584_v62, 0.0 }
 0x215   :  { %v1436_v5 = vrot.slane %v1422_v28, %v5961_v41  ;;  %v1437_v44 = vcombine.high %v1429_v13, %v1429_v13  ;;  %v1587_v15 = vadd.f32 %v5987_v40, %v1429_v13  ;;  %v6131_v18 = vadd.f32 %v4942_v34, %v5915_v60  ;;  %v1067_v7 = vpop.f32.mrb[13].mxu1 }
 0x216   :  { %v6134_v32 = vadd.f32 %v5915_v60, %v1067_v7  ;;  %v4943_v53 = vpop.f32.mrb[14].mxu1  ;;  %v1617_v34 = vmax.f32 %v1585_v29, 0.0  ;;  %v1618_v54 = vmax.f32 %v1586_v63, 0.0 }
 0x217   :  { %v1438_v58 = vcombine.high %v1436_v5, %v1436_v5  ;;  %v1588_v25 = vadd.f32 %v6017_v55, %v1437_v44  ;;  %v1589_v28 = vadd.f32 %v6002_v4, %v1436_v5  ;;  %v6993_v13 = vmax.f32 %v6131_v18, 0.0  ;;  %v1070_v57 = vpop.f32.mrb[15].mxu1 }
 0x218   :  { %v6140_v31 = vadd.f32 %v4943_v53, %v5915_v60  ;;  %v1094_v62 = vmax.f32 %v6134_v32, 0.0  ;;  %v1071_v7 = vadd.f32 %v5915_v60, %v1070_v57  ;;  %v1619_v21 = vmax.f32 %v1587_v15, 0.0 }
 0x219   :  { %v1590_v22 = vadd.f32 %v6025_v37, %v1438_v58  ;;  %v1246_v44 = vadd.f32 %v6065_v45, %v1218_v49  ;;  %1113 = vst [vmem:[#allocation3 + $0x111] sm:$0xff] %v6993_v13  ;;  %v1620_v5 = vmax.f32 %v1588_v25, 0.0  ;;  %v1621_v4 = vmax.f32 %v1589_v28, 0.0 }
 0x21a   :  { %v6994_v53 = vmax.f32 %v6140_v31, 0.0  ;;  %1111 = vst [vmem:[#allocation3 + $0xf1] sm:$0xff] %v1094_v62  ;;  %v6149_v29 = vmax.f32 %v1071_v7, 0.0  ;;  %v1647_v32 = vpack.c.bf16 %v1615_v43, %v1615_v43  ;;  %v1648_v55 = vpack.c.bf16 %v1616_v16, %v1616_v16 }
 0x21b   :  { %v1622_v63 = vmax.f32 %v1590_v22, 0.0  ;;  %v1649_v60 = vpack.c.bf16 %v1617_v34, %v1617_v34  ;;  %v1650_v58 = vpack.c.bf16 %v1618_v54, %v1618_v54  ;;  %v1651_v45 = vpack.c.bf16 %v1619_v21, %v1619_v21 }
 0x21c   :  { %1114 = vst [vmem:[#allocation3 + $0x121] sm:$0xff] %v6994_v53  ;;  %v1652_v49 = vpack.c.bf16 %v1620_v5, %v1620_v5  ;;  %v1163_v15 = vadd.f32 %v6075_v6, %v1135_v19  ;;  %v1295_v25 = vmul.f32 %v5950_v42, %v6100_v12  ;;  %1112 = vst [vmem:[#allocation3 + $0x101] sm:$0xff] %v6149_v29  ;;  %v1737_v43 = vunpack.c.l.b16 %v1648_v55 }
 0x21d   :  { %v1653_v28 = vpack.c.bf16 %v1621_v4, %v1621_v4  ;;  %v1654_v57 = vpack.c.bf16 %v1622_v63, %v1622_v63  ;;  %v1192_v22 = vadd.f32 %v1184_v30, %v1164_v47  ;;  %v1738_v16 = vunpack.c.l.b16 %v1649_v60 }
 0x21e   :  { %v1739_v7 = vunpack.c.l.b16 %v1650_v58  ;;  %v1274_v13 = vadd.f32 %v6105_v20, %v1246_v44  ;;  %v1736_v53 = vunpack.c.l.b16 %v1647_v32  ;;  %v1740_v34 = vunpack.c.l.b16 %v1651_v45 }
 0x21f   :  { %v1741_v54 = vunpack.c.l.b16 %v1652_v49  ;;  %v1742_v21 = vunpack.c.l.b16 %v1653_v28  ;;  %v1765_v6 = vsel %vm1764_vm2, %v6091_v23, %v6113_v38  ;;  %v7010_v12 = vunpack.c.l.b16 %v6068_v36 }
 0x220   :  { %v1781_v5 = vrot.slane %v1737_v43, 7  ;;  %v1743_v4 = vunpack.c.l.b16 %v1654_v57  ;;  %v1768_v55 = vsel %vm1767_vm3, %v6093_v56, %v1765_v6  ;;  %v1783_v30 = vrot.slane %v1738_v16, 6 }
 0x221   :  { %v1775_v19 = vrot.slane %v7010_v12, 2  ;;  %v1785_v47 = vrot.slane %v1739_v7, 5  ;;  %v1200_v63 = vld [vmem:[#allocation3 + $0xf0] sm:$0xff]  ;;  %v1771_v20 = vsel %vm1770_vm4, %v6095_v3, %v1768_v55  ;;  %v7011_v44 = vunpack.c.l.b16 %v6072_v9 }
 0x222   :  { %v1782_v60 = vsel %vm1761_vm1, %v1781_v5, %v1736_v53  ;;  %v1787_v23 = vrot.slane %v1740_v34, 4  ;;  %v1212_v36 = vmul.f32 %v5940_v26, %v1200_v63  ;;  %v1256_v38 = vld [vmem:[#allocation3 + $0xf2] sm:$0xff]  ;;  %v1774_v58 = vsel %vm1773_vm5, %v6102_v1, %v1771_v20 }
 0x223   :  { %v1778_v32 = vrot.slane %v7011_v44, 1  ;;  %v1784_v56 = vsel %vm1764_vm2, %v1783_v30, %v1782_v60  ;;  %v1789_v45 = vrot.slane %v1741_v54, 3  ;;  %v1240_v49 = vmul.f32 %v5943_v51, %v1094_v62  ;;  %v1125_v28 = vld [vmem:[#allocation3 + $0x100] sm:$0xff]  ;;  %v1201_v53 = vld [vmem:[#allocation3 + $0x110] sm:$0xff] }
 0x224   :  { %v1173_v57 = vld [vmem:[#allocation3 + $0x102] sm:$0xff]  ;;  %v1777_v3 = vsel %vm1776_vm6, %v1775_v19, %v1774_v58  ;;  %v1786_v9 = vsel %vm1767_vm3, %v1785_v47, %v1784_v56  ;;  %v1791_v43 = vrot.slane %v1742_v21, 2  ;;  %v1220_v16 = vadd.f32 %v1212_v36, %v1192_v22  ;;  %v1255_v55 = vld [vmem:[#allocation3 + $0xd2] sm:$0xff] }
 0x225   :  { %v1137_v7 = vmul.f32 %v5921_v50, %v1125_v28  ;;  %v1157_v34 = vmul.f32 %v5926_v35, %v6149_v29  ;;  %v1793_v1 = vrot.slane %v1743_v4, 1  ;;  %v1268_v6 = vmul.f32 %v5947_v52, %v1256_v38  ;;  %v1286_v56 = vld [vmem:[#allocation3 + $0x120] sm:$0xff] }
 0x226   :  { %v1780_v54 = vsel %vm1779_vm7, %v1778_v32, %v1777_v3  ;;  %v1788_v62 = vsel %vm1770_vm4, %v1787_v23, %v1786_v9  ;;  %v1191_v12 = vadd.f32 %v6126_v27, %v1163_v15  ;;  %v1248_v19 = vadd.f32 %v1240_v49, %v1220_v16  ;;  %v1257_v32 = vld [vmem:[#allocation3 + $0x112] sm:$0xff] }
 0x227   :  { %v1165_v5 = vadd.f32 %v1157_v34, %v1137_v7  ;;  %v1185_v21 = vmul.f32 %v5930_v59, %v1173_v57  ;;  %v1790_v22 = vsel %vm1773_vm5, %v1789_v45, %v1788_v62  ;;  %v1213_v50 = vmul.f32 %v5940_v26, %v1201_v53 }
 0x228   :  { %v1792_v35 = vsel %vm1776_vm6, %v1791_v43, %v1790_v22  ;;  %v1219_v4 = vadd.f32 %v6098_v17, %v1191_v12  ;;  %v7012_v30 = vmax.f32 %v6050_v0, 0.0  ;;  %v1276_v63 = vadd.f32 %v1268_v6, %v1248_v19 }
 0x229   :  { %v1297_v27 = vmul.f32 %v5950_v42, %v1125_v28  ;;  %v1794_v15 = vsel %vm1779_vm7, %v1793_v1, %v1792_v35  ;;  %v1193_v20 = vadd.f32 %v1185_v21, %v1165_v5  ;;  %v1267_v60 = vmul.f32 %v5947_v52, %v1255_v55 }
 0x22a   :  { %v1239_v47 = vmul.f32 %v5943_v51, %v7012_v30  ;;  %v1823_v59 = vpack.c.b16 %v1794_v15, %v1780_v54  ;;  %v1303_v26 = vadd.f32 %v1295_v25, %v1274_v13  ;;  %v1325_v23 = vmul.f32 %v5956_v61, %v6149_v29 }
 0x22b   :  { %v1221_v17 = vadd.f32 %v1213_v50, %v1193_v20  ;;  %v7013_v0 = vmax.f32 %v6131_v18, 0.0  ;;  %v1305_v38 = vadd.f32 %v1297_v27, %v1276_v63  ;;  %v1296_v45 = vmul.f32 %v5950_v42, %v6087_v2  ;;  %v1342_v2 = vld [vmem:[#allocation3 + $0x122] sm:$0xff] }
 0x22c   :  { %v1247_v44 = vadd.f32 %v1239_v47, %v1219_v4  ;;  %4960 = vmatprep.mubr.bf16.mxu0 %v1823_v59  ;;  %v1331_v49 = vadd.f32 %v6079_v48, %v1303_v26  ;;  %v1351_v13 = vmul.f32 %v5972_v24, %v6109_v11  ;;  %v1269_v29 = vmul.f32 %v5947_v52, %v1257_v32  ;;  %v7015_v32 = vld [vmem:[#allocation25_spill] sm:$0xff]  ;;  %v7016_v26 = vld [vmem:[#allocation24_spill] sm:$0xff] }
 0x22d   :  { %v1241_v36 = vmul.f32 %v5943_v51, %v7013_v0  ;;  %v1333_v28 = vadd.f32 %v1325_v23, %v1305_v38  ;;  %v1353_v18 = vmul.f32 %v5972_v24, %v1173_v57  ;;  %v1324_v51 = vmul.f32 %v5956_v61, %v6060_v33 }
 0x22e   :  { %v1275_v58 = vadd.f32 %v1267_v60, %v1247_v44  ;;  %v1359_v9 = vadd.f32 %v1351_v13, %v1331_v49  ;;  %v1298_v53 = vmul.f32 %v5950_v42, %v1286_v56  ;;  %v1352_v11 = vmul.f32 %v5972_v24, %v6089_v39 }
 0x22f   :  { %v1249_v25 = vadd.f32 %v1241_v36, %v1221_v17  ;;  %v1361_v16 = vadd.f32 %v1353_v18, %v1333_v28  ;;  %v7014_v57 = vmax.f32 %v6140_v31, 0.0  ;;  %v1354_v54 = vmul.f32 %v5972_v24, %v1342_v2 }
 0x230   :  { %v1304_v3 = vadd.f32 %v1296_v45, %v1275_v58  ;;  %v1439_v7 = vcombine.high %v1359_v9, %v1359_v9  ;;  %v1446_v52 = vrot.slane %v1359_v9, %v5961_v41 }
 0x231   :  { %v1277_v43 = vadd.f32 %v1269_v29, %v1249_v25  ;;  %v1326_v1 = vmul.f32 %v5956_v61, %v7014_v57  ;;  %v1473_v6 = vcombine.high %v1361_v16, %v1361_v16  ;;  %v1480_v33 = vrot.slane %v1361_v16, %v5961_v41 }
 0x232   :  { %v1332_v48 = vadd.f32 %v1324_v51, %v1304_v3  ;;  %v1453_v62 = vrot.slane %v1439_v7, %v5961_v41  ;;  %v1454_v12 = vcombine.high %v1446_v52, %v1446_v52  ;;  %v1591_v21 = vadd.f32 %v5979_v10, %v1446_v52 }
 0x233   :  { %v1306_v34 = vadd.f32 %v1298_v53, %v1277_v43  ;;  %v1487_v39 = vrot.slane %v1473_v6, %v5961_v41  ;;  %v1488_v5 = vcombine.high %v1480_v33, %v1480_v33  ;;  %v1599_v61 = vadd.f32 %v5979_v10, %v1480_v33 }
 0x234   :  { %v1360_v42 = vadd.f32 %v1352_v11, %v1332_v48  ;;  %v1455_v22 = vcombine.high %v1453_v62, %v1453_v62  ;;  %v1592_v24 = vadd.f32 %v6005_v14, %v1454_v12  ;;  %v1593_v4 = vadd.f32 %v5995_v8, %v1453_v62 }
 0x235   :  { %v1334_v19 = vadd.f32 %v1326_v1, %v1306_v34  ;;  %v1489_v35 = vcombine.high %v1487_v39, %v1487_v39  ;;  %v1600_v27 = vadd.f32 %v6005_v14, %v1488_v5  ;;  %v1601_v10 = vadd.f32 %v5995_v8, %v1487_v39 }
 0x236   :  { %v1456_v55 = vcombine.high %v1360_v42, %v1360_v42  ;;  %v1463_v31 = vrot.slane %v1360_v42, %v5961_v41  ;;  %v1594_v63 = vadd.f32 %v6014_v46, %v1455_v22  ;;  %v1623_v14 = vmax.f32 %v1591_v21, 0.0 }
 0x237   :  { %v1362_v50 = vadd.f32 %v1354_v54, %v1334_v19  ;;  %v1602_v17 = vadd.f32 %v6014_v46, %v1489_v35  ;;  %v1624_v56 = vmax.f32 %v1592_v24, 0.0  ;;  %v1625_v45 = vmax.f32 %v1593_v4, 0.0 }
 0x238   :  { %v1470_v30 = vrot.slane %v1456_v55, %v5961_v41  ;;  %v1471_v47 = vcombine.high %v1463_v31, %v1463_v31  ;;  %v1595_v59 = vadd.f32 %v5987_v40, %v1463_v31  ;;  %v1626_v49 = vmax.f32 %v1594_v63, 0.0 }
 0x239   :  { %v1490_v15 = vcombine.high %v1362_v50, %v1362_v50  ;;  %v1497_v20 = vrot.slane %v1362_v50, %v5961_v41  ;;  %v1632_v3 = vmax.f32 %v1600_v27, 0.0  ;;  %v1633_v9 = vmax.f32 %v1601_v10, 0.0 }
 0x23a   :  { %v1472_v44 = vcombine.high %v1470_v30, %v1470_v30  ;;  %v1596_v60 = vadd.f32 %v7015_v32, %v1471_v47  ;;  %v1597_v23 = vadd.f32 %v7016_v26, %v1470_v30  ;;  %v1627_v29 = vmax.f32 %v1595_v59, 0.0 }
 0x23b   :  { %v1504_v0 = vrot.slane %v1490_v15, %v5961_v41  ;;  %v1505_v36 = vcombine.high %v1497_v20, %v1497_v20  ;;  %v1603_v38 = vadd.f32 %v5987_v40, %v1497_v20  ;;  %v1634_v40 = vmax.f32 %v1602_v17, 0.0 }
 0x23c   :  { %v1598_v58 = vadd.f32 %v6025_v37, %v1472_v44  ;;  %v1628_v28 = vmax.f32 %v1596_v60, 0.0  ;;  %v1629_v18 = vmax.f32 %v1597_v23, 0.0  ;;  %v1631_v53 = vmax.f32 %v1599_v61, 0.0 }
 0x23d   :  { %v1506_v13 = vcombine.high %v1504_v0, %v1504_v0  ;;  %v1604_v8 = vadd.f32 %v7015_v32, %v1505_v36  ;;  %v1605_v25 = vadd.f32 %v7016_v26, %v1504_v0  ;;  %v1635_v43 = vmax.f32 %v1603_v38, 0.0 }
 0x23e   :  { %v1630_v46 = vmax.f32 %v1598_v58, 0.0  ;;  %v1656_v48 = vpack.c.bf16 %v1624_v56, %v1624_v56  ;;  %v1657_v7 = vpack.c.bf16 %v1625_v45, %v1625_v45  ;;  %v1658_v52 = vpack.c.bf16 %v1626_v49, %v1626_v49 }
 0x23f   :  { %v1606_v51 = vadd.f32 %v6025_v37, %v1506_v13  ;;  %v1636_v2 = vmax.f32 %v1604_v8, 0.0  ;;  %v1637_v16 = vmax.f32 %v1605_v25, 0.0  ;;  %v1659_v34 = vpack.c.bf16 %v1627_v29, %v1627_v29 }
 0x240   :  { %v1655_v57 = vpack.c.bf16 %v1623_v14, %v1623_v14  ;;  %v1660_v1 = vpack.c.bf16 %v1628_v28, %v1628_v28  ;;  %v1661_v6 = vpack.c.bf16 %v1629_v18, %v1629_v18  ;;  %v1662_v33 = vpack.c.bf16 %v1630_v46, %v1630_v46 }
 0x241   :  { %v1638_v11 = vmax.f32 %v1606_v51, 0.0  ;;  %v1664_v54 = vpack.c.bf16 %v1632_v3, %v1632_v3  ;;  %v1665_v42 = vpack.c.bf16 %v1633_v9, %v1633_v9  ;;  %v1666_v62 = vpack.c.bf16 %v1634_v40, %v1634_v40 }
 0x242   :  { %v1667_v12 = vpack.c.bf16 %v1635_v43, %v1635_v43  ;;  %v1663_v37 = vpack.c.bf16 %v1631_v53, %v1631_v53  ;;  %v1668_v19 = vpack.c.bf16 %v1636_v2, %v1636_v2  ;;  %v1669_v39 = vpack.c.bf16 %v1637_v16, %v1637_v16  ;;  %v5175_v16 = vld [vmem:[%s6965_s5 + $0x80] sm:$0xff]  }
 0x243   :  { %v1670_v5 = vpack.c.bf16 %v1638_v11, %v1638_v11  ;;  %v1745_v21 = vunpack.c.l.b16 %v1656_v48  ;;  %v1746_v22 = vunpack.c.l.b16 %v1657_v7  ;;  %v1747_v55 = vunpack.c.l.b16 %v1658_v52  ;;  %v5176_v48 = vld [vmem:[%s6965_s5 + $0x88] sm:$0xff]   ;;  %4964 = vmatprep.subr.bf16.mxu1 %v5175_v16  ;;  %v5177_v11 = vld [vmem:[%s6965_s5 + $0x90] sm:$0xff]   ;;  %v5178_v7 = vld [vmem:[%s6965_s5 + $0x98] sm:$0xff]  }
 0x244   :  { %v1748_v31 = vunpack.c.l.b16 %v1659_v34  ;;  %v1744_v61 = vunpack.c.l.b16 %v1655_v57  ;;  %v1749_v50 = vunpack.c.l.b16 %v1660_v1  ;;  %v1750_v35 = vunpack.c.l.b16 %v1661_v6  ;;  %4965 = vmatpush3.bf16.msra.mxu1 %v5175_v16  ;;  %v5179_v52 = vld [vmem:[%s6965_s5 + $0xa0] sm:$0xff]   ;;  %v5180_v34 = vld [vmem:[%s6965_s5 + $0xa8] sm:$0xff]   ;;  %v5181_v57 = vld [vmem:[%s6965_s5 + $0xb0] sm:$0xff]  }
 0x245   :  { %v1751_v24 = vunpack.c.l.b16 %v1662_v33  ;;  %v1753_v4 = vunpack.c.l.b16 %v1664_v54  ;;  %v1754_v30 = vunpack.c.l.b16 %v1665_v42  ;;  %v1755_v47 = vunpack.c.l.b16 %v1666_v62  ;;  %4966 = vmatprep.subr.bf16.mxu1 %v5176_v48  ;;  %v5182_v1 = vld [vmem:[%s6965_s5 + $0xb8] sm:$0xff]   ;;  %v6278_v6 = vld [vmem:[#allocation3 + $0x90] sm:$0xff]  ;;  %v4509_v33 = vld [vmem:[%s6963_s3 + $0x20] sm:$0xff] }
 0x246   :  { %v1756_v63 = vunpack.c.l.b16 %v1667_v12  ;;  %v1752_v27 = vunpack.c.l.b16 %v1663_v37  ;;  %v1757_v15 = vunpack.c.l.b16 %v1668_v19  ;;  %v1758_v20 = vunpack.c.l.b16 %v1669_v39  ;;  %v4500_v54 = vld [vmem:[%s6966_s6 + $0x1] ss:$0 sm:$0xff]  ;;  %v7017_v42 = vld [vmem:[#allocation16_spill] sm:$0xff]  ;;  %v7018_v37 = vld [vmem:[#allocation17_spill] sm:$0xff] }
 0x247   :  { %v1795_v59 = vrot.slane %v1745_v21, 7  ;;  %v1759_v10 = vunpack.c.l.b16 %v1670_v5  ;;  %v1797_v44 = vrot.slane %v1746_v22, 6  ;;  %v1799_v32 = vrot.slane %v1747_v55, 5  ;;  %v1952_v12 = vld [vmem:[#allocation4] sm:$0xf] }
 0x248   :  { %v1801_v60 = vrot.slane %v1748_v31, 4  ;;  %v1803_v23 = vrot.slane %v1749_v50, 3  ;;  %v1805_v17 = vrot.slane %v1750_v35, 2  ;;  %v1809_v0 = vrot.slane %v1753_v4, 7  ;;  %4967 = vmatpush3.bf16.msra.mxu1 %v5176_v48  ;;  %v1972_v5 = vld [vmem:[#allocation4 + $0x1] sm:$0xf] }
 0x249   :  { %v1796_v26 = vsel %vm1761_vm1, %v1795_v59, %v1744_v61  ;;  %v1811_v38 = vrot.slane %v1754_v30, 6  ;;  %v1813_v14 = vrot.slane %v1755_v47, 5  ;;  %v1815_v58 = vrot.slane %v1756_v63, 4  ;;  %4968 = vmatprep.subr.bf16.mxu1 %v5177_v11  ;;  %v1956_v55 = vld [vmem:[#allocation4 + $0x30] sm:$0xf]  ;;  %v7019_v63 = vld [vmem:[#allocation18_spill] sm:$0xff] }
 0x24a   :  { %v1798_v36 = vsel %vm1764_vm2, %v1797_v44, %v1796_v26  ;;  %v1807_v45 = vrot.slane %v1751_v24, 1  ;;  %v1810_v49 = vsel %vm1761_vm1, %v1809_v0, %v1752_v27  ;;  %v1817_v13 = vrot.slane %v1757_v15, 3  ;;  %v1976_v31 = vld [vmem:[#allocation4 + $0x31] sm:$0xf]  ;;  %v2000_v59 = vld [vmem:[#allocation4 + $0x2] sm:$0xf] }
 0x24b   :  { %v1800_v56 = vsel %vm1767_vm3, %v1799_v32, %v1798_v36  ;;  %v1812_v25 = vsel %vm1764_vm2, %v1811_v38, %v1810_v49  ;;  %v1819_v29 = vrot.slane %v1758_v20, 2  ;;  %v1821_v46 = vrot.slane %v1759_v10, 1  ;;  %v2004_v26 = vld [vmem:[#allocation4 + $0x32] sm:$0xf]  ;;  %v2144_v49 = vld [vmem:[#allocation4 + $0x29] sm:$0xf] }
 0x24c   :  { %v1802_v8 = vsel %vm1770_vm4, %v1801_v60, %v1800_v56  ;;  %v1814_v18 = vsel %vm1767_vm3, %v1813_v14, %v1812_v25  ;;  %4969 = vmatpush3.bf16.msra.mxu1 %v5177_v11  ;;  %v6288_v62 = vrot.slane %v4509_v33, %v7017_v42  ;;  %v6291_v19 = vrot.slane %v4509_v33, %v7018_v37  ;;  %v6325_v16 = vld [vmem:[%s6964_s4 + $0x2] ss:$0 sm:$0xff] }
 0x24d   :  { %v1804_v28 = vsel %vm1773_vm5, %v1803_v23, %v1802_v8  ;;  %v1816_v51 = vsel %vm1770_vm4, %v1815_v58, %v1814_v18  ;;  %4970 = vmatprep.subr.bf16.mxu1 %v5178_v7  ;;  %v6296_v27 = vrot.slane %v4509_v33, %v7019_v63  ;;  %v7020_v8 = vld [vmem:[#allocation23_spill] sm:$0xff]  ;;  %v2120_v18 = vld [vmem:[#allocation4 + $0x58] sm:$0xf] }
 0x24e   :  { %v1806_v3 = vsel %vm1776_vm6, %v1805_v17, %v1804_v28  ;;  %v1818_v40 = vsel %vm1773_vm5, %v1817_v13, %v1816_v51  ;;  %v1964_v35 = vmul.f32 %v6288_v62, %v1952_v12  ;;  %v1984_v47 = vmul.f32 %v6291_v19, %v1972_v5  ;;  %v2172_v13 = vld [vmem:[#allocation4 + $0x2a] sm:$0xf]  ;;  %v7022_v51 = vld [vmem:[#allocation21_spill] sm:$0xff] }
 0x24f   :  { %v1808_v9 = vsel %vm1779_vm7, %v1807_v45, %v1806_v3  ;;  %v1820_v43 = vsel %vm1776_vm6, %v1819_v29, %v1818_v40  ;;  %v1968_v10 = vmul.f32 %v6288_v62, %v1956_v55  ;;  %v1988_v44 = vmul.f32 %v6291_v19, %v1976_v31  ;;  %v2116_v45 = vld [vmem:[#allocation4 + $0x28] sm:$0xf] }
 0x250   :  { %v1822_v53 = vsel %vm1779_vm7, %v1821_v46, %v1820_v43  ;;  %4971 = vmatpush3.bf16.msra.mxu1 %v5178_v7  ;;  %v1992_v36 = vadd.f32 %v1984_v47, %v1964_v35  ;;  %v2012_v38 = vmul.f32 %v6296_v27, %v2000_v59  ;;  %v2016_v56 = vmul.f32 %v6296_v27, %v2004_v26  ;;  %v7021_v29 = vld [vmem:[#allocation20_spill] sm:$0xff]  ;;  %v6311_v46 = vld [vmem:[%s6963_s3 + $0x28] ss:$0 sm:$0xff] }
 0x251   :  { %v1824_v2 = vpack.c.b16 %v1822_v53, %v1808_v9  ;;  %4972 = vmatprep.subr.bf16.mxu1 %v5179_v52  ;;  %v1996_v58 = vadd.f32 %v1988_v44, %v1968_v10  ;;  %v6303_v25 = vrot.slane %v4509_v33, %v7020_v8  ;;  %v6306_v28 = vrot.slane %v4509_v33, %v7021_v29  ;;  %v7023_v40 = vld [vmem:[#allocation19_spill] sm:$0xff]  ;;  %v7024_v53 = vld [vmem:[#allocation22_spill] sm:$0xff] }
 0x252   :  { %v2020_v3 = vadd.f32 %v2012_v38, %v1992_v36  ;;  %v6314_v9 = vrot.slane %v4509_v33, %v7022_v51  ;;  %v6317_v43 = vrot.slane %v4509_v33, %v7023_v40 }
 0x253   :  { %4961 = vmatmul.mubr.bf16.vlgmr.msra.gmra.mrb[16].mxu0 %v1824_v2  ;;  %v6320_v2 = vrot.slane %v4509_v33, %v7024_v53  ;;  %v6328_v7 = vmul.f32 %v6303_v25, %v2116_v45 }
 0x254   :  { %4973 = vmatpush3.bf16.msra.mxu1 %v5179_v52  ;;  %v6331_v52 = vmul.f32 %v6306_v28, %v2144_v49  ;;  %5000 = vmatprep.mubr.msk.bf16.mxu0 %vm5277_vm8, %v6278_v6 }
 0x255   :  { %4974 = vmatprep.subr.bf16.mxu1 %v5180_v34 }
 0x258   :  { %4975 = vmatpush3.bf16.msra.mxu1 %v5180_v34  ;;  %v6334_v34 = vmul.f32 %v6311_v46, %v2172_v13 }
 0x259   :  { %4976 = vmatprep.subr.bf16.mxu1 %v5181_v57 }
 0x25c   :  { %4977 = vmatpush3.bf16.msra.mxu1 %v5181_v57 }
 0x25d   :  { %4978 = vmatprep.subr.bf16.mxu1 %v5182_v1 }
 0x260   :  { %4979 = vmatpush3.bf16.msra.mxu1 %v5182_v1  ;;  %v6336_v1 = vadd.f32 %v2016_v56, %v1996_v58 }
 0x261   :  { %5004 = vmatprep.subr.bf16.mxu1 %v6278_v6 }
 0x326   :  { %v4962_v39 = vpop.f32.mrb[16].mxu0 }
 0x327   :  { %v1918_v21 = vadd.f32 %v4962_v39, %v4500_v54  ;;  %v1909_v22 = vpop.f32.mrb[17].mxu0  ;;  %v6340_v39 = vcombine.high %v6325_v16, %v6325_v16 }
 0x328   :  { %v1910_v61 = vadd.f32 %v4500_v54, %v1909_v22  ;;  %v4963_v50 = vpop.f32.mrb[18].mxu0  ;;  %v6345_v22 = vmul.f32 %v6303_v25, %v2120_v18 }
 0x329   :  { %v1926_v24 = vmax.f32 %v1918_v21, 0.0  ;;  %v1921_v4 = vadd.f32 %v4963_v50, %v4500_v54  ;;  %v1912_v30 = vpop.f32.mrb[19].mxu0 }
 0x32a   :  { %v1924_v15 = vmax.f32 %v1910_v61, 0.0  ;;  %v1913_v20 = vadd.f32 %v4500_v54, %v1912_v30 }
 0x32b   :  { %v1934_v32 = vcombine.high %v1926_v24, %v1926_v24  ;;  %1945 = vst [vmem:[#allocation4 + $0x39] sm:$0xf] %v1926_v24  ;;  %v1927_v60 = vmax.f32 %v1921_v4, 0.0 }
 0x32c   :  { %v1932_v23 = vcombine.high %v1924_v15, %v1924_v15  ;;  %1941 = vst [vmem:[#allocation4 + $0x9] sm:$0xf] %v1924_v15  ;;  %v1925_v17 = vmax.f32 %v1913_v20, 0.0 }
 0x32d   :  { %1946 = vst [vmem:[#allocation4 + $0x41] sm:$0xf] %v1934_v32  ;;  %v1935_v0 = vcombine.high %v1927_v60, %v1927_v60  ;;  %1947 = vst [vmem:[#allocation4 + $0x49] sm:$0xf] %v1927_v60 }
 0x32e   :  { %1942 = vst [vmem:[#allocation4 + $0x11] sm:$0xf] %v1932_v23  ;;  %v1933_v14 = vcombine.high %v1925_v17, %v1925_v17  ;;  %1943 = vst [vmem:[#allocation4 + $0x19] sm:$0xf] %v1925_v17 }
 0x32f   :  { %1948 = vst [vmem:[#allocation4 + $0x51] sm:$0xf] %v1935_v0 }
 0x330   :  { %1944 = vst [vmem:[#allocation4 + $0x21] sm:$0xf] %v1933_v14 }
 0x332   :  { %v1957_v48 = vld [vmem:[#allocation4 + $0x38] sm:$0xf] }
 0x333   :  { %v1977_v11 = vld [vmem:[#allocation4 + $0x39] sm:$0xf]  ;;  %v1953_v33 = vld [vmem:[#allocation4 + $0x8] sm:$0xf]  ;;  %v1969_v5 = vmul.f32 %v6288_v62, %v1957_v48 }
 0x334   :  { %v2005_v57 = vld [vmem:[#allocation4 + $0x3a] sm:$0xf]  ;;  %v1973_v54 = vld [vmem:[#allocation4 + $0x9] sm:$0xf]  ;;  %v1989_v21 = vmul.f32 %v6291_v19, %v1977_v11  ;;  %v1965_v61 = vmul.f32 %v6288_v62, %v1953_v33 }
 0x335   :  { %v2001_v12 = vld [vmem:[#allocation4 + $0xa] sm:$0xf]  ;;  %v1985_v50 = vmul.f32 %v6291_v19, %v1973_v54  ;;  %v6351_v4 = vmul.f32 %v6296_v27, %v2005_v57  ;;  %v1954_v30 = vld [vmem:[#allocation4 + $0x10] sm:$0xf]  ;;  %v1955_v47 = vld [vmem:[#allocation4 + $0x18] sm:$0xf] }
 0x336   :  { %v1959_v55 = vld [vmem:[#allocation4 + $0x48] sm:$0xf]  ;;  %v2013_v35 = vmul.f32 %v6296_v27, %v2001_v12  ;;  %v1974_v15 = vld [vmem:[#allocation4 + $0x11] sm:$0xf]  ;;  %v6360_v44 = vadd.f32 %v1989_v21, %v1969_v5  ;;  %v1966_v32 = vmul.f32 %v6288_v62, %v1954_v30  ;;  %v1967_v60 = vmul.f32 %v6288_v62, %v1955_v47  ;;  %v1975_v26 = vld [vmem:[#allocation4 + $0x19] sm:$0xf] }
 0x337   :  { %v1979_v31 = vld [vmem:[#allocation4 + $0x49] sm:$0xf]  ;;  %v6355_v59 = vmul.f32 %v6288_v62, %v1959_v55  ;;  %v1986_v23 = vmul.f32 %v6291_v19, %v1974_v15  ;;  %v1993_v17 = vadd.f32 %v1985_v50, %v1965_v61  ;;  %v2002_v0 = vld [vmem:[#allocation4 + $0x12] sm:$0xf]  ;;  %v2003_v36 = vld [vmem:[#allocation4 + $0x1a] sm:$0xf]  ;;  %v1987_v38 = vmul.f32 %v6291_v19, %v1975_v26 }
 0x338   :  { %v2028_v24 = vld [vmem:[#allocation4 + $0x8] sm:$0xf]  ;;  %v6358_v10 = vmul.f32 %v6291_v19, %v1979_v31  ;;  %v2014_v14 = vmul.f32 %v6296_v27, %v2002_v0  ;;  %v2015_v58 = vmul.f32 %v6296_v27, %v2003_v36  ;;  %v2029_v56 = vld [vmem:[#allocation4 + $0x10] sm:$0xf]  ;;  %v2030_v45 = vld [vmem:[#allocation4 + $0x18] sm:$0xf] }
 0x339   :  { %v2040_v20 = vmul.f32 %v6314_v9, %v2028_v24  ;;  %v2031_v49 = vld [vmem:[#allocation4 + $0x20] sm:$0xf]  ;;  %v1994_v18 = vadd.f32 %v1986_v23, %v1966_v32  ;;  %v2021_v48 = vadd.f32 %v2013_v35, %v1993_v17  ;;  %v2041_v11 = vmul.f32 %v6314_v9, %v2029_v56  ;;  %v2056_v33 = vld [vmem:[#allocation4 + $0x9] sm:$0xf]  ;;  %v2057_v54 = vld [vmem:[#allocation4 + $0x11] sm:$0xf] }
 0x33a   :  { %v2042_v57 = vmul.f32 %v6314_v9, %v2030_v45  ;;  %v2058_v12 = vld [vmem:[#allocation4 + $0x19] sm:$0xf]  ;;  %v1995_v5 = vadd.f32 %v1987_v38, %v1967_v60  ;;  %v2043_v21 = vmul.f32 %v6314_v9, %v2031_v49  ;;  %v2059_v55 = vld [vmem:[#allocation4 + $0x21] sm:$0xf]  ;;  %v2068_v31 = vmul.f32 %v6317_v43, %v2056_v33  ;;  %v2084_v50 = vld [vmem:[#allocation4 + $0xa] sm:$0xf] }
 0x33b   :  { %v2048_v13 = vadd.f32 %v2040_v20, %v2020_v3  ;;  %v2069_v61 = vmul.f32 %v6317_v43, %v2057_v54  ;;  %v2085_v24 = vld [vmem:[#allocation4 + $0x12] sm:$0xf]  ;;  %v2022_v3 = vadd.f32 %v2014_v14, %v1994_v18  ;;  %v2049_v30 = vadd.f32 %v2041_v11, %v2021_v48  ;;  %v2086_v15 = vld [vmem:[#allocation4 + $0x1a] sm:$0xf]  ;;  %v2087_v20 = vld [vmem:[#allocation4 + $0x22] sm:$0xf] }
 0x33c   :  { %v2070_v35 = vmul.f32 %v6317_v43, %v2058_v12  ;;  %v2071_v47 = vmul.f32 %v6317_v43, %v2059_v55  ;;  %v2113_v32 = vld [vmem:[#allocation4 + $0x10] sm:$0xf]  ;;  %v2023_v26 = vadd.f32 %v2015_v58, %v1995_v5  ;;  %v2096_v23 = vmul.f32 %v6320_v2, %v2084_v50  ;;  %v2114_v0 = vld [vmem:[#allocation4 + $0x18] sm:$0xf]  ;;  %v2115_v36 = vld [vmem:[#allocation4 + $0x20] sm:$0xf] }
 0x33d   :  { %v2076_v60 = vadd.f32 %v2068_v31, %v2048_v13  ;;  %v2097_v17 = vmul.f32 %v6320_v2, %v2085_v24  ;;  %v2141_v38 = vld [vmem:[#allocation4 + $0x11] sm:$0xf]  ;;  %v2050_v56 = vadd.f32 %v2042_v57, %v2022_v3  ;;  %v2077_v45 = vadd.f32 %v2069_v61, %v2049_v30  ;;  %v2142_v18 = vld [vmem:[#allocation4 + $0x19] sm:$0xf]  ;;  %v2143_v48 = vld [vmem:[#allocation4 + $0x21] sm:$0xf] }
 0x33e   :  { %v2098_v14 = vmul.f32 %v6320_v2, %v2086_v15  ;;  %v2099_v49 = vmul.f32 %v6320_v2, %v2087_v20  ;;  %v2051_v11 = vadd.f32 %v2043_v21, %v2023_v26  ;;  %v2125_v58 = vmul.f32 %v6303_v25, %v2113_v32  ;;  %v2169_v54 = vld [vmem:[#allocation4 + $0x12] sm:$0xf]  ;;  %v2170_v12 = vld [vmem:[#allocation4 + $0x1a] sm:$0xf]  ;;  %v2171_v61 = vld [vmem:[#allocation4 + $0x22] sm:$0xf] }
 0x33f   :  { %v2104_v33 = vadd.f32 %v2096_v23, %v2076_v60  ;;  %v2126_v13 = vmul.f32 %v6303_v25, %v2114_v0  ;;  %v2078_v5 = vadd.f32 %v2070_v35, %v2050_v56  ;;  %v2105_v55 = vadd.f32 %v2097_v17, %v2077_v45  ;;  %v1958_v50 = vld [vmem:[#allocation4 + $0x40] sm:$0xf]  ;;  %v2007_v23 = vld [vmem:[#allocation4 + $0x4a] sm:$0xf] }
 0x340   :  { %v2127_v31 = vmul.f32 %v6303_v25, %v2115_v36  ;;  %v2153_v57 = vmul.f32 %v6306_v28, %v2141_v38  ;;  %v2079_v24 = vadd.f32 %v2071_v47, %v2051_v11  ;;  %v2154_v30 = vmul.f32 %v6306_v28, %v2142_v18  ;;  %v1978_v15 = vld [vmem:[#allocation4 + $0x41] sm:$0xf]  ;;  %v2032_v18 = vld [vmem:[#allocation4 + $0x38] sm:$0xf] }
 0x341   :  { %v2133_v3 = vadd.f32 %v2125_v58, %v2104_v33  ;;  %v2155_v21 = vmul.f32 %v6306_v28, %v2143_v48  ;;  %v2106_v20 = vadd.f32 %v2098_v14, %v2078_v5  ;;  %v2134_v32 = vadd.f32 %v2126_v13, %v2105_v55  ;;  %v2006_v60 = vld [vmem:[#allocation4 + $0x42] sm:$0xf]  ;;  %v2034_v5 = vld [vmem:[#allocation4 + $0x48] sm:$0xf] }
 0x342   :  { %v2181_v26 = vmul.f32 %v6311_v46, %v2169_v54  ;;  %v2182_v35 = vmul.f32 %v6311_v46, %v2170_v12  ;;  %v2107_v17 = vadd.f32 %v2099_v49, %v2079_v24  ;;  %v2183_v36 = vmul.f32 %v6311_v46, %v2171_v61  ;;  %v2033_v58 = vld [vmem:[#allocation4 + $0x40] sm:$0xf] }
 0x343   :  { %v2161_v0 = vadd.f32 %v2153_v57, %v2133_v3  ;;  %v1970_v47 = vmul.f32 %v6288_v62, %v1958_v50  ;;  %v2135_v38 = vadd.f32 %v2127_v31, %v2106_v20  ;;  %v2162_v56 = vadd.f32 %v2154_v30, %v2134_v32  ;;  %v2060_v50 = vld [vmem:[#allocation4 + $0x39] sm:$0xf]  ;;  %v2062_v30 = vld [vmem:[#allocation4 + $0x49] sm:$0xf] }
 0x344   :  { %v1990_v45 = vmul.f32 %v6291_v19, %v1978_v15  ;;  %v1999_v14 = vadd.f32 %v6358_v10, %v6355_v59  ;;  %v2136_v48 = vadd.f32 %v6328_v7, %v2107_v17  ;;  %v2018_v33 = vmul.f32 %v6296_v27, %v2006_v60  ;;  %v2035_v19 = vld [vmem:[#allocation4 + $0x50] sm:$0xf] }
 0x345   :  { %v2189_v11 = vadd.f32 %v2181_v26, %v2161_v0  ;;  %v2019_v49 = vmul.f32 %v6296_v27, %v2007_v23  ;;  %v2163_v13 = vadd.f32 %v2155_v21, %v2135_v38  ;;  %v2190_v54 = vadd.f32 %v2182_v35, %v2162_v56  ;;  %v2063_v26 = vld [vmem:[#allocation4 + $0x51] sm:$0xf]  ;;  %v2088_v35 = vld [vmem:[#allocation4 + $0x3a] sm:$0xf]  ;;  %v2089_v0 = vld [vmem:[#allocation4 + $0x42] sm:$0xf] }
 0x346   :  { %v1998_v12 = vadd.f32 %v1990_v45, %v1970_v47  ;;  %v2025_v62 = vadd.f32 %v6351_v4, %v6360_v44  ;;  %v2164_v55 = vadd.f32 %v6331_v52, %v2136_v48  ;;  %v2044_v7 = vmul.f32 %v6314_v9, %v2032_v18  ;;  %v2061_v52 = vld [vmem:[#allocation4 + $0x41] sm:$0xf]  ;;  %v2091_v45 = vld [vmem:[#allocation4 + $0x52] sm:$0xf] }
 0x347   :  { %v2207_v59 = vadd.f32 %v6325_v16, %v2189_v11  ;;  %v2027_v10 = vadd.f32 %v2019_v49, %v1999_v14  ;;  %v2191_v31 = vadd.f32 %v2183_v36, %v2163_v13  ;;  %v2208_v57 = vadd.f32 %v6340_v39, %v2190_v54  ;;  %v2090_v36 = vld [vmem:[#allocation4 + $0x4a] sm:$0xf]  ;;  %v2117_v11 = vld [vmem:[#allocation4 + $0x40] sm:$0xf] }
 0x348   :  { %v2026_v27 = vadd.f32 %v2018_v33, %v1998_v12  ;;  %v2045_v61 = vmul.f32 %v6314_v9, %v2033_v58  ;;  %v2192_v24 = vadd.f32 %v6334_v34, %v2164_v55  ;;  %v2046_v4 = vmul.f32 %v6314_v9, %v2034_v5  ;;  %v2118_v33 = vld [vmem:[#allocation4 + $0x48] sm:$0xf]  ;;  %v2119_v12 = vld [vmem:[#allocation4 + $0x50] sm:$0xf] }
 0x349   :  { %v2215_v3 = vmax.f32 %v2207_v59, 0.0  ;;  %v2047_v44 = vmul.f32 %v6314_v9, %v2035_v19  ;;  %v2209_v21 = vadd.f32 %v6325_v16, %v2191_v31  ;;  %v2216_v15 = vmax.f32 %v2208_v57, 0.0 }
 0x34a   :  { %v2052_v20 = vadd.f32 %v2044_v7, %v6336_v1  ;;  %v2053_v32 = vadd.f32 %v2045_v61, %v2025_v62  ;;  %v2210_v60 = vadd.f32 %v6340_v39, %v2192_v24  ;;  %v2054_v23 = vadd.f32 %v2046_v4, %v2026_v27  ;;  %v2148_v62 = vld [vmem:[#allocation4 + $0x59] sm:$0xf]  ;;  %v2147_v61 = vld [vmem:[#allocation4 + $0x51] sm:$0xf] }
 0x34b   :  { %v2055_v17 = vadd.f32 %v2047_v44, %v2027_v10  ;;  %v2072_v34 = vmul.f32 %v6317_v43, %v2060_v50  ;;  %v2217_v47 = vmax.f32 %v2209_v21, 0.0  ;;  %v2231_v9 = vcombine.low %v2215_v3, %v2216_v15  ;;  %v2145_v10 = vld [vmem:[#allocation4 + $0x41] sm:$0xf]  ;;  %v2176_v50 = vld [vmem:[#allocation4 + $0x5a] sm:$0xf] }
 0x34c   :  { %v2073_v38 = vmul.f32 %v6317_v43, %v2061_v52  ;;  %v2074_v56 = vmul.f32 %v6317_v43, %v2062_v30  ;;  %v2218_v14 = vmax.f32 %v2210_v60, 0.0  ;;  %v2075_v1 = vmul.f32 %v6317_v43, %v2063_v26  ;;  %v2146_v43 = vld [vmem:[#allocation4 + $0x49] sm:$0xf]  ;;  %v2173_v52 = vld [vmem:[#allocation4 + $0x42] sm:$0xf] }
 0x34d   :  { %v2080_v18 = vadd.f32 %v2072_v34, %v2052_v20  ;;  %v2100_v48 = vmul.f32 %v6320_v2, %v2088_v35  ;;  %v2101_v13 = vmul.f32 %v6320_v2, %v2089_v0  ;;  %v2102_v54 = vmul.f32 %v6320_v2, %v2090_v36  ;;  %v2174_v30 = vld [vmem:[#allocation4 + $0x4a] sm:$0xf] }
 0x34e   :  { %v2081_v49 = vadd.f32 %v2073_v38, %v2053_v32  ;;  %v2082_v58 = vadd.f32 %v2074_v56, %v2054_v23  ;;  %v2232_v5 = vcombine.low %v2217_v47, %v2218_v14  ;;  %v2083_v19 = vadd.f32 %v2075_v1, %v2055_v17  ;;  %v2175_v32 = vld [vmem:[#allocation4 + $0x52] sm:$0xf] }
 0x34f   :  { %v2103_v55 = vmul.f32 %v6320_v2, %v2091_v45  ;;  %v2108_v59 = vadd.f32 %v2100_v48, %v2080_v18  ;;  %v2129_v57 = vmul.f32 %v6303_v25, %v2117_v11  ;;  %v2130_v27 = vmul.f32 %v6303_v25, %v2118_v33 }
 0x350   :  { %v2109_v7 = vadd.f32 %v2101_v13, %v2081_v49  ;;  %v2110_v31 = vadd.f32 %v2102_v54, %v2082_v58  ;;  %v2239_v24 = vpack.c.bf16 %v2232_v5, %v2231_v9  ;;  %v2131_v4 = vmul.f32 %v6303_v25, %v2119_v12  ;;  %v5186_v12 = vld [vmem:[%s6965_s5 + $0xd8] sm:$0xff]   ;;  %v5188_v5 = vld [vmem:[%s6965_s5 + $0xe8] sm:$0xff]  }
 0x351   :  { %v2111_v3 = vadd.f32 %v2103_v55, %v2083_v19  ;;  %v2160_v44 = vmul.f32 %v6306_v28, %v2148_v62  ;;  %v2137_v2 = vadd.f32 %v2129_v57, %v2108_v59  ;;  %v2157_v15 = vmul.f32 %v6306_v28, %v2145_v10  ;;  %v5187_v62 = vld [vmem:[%s6965_s5 + $0xe0] sm:$0xff]   ;;  %v5189_v19 = vld [vmem:[%s6965_s5 + $0xf0] sm:$0xff]   ;;  %v5190_v55 = vld [vmem:[%s6965_s5 + $0xf8] sm:$0xff]  }
 0x352   :  { %v2138_v21 = vadd.f32 %v2130_v27, %v2109_v7  ;;  %v2158_v20 = vmul.f32 %v6306_v28, %v2146_v43  ;;  %4980 = vmatprep.mubr.bf16.mxu1 %v2239_v24  ;;  %v2139_v26 = vadd.f32 %v2131_v4, %v2110_v31  ;;  %v2159_v60 = vmul.f32 %v6306_v28, %v2147_v61  ;;  %v4540_v59 = vld [vmem:[%s6963_s3 + $0x30] sm:$0xff]  ;;  %v4531_v10 = vld [vmem:[%s6966_s6 + $0x2] ss:$0 sm:$0xff] }
 0x353   :  { %v2140_v35 = vadd.f32 %v6345_v22, %v2111_v3  ;;  %v2188_v23 = vmul.f32 %v6311_v46, %v2176_v50  ;;  %v2165_v25 = vadd.f32 %v2157_v15, %v2137_v2  ;;  %v2185_v34 = vmul.f32 %v6311_v46, %v2173_v52  ;;  %v2393_v57 = vld [vmem:[#allocation5 + $0x30] sm:$0xf]  ;;  %v2391_v24 = vld [vmem:[#allocation5] sm:$0xf] }
 0x354   :  { %v2166_v17 = vadd.f32 %v2158_v20, %v2138_v21  ;;  %v2186_v0 = vmul.f32 %v6311_v46, %v2174_v30  ;;  %v2167_v36 = vadd.f32 %v2159_v60, %v2139_v26  ;;  %v2187_v9 = vmul.f32 %v6311_v46, %v2175_v32  ;;  %v5183_v46 = vld [vmem:[%s6965_s5 + $0xc0] sm:$0xff]   ;;  %v2405_v27 = vld [vmem:[#allocation5 + $0x31] sm:$0xf] }
 0x355   :  { %v2168_v47 = vadd.f32 %v2160_v44, %v2140_v35  ;;  %v2193_v38 = vadd.f32 %v2185_v34, %v2165_v25  ;;  %4985 = vmatpush3.bf16.msra.mxu0 %v5183_v46  ;;  %v6475_v43 = vrot.slane %v4540_v59, %v7017_v42  ;;  %v6478_v7 = vrot.slane %v4540_v59, %v7018_v37  ;;  %v2403_v3 = vld [vmem:[#allocation5 + $0x1] sm:$0xf] }
 0x356   :  { %v2194_v56 = vadd.f32 %v2186_v0, %v2166_v17  ;;  %v2195_v45 = vadd.f32 %v2187_v9, %v2167_v36  ;;  %4986 = vmatprep.subr.bf16.mxu0 %v6278_v6  ;;  %v6481_v44 = vrot.slane %v4540_v59, %v7019_v63  ;;  %v2419_v17 = vld [vmem:[#allocation5 + $0x2] sm:$0xf] }
 0x357   :  { %v2196_v14 = vadd.f32 %v2188_v23, %v2168_v47  ;;  %v2211_v22 = vadd.f32 %v6325_v16, %v2193_v38  ;;  %v2401_v15 = vmul.f32 %v6475_v43, %v2393_v57  ;;  %v2413_v20 = vmul.f32 %v6478_v7, %v2405_v27  ;;  %v2421_v23 = vld [vmem:[#allocation5 + $0x32] sm:$0xf] }
 0x358   :  { %v2212_v28 = vadd.f32 %v6340_v39, %v2194_v56  ;;  %v2213_v1 = vadd.f32 %v6325_v16, %v2195_v45  ;;  %v5184_v16 = vld [vmem:[%s6965_s5 + $0xc8] sm:$0xff]   ;;  %v2399_v26 = vmul.f32 %v6475_v43, %v2391_v24  ;;  %v2411_v35 = vmul.f32 %v6478_v7, %v2403_v3 }
 0x359   :  { %v2214_v18 = vadd.f32 %v6340_v39, %v2196_v14  ;;  %v2219_v11 = vmax.f32 %v2211_v22, 0.0  ;;  %4987 = vmatpush3.bf16.msra.mxu0 %v5184_v16  ;;  %v5185_v39 = vld [vmem:[%s6965_s5 + $0xd0] sm:$0xff]   ;;  %v2417_v9 = vadd.f32 %v2413_v20, %v2401_v15  ;;  %v2429_v38 = vmul.f32 %v6481_v44, %v2421_v23 }
 0x35a   :  { %v2220_v48 = vmax.f32 %v2212_v28, 0.0  ;;  %v2221_v33 = vmax.f32 %v2213_v1, 0.0  ;;  %4988 = vmatprep.subr.bf16.mxu0 %v6278_v6  ;;  %v2415_v56 = vadd.f32 %v2411_v35, %v2399_v26  ;;  %v2427_v45 = vmul.f32 %v6481_v44, %v2419_v17 }
 0x35b   :  { %v2222_v49 = vmax.f32 %v2214_v18, 0.0  ;;  %v2442_v22 = vrot.slane %v4540_v59, %v7022_v51  ;;  %v6491_v28 = vrot.slane %v4540_v59, %v7023_v40  ;;  %v2433_v1 = vadd.f32 %v2429_v38, %v2417_v9  ;;  %v4544_v18 = vld [vmem:[%s6964_s4 + $0x3] ss:$0 sm:$0xff] }
 0x35c   :  { %v2233_v58 = vcombine.low %v2219_v11, %v2220_v48  ;;  %v2474_v16 = vrot.slane %v4540_v59, %v7024_v53  ;;  %v2590_v38 = vrot.slane %v4544_v18, %v5961_v41 }
 0x35d   :  { %v2234_v13 = vcombine.low %v2221_v33, %v2222_v49  ;;  %4989 = vmatpush3.bf16.msra.mxu0 %v5185_v39  ;;  %v2431_v33 = vadd.f32 %v2427_v45, %v2415_v56 }
 0x35e   :  { %4990 = vmatprep.subr.bf16.mxu0 %v6278_v6 }
 0x35f   :  { %v2240_v54 = vpack.c.bf16 %v2234_v13, %v2233_v58 }
 0x361   :  { %4981 = vmatmul.mubr.bf16.vlgmr.msra.gmra.mrb[16].mxu1 %v2240_v54  ;;  %4991 = vmatpush3.bf16.msra.mxu0 %v5186_v12 }
 0x362   :  { %5020 = vmatprep.mubr.msk.bf16.mxu1 %vm5277_vm8, %v6278_v6  ;;  %4992 = vmatprep.subr.bf16.mxu0 %v6278_v6 }
 0x365   :  { %4993 = vmatpush3.bf16.msra.mxu0 %v5187_v62 }
 0x366   :  { %4994 = vmatprep.subr.bf16.mxu0 %v6278_v6 }
 0x369   :  { %4995 = vmatpush3.bf16.msra.mxu0 %v5188_v5 }
 0x36a   :  { %4996 = vmatprep.subr.bf16.mxu0 %v6278_v6 }
 0x36d   :  { %4997 = vmatpush3.bf16.msra.mxu0 %v5189_v19  ;;  %v6498_v19 = vrot.slane %v4540_v59, %v7020_v8 }
 0x36e   :  { %4998 = vmatprep.subr.bf16.mxu0 %v6278_v6 }
 0x371   :  { %4999 = vmatpush3.bf16.msra.mxu0 %v5190_v55  ;;  %v6501_v55 = vrot.slane %v4540_v59, %v7021_v29 }
 0x372   :  { %5024 = vmatprep.subr.bf16.mxu0 %v6278_v6 }
 0x434   :  { %v4982_v31 = vpop.f32.mrb[16].mxu1 }
 0x435   :  { %v2357_v61 = vadd.f32 %v4982_v31, %v4531_v10  ;;  %v2348_v50 = vpop.f32.mrb[17].mxu1 }
 0x436   :  { %v2349_v4 = vadd.f32 %v4531_v10, %v2348_v50  ;;  %v4983_v52 = vpop.f32.mrb[18].mxu1 }
 0x437   :  { %v2365_v30 = vmax.f32 %v2357_v61, 0.0  ;;  %v2360_v2 = vadd.f32 %v4983_v52, %v4531_v10  ;;  %v2351_v21 = vpop.f32.mrb[19].mxu1 }
 0x438   :  { %v2363_v32 = vmax.f32 %v2349_v4, 0.0  ;;  %v2352_v60 = vadd.f32 %v4531_v10, %v2351_v21  ;;  %v2583_v10 = vcombine.high %v4544_v18, %v4544_v18 }
 0x439   :  { %v2373_v25 = vcombine.high %v2365_v30, %v2365_v30  ;;  %2384 = vst [vmem:[#allocation5 + $0x39] sm:$0xf] %v2365_v30  ;;  %v2366_v34 = vmax.f32 %v2360_v2, 0.0 }
 0x43a   :  { %v2371_v0 = vcombine.high %v2363_v32, %v2363_v32  ;;  %2380 = vst [vmem:[#allocation5 + $0x9] sm:$0xf] %v2363_v32  ;;  %v2364_v36 = vmax.f32 %v2352_v60, 0.0  ;;  %v2597_v18 = vrot.slane %v2583_v10, %v5961_v41 }
 0x43b   :  { %2385 = vst [vmem:[#allocation5 + $0x41] sm:$0xf] %v2373_v25  ;;  %v2374_v47 = vcombine.high %v2366_v34, %v2366_v34  ;;  %2386 = vst [vmem:[#allocation5 + $0x49] sm:$0xf] %v2366_v34 }
 0x43c   :  { %2381 = vst [vmem:[#allocation5 + $0x11] sm:$0xf] %v2371_v0  ;;  %v2372_v14 = vcombine.high %v2364_v36, %v2364_v36  ;;  %2382 = vst [vmem:[#allocation5 + $0x19] sm:$0xf] %v2364_v36 }
 0x43d   :  { %2387 = vst [vmem:[#allocation5 + $0x51] sm:$0xf] %v2374_v47 }
 0x43e   :  { %2383 = vst [vmem:[#allocation5 + $0x21] sm:$0xf] %v2372_v14 }
 0x440   :  { %v2437_v48 = vld [vmem:[#allocation5 + $0x38] sm:$0xf] }
 0x441   :  { %v2453_v11 = vld [vmem:[#allocation5 + $0x39] sm:$0xf]  ;;  %v2445_v58 = vmul.f32 %v2442_v22, %v2437_v48  ;;  %v2435_v13 = vld [vmem:[#allocation5 + $0x8] sm:$0xf] }
 0x442   :  { %v2469_v49 = vld [vmem:[#allocation5 + $0x3a] sm:$0xf]  ;;  %v2451_v54 = vld [vmem:[#allocation5 + $0x9] sm:$0xf]  ;;  %v2394_v39 = vld [vmem:[#allocation5 + $0x40] sm:$0xf]  ;;  %v2443_v62 = vmul.f32 %v2442_v22, %v2435_v13  ;;  %v2461_v3 = vmul.f32 %v6491_v28, %v2453_v11 }
 0x443   :  { %v2467_v46 = vld [vmem:[#allocation5 + $0xa] sm:$0xf]  ;;  %v2406_v12 = vld [vmem:[#allocation5 + $0x41] sm:$0xf]  ;;  %v2392_v31 = vld [vmem:[#allocation5 + $0x10] sm:$0xf]  ;;  %v2402_v61 = vmul.f32 %v6475_v43, %v2394_v39  ;;  %v2449_v24 = vadd.f32 %v2445_v58, %v2433_v1  ;;  %v2459_v2 = vmul.f32 %v6491_v28, %v2451_v54  ;;  %v2477_v35 = vmul.f32 %v2474_v16, %v2469_v49 }
 0x444   :  { %v2422_v5 = vld [vmem:[#allocation5 + $0x42] sm:$0xf]  ;;  %v2404_v57 = vld [vmem:[#allocation5 + $0x11] sm:$0xf]  ;;  %v2414_v50 = vmul.f32 %v6478_v7, %v2406_v12  ;;  %v2400_v4 = vmul.f32 %v6475_v43, %v2392_v31  ;;  %v2447_v30 = vadd.f32 %v2443_v62, %v2431_v33  ;;  %v2436_v21 = vld [vmem:[#allocation5 + $0x18] sm:$0xf]  ;;  %v2475_v17 = vmul.f32 %v2474_v16, %v2467_v46 }
 0x445   :  { %v2420_v27 = vld [vmem:[#allocation5 + $0x12] sm:$0xf]  ;;  %v2412_v52 = vmul.f32 %v6478_v7, %v2404_v57  ;;  %v2430_v20 = vmul.f32 %v6481_v44, %v2422_v5  ;;  %v2438_v32 = vld [vmem:[#allocation5 + $0x48] sm:$0xf]  ;;  %v2465_v26 = vadd.f32 %v2461_v3, %v2449_v24  ;;  %v2486_v43 = vld [vmem:[#allocation5 + $0x40] sm:$0xf]  ;;  %v2444_v45 = vmul.f32 %v2442_v22, %v2436_v21 }
 0x446   :  { %v2484_v59 = vld [vmem:[#allocation5 + $0x10] sm:$0xf]  ;;  %v2418_v15 = vadd.f32 %v2414_v50, %v2402_v61  ;;  %v2428_v23 = vmul.f32 %v6481_v44, %v2420_v27  ;;  %v2463_v25 = vadd.f32 %v2459_v2, %v2447_v30  ;;  %v2454_v34 = vld [vmem:[#allocation5 + $0x49] sm:$0xf]  ;;  %v2452_v0 = vld [vmem:[#allocation5 + $0x19] sm:$0xf]  ;;  %v2446_v36 = vmul.f32 %v2442_v22, %v2438_v32 }
 0x447   :  { %v2416_v60 = vadd.f32 %v2412_v52, %v2400_v4  ;;  %v2481_v47 = vadd.f32 %v2477_v35, %v2465_v26  ;;  %v2500_v9 = vld [vmem:[#allocation5 + $0x11] sm:$0xf]  ;;  %v2470_v14 = vld [vmem:[#allocation5 + $0x4a] sm:$0xf]  ;;  %v2492_v48 = vmul.f32 %v6498_v19, %v2484_v59  ;;  %v2502_v11 = vld [vmem:[#allocation5 + $0x41] sm:$0xf]  ;;  %v2462_v58 = vmul.f32 %v6491_v28, %v2454_v34 }
 0x448   :  { %v2434_v7 = vadd.f32 %v2430_v20, %v2418_v15  ;;  %v2479_v1 = vadd.f32 %v2475_v17, %v2463_v25  ;;  %v2468_v33 = vld [vmem:[#allocation5 + $0x1a] sm:$0xf]  ;;  %v4542_v44 = vld [vmem:[%s6963_s3 + $0x38] ss:$0 sm:$0xff]  ;;  %v2494_v13 = vmul.f32 %v6498_v19, %v2486_v43  ;;  %v2516_v54 = vld [vmem:[#allocation5 + $0x12] sm:$0xf]  ;;  %v2460_v22 = vmul.f32 %v6491_v28, %v2452_v0 }
 0x449   :  { %v2432_v56 = vadd.f32 %v2428_v23, %v2416_v60  ;;  %v2487_v39 = vld [vmem:[#allocation5 + $0x50] sm:$0xf]  ;;  %v2508_v62 = vmul.f32 %v6501_v55, %v2500_v9  ;;  %v2518_v5 = vld [vmem:[#allocation5 + $0x42] sm:$0xf]  ;;  %v2478_v57 = vmul.f32 %v2474_v16, %v2470_v14  ;;  %v2510_v50 = vmul.f32 %v6501_v55, %v2502_v11 }
 0x44a   :  { %v2450_v49 = vadd.f32 %v2446_v36, %v2434_v7  ;;  %v2496_v12 = vadd.f32 %v2492_v48, %v2479_v1  ;;  %v2485_v27 = vld [vmem:[#allocation5 + $0x20] sm:$0xf]  ;;  %v2498_v61 = vadd.f32 %v2494_v13, %v2481_v47  ;;  %v2476_v24 = vmul.f32 %v2474_v16, %v2468_v33  ;;  %v2503_v4 = vld [vmem:[#allocation5 + $0x51] sm:$0xf] }
 0x44b   :  { %v2448_v46 = vadd.f32 %v2444_v45, %v2432_v56  ;;  %v2524_v30 = vmul.f32 %v4542_v44, %v2516_v54  ;;  %v2495_v2 = vmul.f32 %v6498_v19, %v2487_v39  ;;  %v2501_v28 = vld [vmem:[#allocation5 + $0x21] sm:$0xf]  ;;  %v2526_v21 = vmul.f32 %v4542_v44, %v2518_v5  ;;  %v2519_v32 = vld [vmem:[#allocation5 + $0x52] sm:$0xf] }
 0x44c   :  { %v2466_v31 = vadd.f32 %v2462_v58, %v2450_v49  ;;  %v2512_v52 = vadd.f32 %v2508_v62, %v2496_v12  ;;  %v2514_v59 = vadd.f32 %v2510_v50, %v2498_v61  ;;  %v2493_v20 = vmul.f32 %v6498_v19, %v2485_v27  ;;  %v2517_v23 = vld [vmem:[#allocation5 + $0x22] sm:$0xf] }
 0x44d   :  { %v2464_v3 = vadd.f32 %v2460_v22, %v2448_v46  ;;  %v2511_v60 = vmul.f32 %v6501_v55, %v2503_v4  ;;  %v2600_v25 = vrot.slane %v2590_v38, 1  ;;  %v2509_v34 = vmul.f32 %v6501_v55, %v2501_v28 }
 0x44e   :  { %v2482_v10 = vadd.f32 %v2478_v57, %v2466_v31  ;;  %v2528_v26 = vadd.f32 %v2524_v30, %v2512_v52  ;;  %v2530_v16 = vadd.f32 %v2526_v21, %v2514_v59  ;;  %v2599_v0 = vcombine.high %v2597_v18, %v2597_v18 }
 0x44f   :  { %v2480_v15 = vadd.f32 %v2476_v24, %v2464_v3  ;;  %v2527_v36 = vmul.f32 %v4542_v44, %v2519_v32  ;;  %v2602_v9 = vrot.slane %v2597_v18, 1  ;;  %v2525_v56 = vmul.f32 %v4542_v44, %v2517_v23 }
 0x450   :  { %v2499_v35 = vadd.f32 %v2495_v2, %v2482_v10  ;;  %v2542_v43 = vrot.slane %v2528_v26, %v5961_v41  ;;  %v2558_v47 = vrot.slane %v2530_v16, %v5961_v41  ;;  %v2598_v14 = vcombine.high %v2590_v38, %v2590_v38 }
 0x451   :  { %v2497_v17 = vadd.f32 %v2493_v20, %v2480_v15  ;;  %v2603_v13 = vrot.slane %v2599_v0, 1 }
 0x452   :  { %v2515_v7 = vadd.f32 %v2511_v60, %v2499_v35  ;;  %v2543_v45 = vcombine.high %v2542_v43, %v2542_v43  ;;  %v2559_v48 = vcombine.high %v2558_v47, %v2558_v47  ;;  %v2612_v11 = vadd.f32 %v2590_v38, %v2542_v43 }
 0x453   :  { %v2513_v19 = vadd.f32 %v2509_v34, %v2497_v17  ;;  %v2616_v33 = vadd.f32 %v2597_v18, %v2558_v47  ;;  %v2601_v22 = vrot.slane %v2598_v14, 1 }
 0x454   :  { %v2531_v1 = vadd.f32 %v2527_v36, %v2515_v7  ;;  %v2613_v58 = vadd.f32 %v2600_v25, %v2543_v45  ;;  %v2617_v54 = vadd.f32 %v2602_v9, %v2559_v48  ;;  %v2620_v5 = vmax.f32 %v2612_v11, 0.0  ;;  %v5191_v11 = vld [vmem:[%s6965_s5 + $0x100] sm:$0xff]  }
 0x455   :  { %v2529_v49 = vadd.f32 %v2525_v56, %v2513_v19  ;;  %v2624_v44 = vmax.f32 %v2616_v33, 0.0  ;;  %5005 = vmatpush3.bf16.msra.mxu1 %v5191_v11  ;;  %v5192_v33 = vld [vmem:[%s6965_s5 + $0x108] sm:$0xff]  }
 0x456   :  { %v2566_v55 = vrot.slane %v2531_v1, %v5961_v41  ;;  %v2621_v39 = vmax.f32 %v2613_v58, 0.0  ;;  %v2625_v27 = vmax.f32 %v2617_v54, 0.0  ;;  %v2628_v52 = vpack.c.bf16 %v2620_v5, %v2620_v5  ;;  %5006 = vmatprep.subr.bf16.mxu1 %v6278_v6  ;;  %v5194_v58 = vld [vmem:[%s6965_s5 + $0x118] sm:$0xff]   ;;  %v5197_v54 = vld [vmem:[%s6965_s5 + $0x130] sm:$0xff]  }
 0x457   :  { %v2550_v46 = vrot.slane %v2529_v49, %v5961_v41  ;;  %v2632_v30 = vpack.c.bf16 %v2624_v44, %v2624_v44  ;;  %v5193_v49 = vld [vmem:[%s6965_s5 + $0x110] sm:$0xff]  }
 0x458   :  { %v2567_v12 = vcombine.high %v2566_v55, %v2566_v55  ;;  %v2618_v62 = vadd.f32 %v2599_v0, %v2566_v55  ;;  %v2629_v61 = vpack.c.bf16 %v2621_v39, %v2621_v39  ;;  %v2633_v28 = vpack.c.bf16 %v2625_v27, %v2625_v27  ;;  %v6553_v55 = vld [vmem:[#allocation3 + $0x90] sm:$0xff]  ;;  %v4562_v39 = vld [vmem:[%s6966_s6 + $0x3] ss:$0 sm:$0xff]  ;;  %v2824_v27 = vld [vmem:[#allocation6 + $0x1] sm:$0x3] }
 0x459   :  { %v2551_v31 = vcombine.high %v2550_v46, %v2550_v46  ;;  %v2614_v57 = vadd.f32 %v2598_v14, %v2550_v46  ;;  %v2669_v26 = vunpack.c.l.b16 %v2628_v52  ;;  %v2673_v35 = vunpack.c.l.b16 %v2632_v30  ;;  %5007 = vmatpush3.bf16.msra.mxu1 %v5192_v33  ;;  %v5198_v46 = vld [vmem:[%s6965_s5 + $0x138] sm:$0xff]  }
 0x45a   :  { %v2619_v38 = vadd.f32 %v2603_v13, %v2567_v12  ;;  %v2626_v18 = vmax.f32 %v2618_v62, 0.0  ;;  %v2670_v3 = vunpack.c.l.b16 %v2629_v61  ;;  %v2674_v23 = vunpack.c.l.b16 %v2633_v28  ;;  %5008 = vmatprep.subr.bf16.mxu1 %v6278_v6  ;;  %v5195_v13 = vld [vmem:[%s6965_s5 + $0x120] sm:$0xff]   ;;  %v2924_v33 = vld [vmem:[#allocation6 + $0x1d] sm:$0x3] }
 0x45b   :  { %v2615_v50 = vadd.f32 %v2601_v22, %v2551_v31  ;;  %v2622_v24 = vmax.f32 %v2614_v57, 0.0  ;;  %v2683_v7 = vrot.slane %v2673_v35, 4  ;;  %v4573_v22 = vld [vmem:[%s6963_s3 + $0x40] sm:$0xff] }
 0x45c   :  { %v2627_v4 = vmax.f32 %v2619_v38, 0.0  ;;  %v2634_v59 = vpack.c.bf16 %v2626_v18, %v2626_v18  ;;  %v2677_v21 = vrot.slane %v2670_v3, 7  ;;  %v2685_v47 = vrot.slane %v2674_v23, 3  ;;  %v2812_v57 = vld [vmem:[#allocation6] sm:$0x3] }
 0x45d   :  { %v2623_v10 = vmax.f32 %v2615_v50, 0.0  ;;  %v2630_v2 = vpack.c.bf16 %v2622_v24, %v2622_v24  ;;  %5009 = vmatpush3.bf16.msra.mxu1 %v5193_v49  ;;  %v2819_v62 = vrot.slane %v4573_v22, %v7017_v42  ;;  %v2831_v5 = vrot.slane %v4573_v22, %v7018_v37  ;;  %v2814_v38 = vld [vmem:[#allocation6 + $0x10] sm:$0x3] }
 0x45e   :  { %v2635_v20 = vpack.c.bf16 %v2627_v4, %v2627_v4  ;;  %v2675_v25 = vunpack.c.l.b16 %v2634_v59  ;;  %v2678_v17 = vsel %vm1761_vm1, %v2677_v21, %v2669_v26  ;;  %5010 = vmatprep.subr.bf16.mxu1 %v6553_v55  ;;  %v2826_v18 = vld [vmem:[#allocation6 + $0x11] sm:$0x3]  ;;  %v2847_v52 = vrot.slane %v4573_v22, %v7019_v63  ;;  %v2840_v59 = vld [vmem:[#allocation6 + $0x2] sm:$0x3] }
 0x45f   :  { %v2631_v15 = vpack.c.bf16 %v2623_v10, %v2623_v10  ;;  %v2671_v32 = vunpack.c.l.b16 %v2630_v2  ;;  %v2820_v3 = vmul.f32 %v2819_v62, %v2812_v57  ;;  %v2832_v4 = vmul.f32 %v2831_v5, %v2824_v27  ;;  %v2842_v21 = vld [vmem:[#allocation6 + $0x12] sm:$0x3] }
 0x460   :  { %v2676_v34 = vunpack.c.l.b16 %v2635_v20  ;;  %v2687_v19 = vrot.slane %v2675_v25, 2  ;;  %v2822_v2 = vmul.f32 %v2819_v62, %v2814_v38  ;;  %v2834_v28 = vmul.f32 %v2831_v5, %v2826_v18  ;;  %v2906_v25 = vld [vmem:[#allocation6 + $0xc] sm:$0x3] }
 0x461   :  { %v2672_v60 = vunpack.c.l.b16 %v2631_v15  ;;  %v2679_v16 = vrot.slane %v2671_v32, 6  ;;  %5011 = vmatpush3.bf16.msra.mxu1 %v5194_v58  ;;  %v2836_v32 = vadd.f32 %v2832_v4, %v2820_v3  ;;  %v2848_v26 = vmul.f32 %v2847_v52, %v2840_v59 }
 0x462   :  { %v2689_v45 = vrot.slane %v2676_v34, 1  ;;  %5012 = vmatprep.subr.bf16.mxu1 %v6553_v55  ;;  %v2850_v23 = vmul.f32 %v2847_v52, %v2842_v21  ;;  %v2922_v34 = vld [vmem:[#allocation6 + $0xd] sm:$0x3]  ;;  %v2895_v11 = vrot.slane %v4573_v22, %v7024_v53 }
 0x463   :  { %v2680_v43 = vsel %vm1764_vm2, %v2679_v16, %v2678_v17  ;;  %v2681_v0 = vrot.slane %v2672_v60, 5  ;;  %v2838_v60 = vadd.f32 %v2834_v28, %v2822_v2  ;;  %v2863_v16 = vrot.slane %v4573_v22, %v7022_v51  ;;  %v2908_v17 = vld [vmem:[#allocation6 + $0x1c] sm:$0x3] }
 0x465   :  { %v2682_v36 = vsel %vm1767_vm3, %v2681_v0, %v2680_v43  ;;  %5013 = vmatpush3.bf16.msra.mxu1 %v5195_v13 }
 0x466   :  { %v2684_v9 = vsel %vm1770_vm4, %v2683_v7, %v2682_v36  ;;  %5014 = vmatprep.subr.bf16.mxu1 %v6553_v55  ;;  %v2852_v36 = vadd.f32 %v2848_v26, %v2836_v32 }
 0x467   :  { %v2686_v56 = vsel %vm1773_vm5, %v2685_v47, %v2684_v9  ;;  %v2879_v47 = vrot.slane %v4573_v22, %v7023_v40  ;;  %v2912_v9 = vrot.slane %v4573_v22, %v7020_v8 }
 0x468   :  { %v2688_v14 = vsel %vm1776_vm6, %v2687_v19, %v2686_v56  ;;  %v6588_v19 = vrot.slane %v4573_v22, %v7021_v29 }
 0x469   :  { %v2690_v1 = vsel %vm1779_vm7, %v2689_v45, %v2688_v14  ;;  %v2854_v14 = vadd.f32 %v2850_v23, %v2838_v60 }
 0x46a   :  { %v2691_v48 = vpack.c.b16 %v2690_v1, %v2690_v1  ;;  %v2932_v4 = vmul.f32 %v6588_v19, %v2924_v33 }
 0x46c   :  { %5001 = vmatmul.mubr.bf16.vlgmr.msra.gmra.mrb[20].mxu0 %v2691_v48 }
 0x46d   :  { %5040 = vmatprep.mubr.msk.bf16.mxu0 %vm5277_vm8, %v6278_v6  ;;  %v5196_v6 = vld [vmem:[%s6965_s5 + $0x128] sm:$0xff]  }
 0x46e   :  { %5015 = vmatpush3.bf16.msra.mxu1 %v5196_v6 }
 0x46f   :  { %5016 = vmatprep.subr.bf16.mxu1 %v6553_v55 }
 0x472   :  { %5017 = vmatpush3.bf16.msra.mxu1 %v5197_v54  ;;  %v6591_v54 = vmul.f32 %v2912_v9, %v2906_v25 }
 0x473   :  { %5018 = vmatprep.subr.bf16.mxu1 %v6553_v55 }
 0x476   :  { %5019 = vmatpush3.bf16.msra.mxu1 %v5198_v46  ;;  %v6593_v46 = vmul.f32 %v2912_v9, %v2908_v17 }
 0x477   :  { %5044 = vmatprep.subr.bf16.mxu1 %v6553_v55 }
 0x53f   :  { %v2775_v12 = vpop.f32.mrb[20].mxu0 }
 0x540   :  { %v2776_v44 = vadd.f32 %v4562_v39, %v2775_v12  ;;  %v5002_v31 = vpop.f32.mrb[21].mxu0  ;;  %v6596_v39 = vmul.f32 %v6588_v19, %v2922_v34 }
 0x541   :  { %v2778_v61 = vpop.f32.mrb[22].mxu0 }
 0x542   :  { %v2781_v50 = vmax.f32 %v2776_v44, 0.0  ;;  %v5003_v24 = vpop.f32.mrb[23].mxu0 }
 0x544   :  { %v2783_v30 = vcombine.high %v2781_v50, %v2781_v50  ;;  %v2790_v10 = vrot.slane %v2781_v50, %v5961_v41  ;;  %4571 = vst.sshfl [vmem:[#allocation6 + $0x5] sm:$0x3 pattern:$0x76325410] %v2781_v50 }
 0x546   :  { %v2797_v15 = vrot.slane %v2783_v30, %v5961_v41  ;;  %v2798_v20 = vcombine.high %v2790_v10, %v2790_v10  ;;  %4572 = vst.sshfl [vmem:[#allocation6 + $0x15] sm:$0x3 pattern:$0x76325410] %v2783_v30 }
 0x548   :  { %v2799_v35 = vcombine.high %v2797_v15, %v2797_v15  ;;  %2806 = vst [vmem:[#allocation6 + $0x9] sm:$0x3] %v2798_v20 }
 0x54a   :  { %2808 = vst [vmem:[#allocation6 + $0x19] sm:$0x3] %v2799_v35 }
 0x54b   :  { %v2813_v43 = vld [vmem:[#allocation6 + $0x4] sm:$0x3]  ;;  %v2841_v7 = vld [vmem:[#allocation6 + $0x6] sm:$0x3] }
 0x54c   :  { %v2825_v0 = vld [vmem:[#allocation6 + $0x5] sm:$0x3]  ;;  %v2821_v56 = vmul.f32 %v2819_v62, %v2813_v43  ;;  %v2849_v57 = vmul.f32 %v2847_v52, %v2841_v7 }
 0x54d   :  { %v2833_v45 = vmul.f32 %v2831_v5, %v2825_v0  ;;  %v2856_v1 = vld [vmem:[#allocation6 + $0x4] sm:$0x3]  ;;  %v2815_v49 = vld [vmem:[#allocation6 + $0x14] sm:$0x3]  ;;  %v2843_v13 = vld [vmem:[#allocation6 + $0x16] sm:$0x3] }
 0x54e   :  { %v2872_v48 = vld [vmem:[#allocation6 + $0x5] sm:$0x3]  ;;  %v2827_v58 = vld [vmem:[#allocation6 + $0x15] sm:$0x3]  ;;  %v2864_v6 = vmul.f32 %v2863_v16, %v2856_v1  ;;  %v2823_v12 = vmul.f32 %v2819_v62, %v2815_v49  ;;  %v2851_v10 = vmul.f32 %v2847_v52, %v2843_v13 }
 0x54f   :  { %v2835_v44 = vmul.f32 %v2831_v5, %v2827_v58  ;;  %v2837_v31 = vadd.f32 %v2833_v45, %v2821_v56  ;;  %v2858_v27 = vld [vmem:[#allocation6 + $0x14] sm:$0x3]  ;;  %v2888_v38 = vld [vmem:[#allocation6 + $0x6] sm:$0x3]  ;;  %v2857_v22 = vld [vmem:[#allocation6 + $0x8] sm:$0x3]  ;;  %v2880_v3 = vmul.f32 %v2879_v47, %v2872_v48 }
 0x550   :  { %v2874_v61 = vld [vmem:[#allocation6 + $0x15] sm:$0x3]  ;;  %v2866_v18 = vmul.f32 %v2863_v16, %v2858_v27  ;;  %v2868_v50 = vadd.f32 %v2864_v6, %v2852_v36  ;;  %v2873_v24 = vld [vmem:[#allocation6 + $0x9] sm:$0x3]  ;;  %v2865_v28 = vmul.f32 %v2863_v16, %v2857_v22  ;;  %v2896_v35 = vmul.f32 %v2895_v11, %v2888_v38  ;;  %v4577_v45 = vld [vmem:[%s6964_s4 + $0x4] ss:$0 sm:$0xff] }
 0x551   :  { %v2839_v30 = vadd.f32 %v2835_v44, %v2823_v12  ;;  %v2853_v2 = vadd.f32 %v2849_v57, %v2837_v31  ;;  %v2890_v59 = vld [vmem:[#allocation6 + $0x16] sm:$0x3]  ;;  %v2905_v21 = vld [vmem:[#allocation6 + $0x8] sm:$0x3]  ;;  %v2859_v62 = vld [vmem:[#allocation6 + $0x18] sm:$0x3]  ;;  %v2882_v20 = vmul.f32 %v2879_v47, %v2874_v61  ;;  %v2881_v17 = vmul.f32 %v2879_v47, %v2873_v24 }
 0x552   :  { %v2870_v5 = vadd.f32 %v2866_v18, %v2854_v14  ;;  %v2875_v15 = vld [vmem:[#allocation6 + $0x19] sm:$0x3]  ;;  %v2884_v32 = vadd.f32 %v2880_v3, %v2868_v50  ;;  %v2889_v26 = vld [vmem:[#allocation6 + $0xa] sm:$0x3]  ;;  %v2867_v23 = vmul.f32 %v2863_v16, %v2859_v62  ;;  %v2898_v52 = vmul.f32 %v2895_v11, %v2890_v59  ;;  %v4575_v14 = vld [vmem:[%s6963_s3 + $0x48] ss:$0 sm:$0xff] }
 0x553   :  { %v2855_v60 = vadd.f32 %v2851_v10, %v2839_v30  ;;  %v2869_v25 = vadd.f32 %v2865_v28, %v2853_v2  ;;  %v2907_v34 = vld [vmem:[#allocation6 + $0x18] sm:$0x3]  ;;  %v2921_v43 = vld [vmem:[#allocation6 + $0x9] sm:$0x3]  ;;  %v2891_v7 = vld [vmem:[#allocation6 + $0x1a] sm:$0x3]  ;;  %v2913_v56 = vmul.f32 %v2912_v9, %v2905_v21  ;;  %v2883_v48 = vmul.f32 %v2879_v47, %v2875_v15 }
 0x554   :  { %v2886_v0 = vadd.f32 %v2882_v20, %v2870_v5  ;;  %v2900_v36 = vadd.f32 %v2896_v35, %v2884_v32  ;;  %v2897_v33 = vmul.f32 %v2895_v11, %v2889_v26  ;;  %v2923_v49 = vld [vmem:[#allocation6 + $0x19] sm:$0x3]  ;;  %v2937_v58 = vld [vmem:[#allocation6 + $0xa] sm:$0x3]  ;;  %v2915_v6 = vmul.f32 %v2912_v9, %v2907_v34  ;;  %v2938_v31 = vld [vmem:[#allocation6 + $0xe] sm:$0x3] }
 0x555   :  { %v2871_v1 = vadd.f32 %v2867_v23, %v2855_v60  ;;  %v2885_v16 = vadd.f32 %v2881_v17, %v2869_v25  ;;  %v2929_v44 = vmul.f32 %v6588_v19, %v2921_v43  ;;  %v2899_v27 = vmul.f32 %v2895_v11, %v2891_v7  ;;  %v2939_v38 = vld [vmem:[#allocation6 + $0x1a] sm:$0x3]  ;;  %v2940_v22 = vld [vmem:[#allocation6 + $0x1e] sm:$0x3] }
 0x556   :  { %v2902_v13 = vadd.f32 %v2898_v52, %v2886_v0  ;;  %v2917_v12 = vadd.f32 %v2913_v56, %v2900_v36  ;;  %v2960_v18 = vcombine.high %v4577_v45, %v4577_v45  ;;  %v2931_v24 = vmul.f32 %v6588_v19, %v2923_v49  ;;  %v5205_v49 = vld [vmem:[%s6965_s5 + $0x170] sm:$0xff]  }
 0x557   :  { %v2887_v57 = vadd.f32 %v2883_v48, %v2871_v1  ;;  %v2901_v61 = vadd.f32 %v2897_v33, %v2885_v16  ;;  %v2945_v3 = vmul.f32 %v4575_v14, %v2937_v58  ;;  %v2946_v2 = vmul.f32 %v4575_v14, %v2938_v31  ;;  %v5201_v1 = vld [vmem:[%s6965_s5 + $0x150] sm:$0xff]   ;;  %v5202_v48 = vld [vmem:[%s6965_s5 + $0x158] sm:$0xff]   ;;  %v5203_v16 = vld [vmem:[%s6965_s5 + $0x160] sm:$0xff]  }
 0x558   :  { %v2919_v50 = vadd.f32 %v2915_v6, %v2902_v13  ;;  %v2933_v47 = vadd.f32 %v2929_v44, %v2917_v12  ;;  %v2967_v9 = vrot.slane %v4577_v45, %v5961_v41  ;;  %v2947_v59 = vmul.f32 %v4575_v14, %v2939_v38  ;;  %v5204_v33 = vld [vmem:[%s6965_s5 + $0x168] sm:$0xff]   ;;  %v5206_v58 = vld [vmem:[%s6965_s5 + $0x178] sm:$0xff]   ;;  %v4606_v13 = vld [vmem:[%s6963_s3 + $0x50] sm:$0xff] }
 0x559   :  { %v2903_v30 = vadd.f32 %v2899_v27, %v2887_v57  ;;  %v2918_v10 = vadd.f32 %v6591_v54, %v2901_v61  ;;  %v2948_v21 = vmul.f32 %v4575_v14, %v2940_v22  ;;  %v2974_v15 = vrot.slane %v2960_v18, %v5961_v41  ;;  %v5200_v14 = vld [vmem:[%s6965_s5 + $0x148] sm:$0xff]   ;;  %v4595_v6 = vld [vmem:[%s6966_s6 + $0x4] ss:$0 sm:$0xff]  ;;  %v3156_v57 = vld [vmem:[#allocation7] sm:$0x3] }
 0x55a   :  { %v2935_v28 = vadd.f32 %v2931_v24, %v2919_v50  ;;  %v2949_v62 = vadd.f32 %v2945_v3, %v2933_v47  ;;  %v2975_v20 = vcombine.high %v2967_v9, %v2967_v9  ;;  %v3161_v12 = vrot.slane %v4606_v13, %v7017_v42  ;;  %v3164_v27 = vld [vmem:[#allocation7 + $0x1] sm:$0x3]  ;;  %v3157_v18 = vld [vmem:[#allocation7 + $0x10] sm:$0x3] }
 0x55b   :  { %v2920_v11 = vadd.f32 %v6593_v46, %v2903_v30  ;;  %v2934_v5 = vadd.f32 %v6596_v39, %v2918_v10  ;;  %v2976_v35 = vcombine.high %v2974_v15, %v2974_v15  ;;  %v3169_v44 = vrot.slane %v4606_v13, %v7018_v37  ;;  %v3165_v50 = vld [vmem:[#allocation7 + $0x11] sm:$0x3] }
 0x55c   :  { %v2951_v19 = vadd.f32 %v2947_v59, %v2935_v28  ;;  %v2981_v60 = vadd.f32 %v2967_v9, %v2949_v62  ;;  %v3162_v3 = vmul.f32 %v3161_v12, %v3156_v57  ;;  %v3179_v10 = vrot.slane %v4606_v13, %v7019_v63  ;;  %v3175_v59 = vld [vmem:[#allocation7 + $0x12] sm:$0x3] }
 0x55d   :  { %v2936_v32 = vadd.f32 %v2932_v4, %v2920_v11  ;;  %v2950_v26 = vadd.f32 %v2946_v2, %v2934_v5  ;;  %v5199_v4 = vld [vmem:[%s6965_s5 + $0x140] sm:$0xff]   ;;  %v3170_v30 = vmul.f32 %v3169_v44, %v3164_v27  ;;  %v3163_v37 = vmul.f32 %v3161_v12, %v3157_v18 }
 0x55e   :  { %v2983_v25 = vadd.f32 %v2974_v15, %v2951_v19  ;;  %v2985_v34 = vmax.f32 %v2981_v60, 0.0  ;;  %5025 = vmatpush3.bf16.msra.mxu0 %v5199_v4  ;;  %v3174_v2 = vld [vmem:[#allocation7 + $0x2] sm:$0x3]  ;;  %v3171_v28 = vmul.f32 %v3169_v44, %v3165_v50  ;;  %v3181_v19 = vmul.f32 %v3179_v10, %v3175_v59 }
 0x55f   :  { %v2952_v54 = vadd.f32 %v2948_v21, %v2936_v32  ;;  %v2982_v23 = vadd.f32 %v2975_v20, %v2950_v26  ;;  %5026 = vmatprep.subr.bf16.mxu0 %v6553_v55  ;;  %v3172_v11 = vadd.f32 %v3170_v30, %v3162_v3  ;;  %v3180_v5 = vmul.f32 %v3179_v10, %v3174_v2 }
 0x560   :  { %v2987_v0 = vmax.f32 %v2983_v25, 0.0  ;;  %v3173_v20 = vadd.f32 %v3171_v28, %v3163_v37  ;;  %v3189_v63 = vrot.slane %v4606_v13, %v7022_v51  ;;  %v3199_v26 = vrot.slane %v4606_v13, %v7023_v40 }
 0x561   :  { %v2984_v17 = vadd.f32 %v2976_v35, %v2952_v54  ;;  %v2986_v43 = vmax.f32 %v2982_v23, 0.0  ;;  %v3182_v32 = vadd.f32 %v3180_v5, %v3172_v11  ;;  %v5209_v11 = vld [vmem:[%s6965_s5 + $0x190] sm:$0xff]   ;;  %v5210_v5 = vld [vmem:[%s6965_s5 + $0x198] sm:$0xff]  }
 0x562   :  { %5027 = vmatpush3.bf16.msra.mxu0 %v5200_v14  ;;  %v3183_v54 = vadd.f32 %v3181_v19, %v3173_v20  ;;  %v5212_v20 = vld [vmem:[%s6965_s5 + $0x1a8] sm:$0xff]   ;;  %v5213_v19 = vld [vmem:[%s6965_s5 + $0x1b0] sm:$0xff]  }
 0x563   :  { %v2988_v7 = vmax.f32 %v2984_v17, 0.0  ;;  %v2993_v52 = vcombine.low %v2985_v34, %v2986_v43  ;;  %5028 = vmatprep.subr.bf16.mxu0 %v6553_v55 }
 0x565   :  { %v2994_v46 = vcombine.low %v2987_v0, %v2988_v7  ;;  %v3001_v39 = vrot.slane %v2993_v52, %v5961_v41  ;;  %v3220_v52 = vrot.slane %v4606_v13, %v7020_v8 }
 0x566   :  { %5029 = vmatpush3.bf16.msra.mxu0 %v5201_v1 }
 0x567   :  { %v3008_v36 = vrot.slane %v2994_v46, %v5961_v41  ;;  %5030 = vmatprep.subr.bf16.mxu0 %v6553_v55 }
 0x569   :  { %v3009_v56 = vcombine.low %v3001_v39, %v3008_v36  ;;  %v3230_v39 = vrot.slane %v4606_v13, %v7021_v29 }
 0x56a   :  { %5031 = vmatpush3.bf16.msra.mxu0 %v5202_v48 }
 0x56b   :  { %v3011_v45 = vpack.c.bf16 %v3009_v56, %v3009_v56  ;;  %5032 = vmatprep.subr.bf16.mxu0 %v6553_v55 }
 0x56d   :  { %5021 = vmatmul.mubr.bf16.vlgmr.msra.gmra.mrb[20].mxu1 %v3011_v45 }
 0x56e   :  { %5060 = vmatprep.mubr.msk.bf16.mxu1 %vm5277_vm8, %v6553_v55  ;;  %5033 = vmatpush3.bf16.msra.mxu0 %v5203_v16 }
 0x56f   :  { %5034 = vmatprep.subr.bf16.mxu0 %v6553_v55 }
 0x572   :  { %5035 = vmatpush3.bf16.msra.mxu0 %v5204_v33  ;;  %v4608_v33 = vld [vmem:[%s6963_s3 + $0x58] ss:$0 sm:$0xff] }
 0x573   :  { %5036 = vmatprep.subr.bf16.mxu0 %v6553_v55 }
 0x576   :  { %5037 = vmatpush3.bf16.msra.mxu0 %v5205_v49 }
 0x577   :  { %5038 = vmatprep.subr.bf16.mxu0 %v6553_v55 }
 0x57a   :  { %5039 = vmatpush3.bf16.msra.mxu0 %v5206_v58 }
 0x57b   :  { %5064 = vmatprep.subr.bf16.mxu0 %v6553_v55 }
 0x640   :  { %v3119_v31 = vpop.f32.mrb[20].mxu1 }
 0x641   :  { %v3120_v61 = vadd.f32 %v4595_v6, %v3119_v31  ;;  %v5022_v38 = vpop.f32.mrb[21].mxu1 }
 0x642   :  { %v3122_v22 = vpop.f32.mrb[22].mxu1 }
 0x643   :  { %v3125_v24 = vmax.f32 %v3120_v61, 0.0  ;;  %v5023_v47 = vpop.f32.mrb[23].mxu1  ;;  %v4610_v61 = vld [vmem:[%s6964_s4 + $0x5] ss:$0 sm:$0xff] }
 0x645   :  { %v3127_v9 = vcombine.high %v3125_v24, %v3125_v24  ;;  %v3134_v42 = vrot.slane %v3125_v24, %v5961_v41  ;;  %4604 = vst.sshfl [vmem:[#allocation7 + $0x5] sm:$0x3 pattern:$0x76325410] %v3125_v24 }
 0x647   :  { %v3141_v21 = vrot.slane %v3127_v9, %v5961_v41  ;;  %v3142_v62 = vcombine.high %v3134_v42, %v3134_v42  ;;  %4605 = vst.sshfl [vmem:[#allocation7 + $0x15] sm:$0x3 pattern:$0x76325410] %v3127_v9  ;;  %v3209_v41 = vrot.slane %v4606_v13, %v7024_v53 }
 0x649   :  { %v3143_v15 = vcombine.high %v3141_v21, %v3141_v21  ;;  %3150 = vst [vmem:[#allocation7 + $0x9] sm:$0x3] %v3142_v62  ;;  %v5207_v21 = vld [vmem:[%s6965_s5 + $0x180] sm:$0xff]   ;;  %v5208_v62 = vld [vmem:[%s6965_s5 + $0x188] sm:$0xff]  }
 0x64a   :  { %5045 = vmatpush3.bf16.msra.mxu1 %v5207_v21 }
 0x64b   :  { %3152 = vst [vmem:[#allocation7 + $0x19] sm:$0x3] %v3143_v15  ;;  %5046 = vmatprep.subr.bf16.mxu1 %v6553_v55  ;;  %v5211_v15 = vld [vmem:[%s6965_s5 + $0x1a0] sm:$0xff]  }
 0x64c   :  { %v3184_v35 = vld [vmem:[#allocation7 + $0x4] sm:$0x3]  ;;  %v3204_v34 = vld [vmem:[#allocation7 + $0x6] sm:$0x3] }
 0x64d   :  { %v3194_v60 = vld [vmem:[#allocation7 + $0x5] sm:$0x3]  ;;  %v3190_v23 = vmul.f32 %v3189_v63, %v3184_v35  ;;  %v3210_v45 = vmul.f32 %v3209_v41, %v3204_v34 }
 0x64e   :  { %v3185_v25 = vld [vmem:[#allocation7 + $0x14] sm:$0x3]  ;;  %v3200_v7 = vmul.f32 %v3199_v26, %v3194_v60  ;;  %v3205_v46 = vld [vmem:[#allocation7 + $0x16] sm:$0x3]  ;;  %5047 = vmatpush3.bf16.msra.mxu1 %v5208_v62  ;;  %v6708_v35 = vld [vmem:[%s6963_s3 + $0x60] sm:$0xff] }
 0x64f   :  { %v3195_v17 = vld [vmem:[#allocation7 + $0x15] sm:$0x3]  ;;  %v3191_v43 = vmul.f32 %v3189_v63, %v3185_v25  ;;  %v3192_v0 = vadd.f32 %v3190_v23, %v3182_v32  ;;  %v3211_v53 = vmul.f32 %v3209_v41, %v3205_v46  ;;  %5048 = vmatprep.subr.bf16.mxu1 %v6553_v55  ;;  %v5214_v63 = vld [vmem:[%s6965_s5 + $0x1b8] sm:$0xff]   ;;  %v5278_v32 = vmov 1966171168   ;;  %v7025_v34 = vld [vmem:[#allocation15_spill] sm:$0xff] }
 0x650   :  { %v3215_v51 = vld [vmem:[#allocation7 + $0x8] sm:$0x3]  ;;  %v3201_v40 = vmul.f32 %v3199_v26, %v3195_v17  ;;  %v3235_v8 = vld [vmem:[#allocation7 + $0xa] sm:$0x3]  ;;  %v3383_v26 = vunpack.c.l.s4 %v5278_v32  ;;  %v4628_v23 = vld [vmem:[%s6966_s6 + $0x5] ss:$0 sm:$0xff] }
 0x651   :  { %v3193_v36 = vadd.f32 %v3191_v43, %v3183_v54  ;;  %v3202_v56 = vadd.f32 %v3200_v7, %v3192_v0  ;;  %v3225_v14 = vld [vmem:[#allocation7 + $0x9] sm:$0x3]  ;;  %v3221_v16 = vmul.f32 %v3220_v52, %v3215_v51  ;;  %v3241_v27 = vmul.f32 %v4608_v33, %v3235_v8  ;;  %v3412_v41 = vld [vmem:[#allocation8] sm:$0x1]  ;;  %v3416_v25 = vld [vmem:[#allocation8 + $0x1] sm:$0x1] }
 0x652   :  { %v3216_v4 = vld [vmem:[#allocation7 + $0x18] sm:$0x3]  ;;  %v3231_v29 = vmul.f32 %v3230_v39, %v3225_v14  ;;  %v3236_v13 = vld [vmem:[#allocation7 + $0x1a] sm:$0x3]  ;;  %5049 = vmatpush3.bf16.msra.mxu1 %v5209_v11  ;;  %v3384_v60 = vunpack.c.0.s8 %v3383_v26  ;;  %v3419_v54 = vrot.slane %v6708_v35, 1  ;;  %v3414_v51 = vmul.f32 %v6708_v35, %v3412_v41 }
 0x653   :  { %v3203_v1 = vadd.f32 %v3201_v40, %v3193_v36  ;;  %v3212_v48 = vadd.f32 %v3210_v45, %v3202_v56  ;;  %v3226_v49 = vld [vmem:[#allocation7 + $0x19] sm:$0x3]  ;;  %v3222_v6 = vmul.f32 %v3220_v52, %v3216_v4  ;;  %v3242_v22 = vmul.f32 %v4608_v33, %v3236_v13  ;;  %5050 = vmatprep.subr.bf16.mxu1 %v6553_v55  ;;  %v3413_v0 = vld [vmem:[#allocation8 + $0xc] sm:$0x1]  ;;  %v3417_v7 = vld [vmem:[#allocation8 + $0xd] sm:$0x1] }
 0x654   :  { %v3232_v31 = vmul.f32 %v3230_v39, %v3226_v49  ;;  %v6715_v43 = vsub.s32 %v3384_v60, %v7025_v34  ;;  %v3421_v39 = vmul.f32 %v3419_v54, %v3416_v25  ;;  %v3427_v36 = vrot.slane %v6708_v35, 2  ;;  %v3425_v56 = vld [vmem:[#allocation8 + $0x2] sm:$0x1]  ;;  %v3433_v8 = vld [vmem:[#allocation8 + $0x4] sm:$0x1] }
 0x655   :  { %v3213_v58 = vadd.f32 %v3211_v53, %v3203_v1  ;;  %v3223_v12 = vadd.f32 %v3221_v16, %v3212_v48  ;;  %v3415_v14 = vmul.f32 %v6708_v35, %v3413_v0  ;;  %v3422_v1 = vmul.f32 %v3419_v54, %v3417_v7  ;;  %v3426_v53 = vld [vmem:[#allocation8 + $0xe] sm:$0x1]  ;;  %v4640_v11 = vld [vmem:[%s6963_s3 + $0x68] sm:$0x1]  ;;  %v3475_v26 = vld [vmem:[#allocation8 + $0x16] sm:$0x1] }
 0x656   :  { %5051 = vmatpush3.bf16.msra.mxu1 %v5210_v5  ;;  %v3423_v16 = vadd.f32 %v3421_v39, %v3414_v51  ;;  %v3429_v33 = vmul.f32 %v3427_v36, %v3425_v56  ;;  %v3435_v49 = vrot.slane %v6708_v35, 3  ;;  %v3467_v5 = vld [vmem:[#allocation8 + $0x15] sm:$0x1]  ;;  %v4642_v34 = vld [vmem:[%s6964_s4 + $0x6] ss:$0 sm:$0xff] }
 0x657   :  { %v3224_v44 = vadd.f32 %v3222_v6, %v3213_v58  ;;  %v3233_v57 = vadd.f32 %v3231_v29, %v3223_v12  ;;  %5052 = vmatprep.subr.bf16.mxu1 %v6553_v55  ;;  %v3424_v6 = vadd.f32 %v3422_v1, %v3415_v14  ;;  %v3430_v12 = vmul.f32 %v3427_v36, %v3426_v53  ;;  %v3434_v29 = vld [vmem:[#allocation8 + $0x10] sm:$0x1] }
 0x658   :  { %v3431_v13 = vadd.f32 %v3429_v33, %v3423_v16  ;;  %v5216_v16 = vld [vmem:[%s6965_s5 + $0x1c8] sm:$0xff]   ;;  %v5217_v33 = vld [vmem:[%s6965_s5 + $0x1d0] sm:$0xff]  }
 0x659   :  { %v3234_v38 = vadd.f32 %v3232_v31, %v3224_v44  ;;  %v3243_v18 = vadd.f32 %v3241_v27, %v3233_v57  ;;  %v3437_v44 = vmul.f32 %v3435_v49, %v3433_v8  ;;  %v3432_v31 = vadd.f32 %v3430_v12, %v3424_v6  ;;  %v5219_v8 = vld [vmem:[%s6965_s5 + $0x1e0] sm:$0xff]   ;;  %v5221_v6 = vld [vmem:[%s6965_s5 + $0x1f0] sm:$0xff]   ;;  %v5222_v12 = vld [vmem:[%s6965_s5 + $0x1f8] sm:$0xff]  }
 0x65a   :  { %5053 = vmatpush3.bf16.msra.mxu1 %v5211_v15  ;;  %v3438_v57 = vmul.f32 %v3435_v49, %v3434_v29  ;;  %v3443_v27 = vrot.slane %v6708_v35, 4  ;;  %v3474_v15 = vld [vmem:[#allocation8 + $0xa] sm:$0x1]  ;;  %v5218_v49 = vld [vmem:[%s6965_s5 + $0x1d8] sm:$0xff]   ;;  %v6770_v29 = vld [vmem:[%s6963_s3 + $0x70] sm:$0xff] }
 0x65b   :  { %v3244_v50 = vadd.f32 %v3242_v22, %v3234_v38  ;;  %v3253_v24 = vadd.f32 %v4610_v61, %v3243_v18  ;;  %5054 = vmatprep.subr.bf16.mxu1 %v6553_v55  ;;  %v3449_v38 = vld [vmem:[#allocation8 + $0x6] sm:$0x1]  ;;  %v3439_v22 = vadd.f32 %v3437_v44, %v3431_v13  ;;  %v3460_v18 = vrot.slane %v6708_v35, 6 }
 0x65c   :  { %v3654_v13 = vrot.slane %v6770_v29, 1  ;;  %v4660_v44 = vld [vmem:[%s6966_s6 + $0x6] ss:$0 sm:$0xff] }
 0x65d   :  { %v3254_v47 = vadd.f32 %v4610_v61, %v3244_v50  ;;  %v3255_v3 = vmax.f32 %v3253_v24, 0.0  ;;  %v3451_v61 = vrot.slane %v6708_v35, 5  ;;  %v3450_v24 = vld [vmem:[#allocation8 + $0x12] sm:$0x1] }
 0x65e   :  { %5055 = vmatpush3.bf16.msra.mxu1 %v5212_v20 }
 0x65f   :  { %v3256_v30 = vmax.f32 %v3254_v47, 0.0  ;;  %v3257_v10 = vpack.c.bf16 %v3255_v3, %v3255_v3  ;;  %5056 = vmatprep.subr.bf16.mxu1 %v6553_v55  ;;  %v3458_v47 = vld [vmem:[#allocation8 + $0x8] sm:$0x1]  ;;  %v3440_v3 = vadd.f32 %v3438_v57, %v3432_v31  ;;  %v3454_v21 = vmul.f32 %v3451_v61, %v3450_v24  ;;  %v3647_v31 = vld [vmem:[#allocation9] sm:$0x1] }
 0x660   :  { %v3462_v62 = vmul.f32 %v3460_v18, %v3458_v47  ;;  %v3651_v57 = vld [vmem:[#allocation9 + $0x1] sm:$0x1]  ;;  %v3662_v47 = vrot.slane %v6770_v29, 2 }
 0x661   :  { %v3258_v2 = vpack.c.bf16 %v3256_v30, %v3256_v30  ;;  %v3286_v42 = vunpack.c.l.b16 %v3257_v10  ;;  %v3453_v10 = vmul.f32 %v3451_v61, %v3449_v38  ;;  %v3648_v61 = vld [vmem:[#allocation9 + $0xc] sm:$0x1]  ;;  %v3652_v38 = vld [vmem:[#allocation9 + $0xd] sm:$0x1]  ;;  %v3656_v24 = vmul.f32 %v3654_v13, %v3651_v57 }
 0x662   :  { %5057 = vmatpush3.bf16.msra.mxu1 %v5213_v19 }
 0x663   :  { %v3287_v9 = vunpack.c.l.b16 %v3258_v2  ;;  %5058 = vmatprep.subr.bf16.mxu1 %v6553_v55  ;;  %v3468_v2 = vrot.slane %v6708_v35, 7 }
 0x665   :  { %v3288_v37 = vrot.slane %v3287_v9, 7  ;;  %v3471_v54 = vmul.f32 %v3468_v2, %v3467_v5 }
 0x666   :  { %5059 = vmatpush3.bf16.msra.mxu1 %v5214_v63 }
 0x667   :  { %v3289_v28 = vsel %vm1761_vm1, %v3288_v37, %v3286_v42  ;;  %5084 = vmatprep.subr.bf16.mxu1 %v6553_v55  ;;  %v3459_v42 = vld [vmem:[#allocation8 + $0x14] sm:$0x1]  ;;  %v3466_v37 = vld [vmem:[#allocation8 + $0x9] sm:$0x1] }
 0x668   :  { %v3290_v59 = vpack.c.b16 %v3289_v28, %v3289_v28  ;;  %v3463_v63 = vmul.f32 %v3460_v18, %v3459_v42  ;;  %v3470_v32 = vmul.f32 %v3468_v2, %v3466_v37  ;;  %v3657_v42 = vmul.f32 %v3654_v13, %v3652_v38  ;;  %v3661_v37 = vld [vmem:[#allocation9 + $0xe] sm:$0x1] }
 0x66a   :  { %5041 = vmatmul.mubr.bf16.vlgmr.msra.gmra.mrb[24].mxu0 %v3290_v59 }
 0x66b   :  { %5080 = vmatprep.mubr.msk.bf16.mxu0 %vm5277_vm8, %v6553_v55 }
 0x73d   :  { %v3374_v17 = vpop.f32.mrb[24].mxu0 }
 0x73e   :  { %v3375_v52 = vadd.f32 %v4628_v23, %v3374_v17  ;;  %v5042_v46 = vpop.f32.mrb[25].mxu0  ;;  %v3476_v23 = vmul.f32 %v4640_v11, %v3474_v15  ;;  %v3477_v17 = vmul.f32 %v4640_v11, %v3475_v26  ;;  %v3668_v11 = vld [vmem:[#allocation9 + $0x4] sm:$0x1] }
 0x73f   :  { %v3377_v40 = vpop.f32.mrb[26].mxu0 }
 0x740   :  { %v3380_v45 = vmax.f32 %v3375_v52, 0.0  ;;  %v5043_v4 = vpop.f32.mrb[27].mxu0 }
 0x742   :  { %v3388_v48 = vrot.slane %v3380_v45, %v6715_v43 }
 0x744   :  { %v3389_v58 = vcombine.high %v3388_v48, %v3388_v48  ;;  %4637 = vst.sshfl [vmem:[#allocation8 + $0x5] sm:$0x1 pattern:$0x73625140] %v3388_v48  ;;  %v5215_v48 = vld [vmem:[%s6965_s5 + $0x1c0] sm:$0xff]  }
 0x745   :  { %5065 = vmatpush3.bf16.msra.mxu0 %v5215_v48  ;;  %v3709_v48 = vld [vmem:[#allocation9 + $0xa] sm:$0x1] }
 0x746   :  { %4638 = vst.sshfl [vmem:[#allocation8 + $0x11] sm:$0x1 pattern:$0x73625140] %v3389_v58  ;;  %5066 = vmatprep.subr.bf16.mxu0 %v6553_v55  ;;  %v5220_v58 = vld [vmem:[%s6965_s5 + $0x1e8] sm:$0xff]  }
 0x749   :  { %5067 = vmatpush3.bf16.msra.mxu0 %v5216_v16 }
 0x74a   :  { %5068 = vmatprep.subr.bf16.mxu0 %v6553_v55 }
 0x74b   :  { %v3441_v50 = vld [vmem:[#allocation8 + $0x5] sm:$0x1] }
 0x74c   :  { %v3445_v30 = vmul.f32 %v3443_v27, %v3441_v50  ;;  %v3649_v50 = vmul.f32 %v6770_v29, %v3647_v31 }
 0x74d   :  { %v3442_v9 = vld [vmem:[#allocation8 + $0x11] sm:$0x1]  ;;  %5069 = vmatpush3.bf16.msra.mxu0 %v5217_v33 }
 0x74e   :  { %v3446_v28 = vmul.f32 %v3443_v27, %v3442_v9  ;;  %v3447_v59 = vadd.f32 %v3445_v30, %v3439_v22  ;;  %5070 = vmatprep.subr.bf16.mxu0 %v6553_v55  ;;  %v3660_v30 = vld [vmem:[#allocation9 + $0x2] sm:$0x1]  ;;  %v3650_v9 = vmul.f32 %v6770_v29, %v3648_v61 }
 0x750   :  { %v3448_v20 = vadd.f32 %v3446_v28, %v3440_v3  ;;  %v3455_v19 = vadd.f32 %v3453_v10, %v3447_v59  ;;  %v3658_v59 = vadd.f32 %v3656_v24, %v3649_v50  ;;  %v3659_v15 = vadd.f32 %v3657_v42, %v3650_v9 }
 0x751   :  { %5071 = vmatpush3.bf16.msra.mxu0 %v5218_v49 }
 0x752   :  { %v3456_v60 = vadd.f32 %v3454_v21, %v3448_v20  ;;  %v3464_v35 = vadd.f32 %v3462_v62, %v3455_v19  ;;  %5072 = vmatprep.subr.bf16.mxu0 %v6553_v55  ;;  %v3664_v21 = vmul.f32 %v3662_v47, %v3660_v30  ;;  %v3670_v62 = vrot.slane %v6770_v29, 3  ;;  %v3669_v19 = vld [vmem:[#allocation9 + $0x10] sm:$0x1] }
 0x753   :  { %v3665_v20 = vmul.f32 %v3662_v47, %v3661_v37 }
 0x754   :  { %v3465_v41 = vadd.f32 %v3463_v63, %v3456_v60  ;;  %v3472_v25 = vadd.f32 %v3470_v32, %v3464_v35  ;;  %v3666_v63 = vadd.f32 %v3664_v21, %v3658_v59  ;;  %v3672_v32 = vmul.f32 %v3670_v62, %v3668_v11  ;;  %v5224_v59 = vld [vmem:[%s6965_s5 + $0x208] sm:$0xff]   ;;  %v5225_v21 = vld [vmem:[%s6965_s5 + $0x210] sm:$0xff]   ;;  %v5226_v11 = vld [vmem:[%s6965_s5 + $0x218] sm:$0xff]  }
 0x755   :  { %5073 = vmatpush3.bf16.msra.mxu0 %v5219_v8  ;;  %v3667_v26 = vadd.f32 %v3665_v20, %v3659_v15  ;;  %v3673_v60 = vmul.f32 %v3670_v62, %v3669_v19  ;;  %v3678_v35 = vrot.slane %v6770_v29, 4  ;;  %v6804_v62 = vld [vmem:[#allocation3 + $0x90] sm:$0xff]  ;;  %v5230_v20 = vld [vmem:[%s6965_s5 + $0x238] sm:$0xff]   ;;  %v6831_v19 = vld [vmem:[%s6963_s3 + $0x80] sm:$0xff] }
 0x756   :  { %v3473_v0 = vadd.f32 %v3471_v54, %v3465_v41  ;;  %v3478_v7 = vadd.f32 %v3476_v23, %v3472_v25  ;;  %5074 = vmatprep.subr.bf16.mxu0 %v6553_v55  ;;  %v3686_v54 = vrot.slane %v6770_v29, 5  ;;  %v3684_v23 = vld [vmem:[#allocation9 + $0x6] sm:$0x1]  ;;  %v3674_v41 = vadd.f32 %v3672_v32, %v3666_v63  ;;  %v5229_v15 = vld [vmem:[%s6965_s5 + $0x230] sm:$0xff]   ;;  %v4692_v32 = vld [vmem:[%s6966_s6 + $0x7] ss:$0 sm:$0xff] }
 0x757   :  { %v3695_v25 = vrot.slane %v6770_v29, 6  ;;  %v3889_v63 = vrot.slane %v6831_v19, 1 }
 0x758   :  { %v3479_v52 = vadd.f32 %v3477_v17, %v3473_v0  ;;  %v3488_v46 = vadd.f32 %v4642_v34, %v3478_v7  ;;  %v3693_v0 = vld [vmem:[#allocation9 + $0x8] sm:$0x1]  ;;  %v3675_v7 = vadd.f32 %v3673_v60, %v3667_v26  ;;  %v3882_v26 = vld [vmem:[#allocation10] sm:$0x1]  ;;  %v3886_v60 = vld [vmem:[#allocation10 + $0x1] sm:$0x1] }
 0x759   :  { %5075 = vmatpush3.bf16.msra.mxu0 %v5220_v58  ;;  %v3710_v58 = vld [vmem:[#allocation9 + $0x16] sm:$0x1] }
 0x75a   :  { %v3489_v51 = vadd.f32 %v4642_v34, %v3479_v52  ;;  %v3490_v39 = vmax.f32 %v3488_v46, 0.0  ;;  %5076 = vmatprep.subr.bf16.mxu0 %v6553_v55  ;;  %v3685_v34 = vld [vmem:[#allocation9 + $0x12] sm:$0x1]  ;;  %v3688_v46 = vmul.f32 %v3686_v54, %v3684_v23  ;;  %v3887_v23 = vld [vmem:[#allocation10 + $0xd] sm:$0x1] }
 0x75c   :  { %v3491_v36 = vmax.f32 %v3489_v51, 0.0  ;;  %v3492_v40 = vpack.c.bf16 %v3490_v39, %v3490_v39  ;;  %v3703_v51 = vrot.slane %v6770_v29, 7 }
 0x75d   :  { %5077 = vmatpush3.bf16.msra.mxu0 %v5221_v6 }
 0x75e   :  { %v3493_v56 = vpack.c.bf16 %v3491_v36, %v3491_v36  ;;  %v3521_v4 = vunpack.c.l.b16 %v3492_v40  ;;  %5078 = vmatprep.subr.bf16.mxu0 %v6553_v55  ;;  %v3694_v36 = vld [vmem:[#allocation9 + $0x14] sm:$0x1]  ;;  %v3701_v40 = vld [vmem:[#allocation9 + $0x9] sm:$0x1] }
 0x75f   :  { %v3698_v49 = vmul.f32 %v3695_v25, %v3694_v36  ;;  %v3705_v8 = vmul.f32 %v3703_v51, %v3701_v40  ;;  %v3892_v36 = vmul.f32 %v3889_v63, %v3887_v23  ;;  %v3896_v40 = vld [vmem:[#allocation10 + $0xe] sm:$0x1] }
 0x760   :  { %v3522_v45 = vunpack.c.l.b16 %v3493_v56 }
 0x761   :  { %5079 = vmatpush3.bf16.msra.mxu0 %v5222_v12 }
 0x762   :  { %v3523_v14 = vrot.slane %v3522_v45, 7  ;;  %5104 = vmatprep.subr.bf16.mxu0 %v6553_v55 }
 0x764   :  { %v3524_v1 = vsel %vm1761_vm1, %v3523_v14, %v3521_v4  ;;  %v3689_v4 = vmul.f32 %v3686_v54, %v3685_v34  ;;  %v3697_v14 = vmul.f32 %v3695_v25, %v3693_v0  ;;  %v3883_v54 = vld [vmem:[#allocation10 + $0xc] sm:$0x1]  ;;  %v3891_v34 = vmul.f32 %v3889_v63, %v3886_v60 }
 0x765   :  { %v3525_v53 = vpack.c.b16 %v3524_v1, %v3524_v1  ;;  %v4672_v1 = vld [vmem:[%s6963_s3 + $0x78] sm:$0x1]  ;;  %v3897_v0 = vrot.slane %v6831_v19, 2 }
 0x766   :  { %v3711_v13 = vmul.f32 %v4672_v1, %v3709_v48  ;;  %v3712_v57 = vmul.f32 %v4672_v1, %v3710_v58  ;;  %v3903_v1 = vld [vmem:[#allocation10 + $0x4] sm:$0x1] }
 0x767   :  { %5061 = vmatmul.mubr.bf16.vlgmr.msra.gmra.mrb[24].mxu1 %v3525_v53  ;;  %v3702_v53 = vld [vmem:[#allocation9 + $0x15] sm:$0x1] }
 0x768   :  { %5100 = vmatprep.mubr.msk.bf16.mxu1 %vm5277_vm8, %v6553_v55  ;;  %v3706_v29 = vmul.f32 %v3703_v51, %v3702_v53 }
 0x83a   :  { %v3609_v27 = vpop.f32.mrb[24].mxu1 }
 0x83b   :  { %v3610_v22 = vadd.f32 %v4660_v44, %v3609_v27  ;;  %v5062_v18 = vpop.f32.mrb[25].mxu1  ;;  %v4674_v27 = vld [vmem:[%s6964_s4 + $0x7] ss:$0 sm:$0xff] }
 0x83c   :  { %v3612_v3 = vpop.f32.mrb[26].mxu1 }
 0x83d   :  { %v3615_v10 = vmax.f32 %v3610_v22, 0.0  ;;  %v5063_v2 = vpop.f32.mrb[27].mxu1 }
 0x83f   :  { %v3623_v28 = vrot.slane %v3615_v10, %v6715_v43 }
 0x841   :  { %v3624_v5 = vcombine.high %v3623_v28, %v3623_v28  ;;  %4669 = vst.sshfl [vmem:[#allocation9 + $0x5] sm:$0x1 pattern:$0x73625140] %v3623_v28  ;;  %v5223_v28 = vld [vmem:[%s6965_s5 + $0x200] sm:$0xff]  }
 0x842   :  { %5085 = vmatpush3.bf16.msra.mxu1 %v5223_v28  ;;  %v3944_v28 = vld [vmem:[#allocation10 + $0xa] sm:$0x1] }
 0x843   :  { %4670 = vst.sshfl [vmem:[#allocation9 + $0x11] sm:$0x1 pattern:$0x73625140] %v3624_v5  ;;  %5086 = vmatprep.subr.bf16.mxu1 %v6553_v55  ;;  %v5228_v5 = vld [vmem:[%s6965_s5 + $0x228] sm:$0xff]  }
 0x846   :  { %5087 = vmatpush3.bf16.msra.mxu1 %v5224_v59 }
 0x847   :  { %5088 = vmatprep.subr.bf16.mxu1 %v6804_v62 }
 0x848   :  { %v3676_v17 = vld [vmem:[#allocation9 + $0x5] sm:$0x1] }
 0x849   :  { %v3680_v52 = vmul.f32 %v3678_v35, %v3676_v17  ;;  %v3884_v17 = vmul.f32 %v6831_v19, %v3882_v26 }
 0x84a   :  { %v3677_v39 = vld [vmem:[#allocation9 + $0x11] sm:$0x1]  ;;  %5089 = vmatpush3.bf16.msra.mxu1 %v5225_v21 }
 0x84b   :  { %v3681_v56 = vmul.f32 %v3678_v35, %v3677_v39  ;;  %v3682_v45 = vadd.f32 %v3680_v52, %v3674_v41  ;;  %5090 = vmatprep.subr.bf16.mxu1 %v6804_v62  ;;  %v3895_v52 = vld [vmem:[#allocation10 + $0x2] sm:$0x1]  ;;  %v3885_v39 = vmul.f32 %v6831_v19, %v3883_v54 }
 0x84d   :  { %v3683_v16 = vadd.f32 %v3681_v56, %v3675_v7  ;;  %v3690_v33 = vadd.f32 %v3688_v46, %v3682_v45  ;;  %v3893_v45 = vadd.f32 %v3891_v34, %v3884_v17  ;;  %v3894_v48 = vadd.f32 %v3892_v36, %v3885_v39 }
 0x84e   :  { %5091 = vmatpush3.bf16.msra.mxu1 %v5226_v11 }
 0x84f   :  { %v3691_v6 = vadd.f32 %v3689_v4, %v3683_v16  ;;  %v3699_v12 = vadd.f32 %v3697_v14, %v3690_v33  ;;  %5092 = vmatprep.subr.bf16.mxu1 %v6804_v62  ;;  %v3899_v4 = vmul.f32 %v3897_v0, %v3895_v52  ;;  %v3905_v14 = vrot.slane %v6831_v19, 3  ;;  %v3904_v33 = vld [vmem:[#allocation10 + $0x10] sm:$0x1] }
 0x850   :  { %v3900_v16 = vmul.f32 %v3897_v0, %v3896_v40 }
 0x851   :  { %v3700_v44 = vadd.f32 %v3698_v49, %v3691_v6  ;;  %v3707_v31 = vadd.f32 %v3705_v8, %v3699_v12  ;;  %v3901_v49 = vadd.f32 %v3899_v4, %v3893_v45  ;;  %v3907_v8 = vmul.f32 %v3905_v14, %v3903_v1  ;;  %v5232_v45 = vld [vmem:[%s6965_s5 + $0x248] sm:$0xff]   ;;  %v5233_v4 = vld [vmem:[%s6965_s5 + $0x250] sm:$0xff]   ;;  %v5235_v1 = vld [vmem:[%s6965_s5 + $0x260] sm:$0xff]  }
 0x852   :  { %v3902_v58 = vadd.f32 %v3900_v16, %v3894_v48  ;;  %v3908_v6 = vmul.f32 %v3905_v14, %v3904_v33  ;;  %v3913_v12 = vrot.slane %v6831_v19, 4  ;;  %v5234_v14 = vld [vmem:[%s6965_s5 + $0x258] sm:$0xff]   ;;  %v5237_v48 = vld [vmem:[%s6965_s5 + $0x270] sm:$0xff]   ;;  %v5239_v33 = vld [vmem:[%s6967_s7] sm:$0xff]  }
 0x853   :  { %v3708_v61 = vadd.f32 %v3706_v29, %v3700_v44  ;;  %v3713_v38 = vadd.f32 %v3711_v13, %v3707_v31  ;;  %v3921_v29 = vrot.slane %v6831_v19, 5  ;;  %v3919_v13 = vld [vmem:[#allocation10 + $0x6] sm:$0x1]  ;;  %v3909_v44 = vadd.f32 %v3907_v8, %v3901_v49  ;;  %v5238_v16 = vld [vmem:[%s6965_s5 + $0x278] sm:$0xff]   ;;  %v5240_v49 = vld [vmem:[%s6967_s7 + $0x8] sm:$0xff]  }
 0x854   :  { %v3930_v31 = vrot.slane %v6831_v19, 6  ;;  %v5241_v8 = vld [vmem:[%s6967_s7 + $0x10] sm:$0xff]  }
 0x855   :  { %v3714_v22 = vadd.f32 %v3712_v57, %v3708_v61  ;;  %v3723_v18 = vadd.f32 %v4674_v27, %v3713_v38  ;;  %v3928_v61 = vld [vmem:[#allocation10 + $0x8] sm:$0x1]  ;;  %v3910_v38 = vadd.f32 %v3908_v6, %v3902_v58  ;;  %v5243_v6 = vld [vmem:[%s6967_s7 + $0x20] sm:$0xff]  }
 0x856   :  { %v5242_v58 = vld [vmem:[%s6967_s7 + $0x18] sm:$0xff]  }
 0x857   :  { %v3724_v50 = vadd.f32 %v4674_v27, %v3714_v22  ;;  %v3725_v24 = vmax.f32 %v3723_v18, 0.0  ;;  %v3920_v27 = vld [vmem:[#allocation10 + $0x12] sm:$0x1]  ;;  %v3923_v18 = vmul.f32 %v3921_v29, %v3919_v13 }
 0x859   :  { %v3726_v47 = vmax.f32 %v3724_v50, 0.0  ;;  %v3727_v3 = vpack.c.bf16 %v3725_v24, %v3725_v24  ;;  %v3938_v50 = vrot.slane %v6831_v19, 7 }
 0x85b   :  { %v3728_v30 = vpack.c.bf16 %v3726_v47, %v3726_v47  ;;  %v3756_v2 = vunpack.c.l.b16 %v3727_v3  ;;  %v3929_v47 = vld [vmem:[#allocation10 + $0x14] sm:$0x1]  ;;  %v3936_v3 = vld [vmem:[#allocation10 + $0x9] sm:$0x1] }
 0x85c   :  { %v3933_v11 = vmul.f32 %v3930_v31, %v3929_v47 }
 0x85d   :  { %v3757_v10 = vunpack.c.l.b16 %v3728_v30 }
 0x85f   :  { %v3758_v9 = vrot.slane %v3757_v10, 7 }
 0x861   :  { %v3759_v42 = vsel %vm1761_vm1, %v3758_v9, %v3756_v2  ;;  %v3924_v2 = vmul.f32 %v3921_v29, %v3920_v27  ;;  %v3932_v9 = vmul.f32 %v3930_v31, %v3928_v61  ;;  %v6913_v29 = vld [vmem:[%s6963_s3 + $0x90] sm:$0xff]  ;;  %v4117_v31 = vld [vmem:[#allocation11] sm:$0x1] }
 0x862   :  { %v3760_v37 = vpack.c.b16 %v3759_v42, %v3759_v42  ;;  %v4704_v42 = vld [vmem:[%s6963_s3 + $0x88] sm:$0x1]  ;;  %v4124_v13 = vrot.slane %v6913_v29, 1  ;;  %v4118_v61 = vld [vmem:[#allocation11 + $0xc] sm:$0x1]  ;;  %v4132_v47 = vrot.slane %v6913_v29, 2 }
 0x863   :  { %v3946_v63 = vmul.f32 %v4704_v42, %v3944_v28 }
 0x864   :  { %5081 = vmatmul.mubr.bf16.vlgmr.msra.gmra.mrb[28].mxu0 %v3760_v37  ;;  %v3937_v37 = vld [vmem:[#allocation10 + $0x15] sm:$0x1] }
 0x865   :  { %5120 = vmatprep.mubr.msk.bf16.mxu0 %vm5277_vm8, %v6553_v55  ;;  %v5227_v55 = vld [vmem:[%s6965_s5 + $0x220] sm:$0xff]   ;;  %v3941_v19 = vmul.f32 %v3938_v50, %v3937_v37  ;;  %v4131_v37 = vld [vmem:[#allocation11 + $0xe] sm:$0x1] }
 0x866   :  { %5093 = vmatpush3.bf16.msra.mxu1 %v5227_v55  ;;  %v3940_v55 = vmul.f32 %v3938_v50, %v3936_v3  ;;  %v4119_v50 = vmul.f32 %v6913_v29, %v4117_v31 }
 0x867   :  { %5094 = vmatprep.subr.bf16.mxu1 %v6804_v62 }
 0x86a   :  { %5095 = vmatpush3.bf16.msra.mxu1 %v5228_v5  ;;  %v3945_v5 = vld [vmem:[#allocation10 + $0x16] sm:$0x1] }
 0x86b   :  { %5096 = vmatprep.subr.bf16.mxu1 %v6804_v62  ;;  %v3947_v60 = vmul.f32 %v4704_v42, %v3945_v5 }
 0x86e   :  { %5097 = vmatpush3.bf16.msra.mxu1 %v5229_v15 }
 0x86f   :  { %5098 = vmatprep.subr.bf16.mxu1 %v6804_v62 }
 0x872   :  { %5099 = vmatpush3.bf16.msra.mxu1 %v5230_v20 }
 0x873   :  { %5124 = vmatprep.subr.bf16.mxu1 %v6804_v62 }
 0x937   :  { %v3844_v35 = vpop.f32.mrb[28].mxu0 }
 0x938   :  { %v3845_v41 = vadd.f32 %v4692_v32, %v3844_v35  ;;  %v5082_v25 = vpop.f32.mrb[29].mxu0  ;;  %v4706_v35 = vld [vmem:[%s6964_s4 + $0x8] ss:$0 sm:$0xff] }
 0x939   :  { %v3847_v7 = vpop.f32.mrb[30].mxu0 }
 0x93a   :  { %v3850_v46 = vmax.f32 %v3845_v41, 0.0  ;;  %v5083_v51 = vpop.f32.mrb[31].mxu0 }
 0x93c   :  { %v3858_v56 = vrot.slane %v3850_v46, %v6715_v43 }
 0x93e   :  { %v3859_v53 = vcombine.high %v3858_v56, %v3858_v56  ;;  %4701 = vst.sshfl [vmem:[#allocation10 + $0x5] sm:$0x1 pattern:$0x73625140] %v3858_v56  ;;  %v5231_v56 = vld [vmem:[%s6965_s5 + $0x240] sm:$0xff]  }
 0x93f   :  { %5105 = vmatpush3.bf16.msra.mxu0 %v5231_v56 }
 0x940   :  { %4702 = vst.sshfl [vmem:[#allocation10 + $0x11] sm:$0x1 pattern:$0x73625140] %v3859_v53  ;;  %5106 = vmatprep.subr.bf16.mxu0 %v6804_v62  ;;  %v5236_v53 = vld [vmem:[%s6965_s5 + $0x268] sm:$0xff]  }
 0x943   :  { %5107 = vmatpush3.bf16.msra.mxu0 %v5232_v45 }
 0x944   :  { %5108 = vmatprep.subr.bf16.mxu0 %v6804_v62 }
 0x945   :  { %v3911_v57 = vld [vmem:[#allocation10 + $0x5] sm:$0x1] }
 0x946   :  { %v3915_v22 = vmul.f32 %v3913_v12, %v3911_v57  ;;  %v4121_v57 = vld [vmem:[#allocation11 + $0x1] sm:$0x1] }
 0x947   :  { %v3912_v24 = vld [vmem:[#allocation10 + $0x11] sm:$0x1]  ;;  %5109 = vmatpush3.bf16.msra.mxu0 %v5233_v4 }
 0x948   :  { %v3916_v30 = vmul.f32 %v3913_v12, %v3912_v24  ;;  %v3917_v10 = vadd.f32 %v3915_v22, %v3909_v44  ;;  %5110 = vmatprep.subr.bf16.mxu0 %v6804_v62  ;;  %v5244_v12 = vld [vmem:[%s6967_s7 + $0x28] sm:$0xff]   ;;  %v4126_v24 = vmul.f32 %v4124_v13, %v4121_v57 }
 0x949   :  { %v4724_v44 = vld [vmem:[%s6966_s6 + $0x8] ss:$0 sm:$0xff]  ;;  %v4738_v57 = vld [vmem:[%s6964_s4 + $0x9] ss:$0 sm:$0xff] }
 0x94a   :  { %v3918_v59 = vadd.f32 %v3916_v30, %v3910_v38  ;;  %v3925_v21 = vadd.f32 %v3923_v18, %v3917_v10  ;;  %v4122_v38 = vld [vmem:[#allocation11 + $0xd] sm:$0x1]  ;;  %v4130_v30 = vld [vmem:[#allocation11 + $0x2] sm:$0x1] }
 0x94b   :  { %5111 = vmatpush3.bf16.msra.mxu0 %v5234_v14  ;;  %v4127_v42 = vmul.f32 %v4124_v13, %v4122_v38  ;;  %v4736_v14 = vld [vmem:[%s6963_s3 + $0x98] sm:$0x1] }
 0x94c   :  { %v3926_v15 = vadd.f32 %v3924_v2, %v3918_v59  ;;  %v3934_v20 = vadd.f32 %v3932_v9, %v3925_v21  ;;  %5112 = vmatprep.subr.bf16.mxu0 %v6804_v62  ;;  %v4120_v9 = vmul.f32 %v6913_v29, %v4118_v61  ;;  %v4128_v59 = vadd.f32 %v4126_v24, %v4119_v50 }
 0x94d   :  { %v4134_v21 = vmul.f32 %v4132_v47, %v4130_v30 }
 0x94e   :  { %v3935_v32 = vadd.f32 %v3933_v11, %v3926_v15  ;;  %v3942_v26 = vadd.f32 %v3940_v55, %v3934_v20  ;;  %v4140_v11 = vrot.slane %v6913_v29, 3  ;;  %v4138_v55 = vld [vmem:[#allocation11 + $0x4] sm:$0x1]  ;;  %v4129_v15 = vadd.f32 %v4127_v42, %v4120_v9 }
 0x94f   :  { %5113 = vmatpush3.bf16.msra.mxu0 %v5235_v1  ;;  %v4135_v20 = vmul.f32 %v4132_v47, %v4131_v37  ;;  %v4172_v1 = vld [vmem:[#allocation11 + $0x15] sm:$0x1]  ;;  %v5245_v37 = vld [vmem:[%s6967_s7 + $0x30] sm:$0xff]  }
 0x950   :  { %v3943_v54 = vadd.f32 %v3941_v19, %v3935_v32  ;;  %v3948_v23 = vadd.f32 %v3946_v63, %v3942_v26  ;;  %5114 = vmatprep.subr.bf16.mxu0 %v6804_v62  ;;  %v4139_v19 = vld [vmem:[#allocation11 + $0x10] sm:$0x1]  ;;  %v4136_v63 = vadd.f32 %v4134_v21, %v4128_v59  ;;  %v4142_v32 = vmul.f32 %v4140_v11, %v4138_v55  ;;  %v4756_v59 = vld [vmem:[%s6966_s6 + $0x9] ss:$0 sm:$0xff] }
 0x951   :  { %v4137_v26 = vadd.f32 %v4135_v20, %v4129_v15 }
 0x952   :  { %v3949_v41 = vadd.f32 %v3947_v60, %v3943_v54  ;;  %v3958_v25 = vadd.f32 %v4706_v35, %v3948_v23  ;;  %v4143_v60 = vmul.f32 %v4140_v11, %v4139_v19  ;;  %v4156_v54 = vrot.slane %v6913_v29, 5 }
 0x953   :  { %5115 = vmatpush3.bf16.msra.mxu0 %v5236_v53  ;;  %v4144_v23 = vadd.f32 %v4142_v32, %v4136_v63  ;;  %v4179_v53 = vld [vmem:[#allocation11 + $0xa] sm:$0x1]  ;;  %v4765_v63 = vld [vmem:[%s6968_s8] ss:$0 sm:$0xff] }
 0x954   :  { %v3959_v17 = vadd.f32 %v4706_v35, %v3949_v41  ;;  %v3960_v34 = vmax.f32 %v3958_v25, 0.0  ;;  %5116 = vmatprep.subr.bf16.mxu0 %v6804_v62  ;;  %v4148_v35 = vrot.slane %v6913_v29, 4  ;;  %v4165_v41 = vrot.slane %v6913_v29, 6 }
 0x956   :  { %v3961_v0 = vmax.f32 %v3959_v17, 0.0  ;;  %v3962_v7 = vpack.c.bf16 %v3960_v34, %v3960_v34  ;;  %v4155_v17 = vld [vmem:[#allocation11 + $0x12] sm:$0x1]  ;;  %v4163_v34 = vld [vmem:[#allocation11 + $0x8] sm:$0x1] }
 0x957   :  { %5117 = vmatpush3.bf16.msra.mxu0 %v5237_v48  ;;  %v4159_v45 = vmul.f32 %v4156_v54, %v4155_v17  ;;  %v4167_v4 = vmul.f32 %v4165_v41, %v4163_v34 }
 0x958   :  { %v3963_v52 = vpack.c.bf16 %v3961_v0, %v3961_v0  ;;  %v3991_v51 = vunpack.c.l.b16 %v3962_v7  ;;  %5118 = vmatprep.subr.bf16.mxu0 %v6804_v62  ;;  %v4145_v0 = vadd.f32 %v4143_v60, %v4137_v26 }
 0x95a   :  { %v3992_v46 = vunpack.c.l.b16 %v3963_v52 }
 0x95b   :  { %5119 = vmatpush3.bf16.msra.mxu0 %v5238_v16 }
 0x95c   :  { %v3993_v39 = vrot.slane %v3992_v46, 7  ;;  %v4173_v46 = vrot.slane %v6913_v29, 7  ;;  %v4181_v29 = vmul.f32 %v4736_v14, %v4179_v53 }
 0x95e   :  { %v3994_v36 = vsel %vm1761_vm1, %v3993_v39, %v3991_v51  ;;  %v4164_v39 = vld [vmem:[#allocation11 + $0x14] sm:$0x1] }
 0x95f   :  { %v3995_v40 = vpack.c.b16 %v3994_v36, %v3994_v36  ;;  %v4171_v36 = vld [vmem:[#allocation11 + $0x9] sm:$0x1] }
 0x961   :  { %5101 = vmatmul.mubr.bf16.vlgmr.msra.gmra.mrb[28].mxu1 %v3995_v40 }
 0x962   :  { %5140 = vmatprep.mubr.msk.bf16.mxu1 %vm5277_vm8, %v6804_v62  ;;  %5125 = vmatpush3.bf16.msra.mxu1 %v5239_v33  ;;  %v4168_v33 = vmul.f32 %v4165_v41, %v4164_v39 }
 0x963   :  { %5126 = vmatprep.subr.bf16.mxu1 %v6804_v62 }
 0x966   :  { %5127 = vmatpush3.bf16.msra.mxu1 %v5240_v49  ;;  %v4175_v49 = vmul.f32 %v4173_v46, %v4171_v36 }
 0x967   :  { %5128 = vmatprep.subr.bf16.mxu1 %v6804_v62 }
 0x96a   :  { %5129 = vmatpush3.bf16.msra.mxu1 %v5241_v8  ;;  %v4180_v8 = vld [vmem:[#allocation11 + $0x16] sm:$0x1] }
 0x96b   :  { %5130 = vmatprep.subr.bf16.mxu1 %v6804_v62  ;;  %v4182_v31 = vmul.f32 %v4736_v14, %v4180_v8 }
 0x96e   :  { %5131 = vmatpush3.bf16.msra.mxu1 %v5242_v58 }
 0x96f   :  { %5132 = vmatprep.subr.bf16.mxu1 %v6804_v62 }
 0x972   :  { %5133 = vmatpush3.bf16.msra.mxu1 %v5243_v6 }
 0x973   :  { %5134 = vmatprep.subr.bf16.mxu1 %v6804_v62 }
 0x976   :  { %5135 = vmatpush3.bf16.msra.mxu1 %v5244_v12  ;;  %v4176_v12 = vmul.f32 %v4173_v46, %v4172_v1 }
 0x977   :  { %5136 = vmatprep.subr.bf16.mxu1 %v6804_v62 }
 0x97a   :  { %5137 = vmatpush3.bf16.msra.mxu1 %v5245_v37 }
 0x97b   :  { %5138 = vmatprep.subr.bf16.mxu1 %v6804_v62 }
 0xa34   :  { %v4079_v27 = vpop.f32.mrb[28].mxu1 }
 0xa35   :  { %v4080_v22 = vadd.f32 %v4724_v44, %v4079_v27  ;;  %v5102_v18 = vpop.f32.mrb[29].mxu1 }
 0xa36   :  { %v4082_v3 = vpop.f32.mrb[30].mxu1 }
 0xa37   :  { %v4085_v10 = vmax.f32 %v4080_v22, 0.0  ;;  %v5103_v2 = vpop.f32.mrb[31].mxu1 }
 0xa39   :  { %v4093_v28 = vrot.slane %v4085_v10, %v6715_v43  ;;  %v4154_v43 = vld [vmem:[#allocation11 + $0x6] sm:$0x1] }
 0xa3a   :  { %v4158_v52 = vmul.f32 %v4156_v54, %v4154_v43 }
 0xa3b   :  { %v4094_v5 = vcombine.high %v4093_v28, %v4093_v28  ;;  %4733 = vst.sshfl [vmem:[#allocation11 + $0x5] sm:$0x1 pattern:$0x73625140] %v4093_v28  ;;  %v5246_v28 = vld [vmem:[%s6967_s7 + $0x38] sm:$0xff]   ;;  %s5279_s7 = smov [#allocation12]  }
 0xa3c   :  { %5139 = vmatpush3.bf16.msra.mxu1 %v5246_v28  ;;  %s4440_s22 = sshll.u32 %s5279_s7, 4  ;;  %s4441_s22 = int_to_ptr.vmem [resolvable:$true] %s4440_s22 }
 0xa3d   :  { %4734 = vst.sshfl [vmem:[#allocation11 + $0x11] sm:$0x1 pattern:$0x73625140] %v4094_v5  ;;  %s5251_s6 = scalar_lea.vmem %s4441_s22, 32  ;;  %p5256_p1 = scmp.lt.s32.totalorder %s4441_s22, %s4441_s22 }
 0xa3e   :  { %p5252_p0 = scmp.ne.s32.totalorder %s4441_s22, %s5251_s6  ;;  %p5257_p2 = scmp.lt.s32.totalorder %s5251_s6, %s5251_s6 }
 0xa40   :  { %p5258_p3 = por %p5257_p2, %p5256_p1 }
 0xa42   :  { %v4146_v25 = vld [vmem:[#allocation11 + $0x5] sm:$0x1]  ;;  %p5259_p4 = pnand %p5258_p3, %p5252_p0 }
 0xa43   :  { %v4150_v7 = vmul.f32 %v4148_v35, %v4146_v25 }
 0xa44   :  { %v4147_v51 = vld [vmem:[#allocation11 + $0x11] sm:$0x1] }
 0xa45   :  { %v4151_v40 = vmul.f32 %v4148_v35, %v4147_v51  ;;  %v4152_v56 = vadd.f32 %v4150_v7, %v4144_v23 }
 0xa47   :  { %v4153_v48 = vadd.f32 %v4151_v40, %v4145_v0  ;;  %v4160_v16 = vadd.f32 %v4158_v52, %v4152_v56 }
 0xa49   :  { %v4161_v58 = vadd.f32 %v4159_v45, %v4153_v48  ;;  %v4169_v6 = vadd.f32 %v4167_v4, %v4160_v16 }
 0xa4b   :  { %v4170_v13 = vadd.f32 %v4168_v33, %v4161_v58  ;;  %v4177_v44 = vadd.f32 %v4175_v49, %v4169_v6 }
 0xa4d   :  { %v4178_v27 = vadd.f32 %v4176_v12, %v4170_v13  ;;  %v4183_v61 = vadd.f32 %v4181_v29, %v4177_v44 }
 0xa4f   :  { %v4184_v38 = vadd.f32 %v4182_v31, %v4178_v27  ;;  %v4193_v22 = vadd.f32 %v4738_v57, %v4183_v61 }
 0xa51   :  { %v4194_v18 = vadd.f32 %v4738_v57, %v4184_v38  ;;  %v4195_v50 = vmax.f32 %v4193_v22, 0.0 }
 0xa53   :  { %v4196_v24 = vmax.f32 %v4194_v18, 0.0  ;;  %v4197_v47 = vpack.c.bf16 %v4195_v50, %v4195_v50 }
 0xa55   :  { %v4198_v3 = vpack.c.bf16 %v4196_v24, %v4196_v24  ;;  %v4226_v10 = vunpack.c.l.b16 %v4197_v47 }
 0xa57   :  { %v4227_v30 = vunpack.c.l.b16 %v4198_v3 }
 0xa59   :  { %v4228_v2 = vrot.slane %v4227_v30, 7 }
 0xa5b   :  { %v4229_v9 = vsel %vm1761_vm1, %v4228_v2, %v4226_v10 }
 0xa5c   :  { %v4230_v42 = vpack.c.b16 %v4229_v9, %v4229_v9 }
 0xa5e   :  { %5121 = vmatmul.mubr.bf16.vlgmr.msra.gmra.mrb[32].mxu0 %v4230_v42 }
 0xb31   :  { %v4314_v21 = vpop.f32.mrb[32].mxu0 }
 0xb32   :  { %v4315_v11 = vadd.f32 %v4756_v59, %v4314_v21  ;;  %v5122_v55 = vpop.f32.mrb[33].mxu0 }
 0xb33   :  { %v4317_v5 = vpop.f32.mrb[34].mxu0 }
 0xb34   :  { %v4320_v15 = vmax.f32 %v4315_v11, 0.0  ;;  %v5123_v20 = vpop.f32.mrb[35].mxu0 }
 0xb36   :  { %v4321_v19 = vpack.c.bf16 %v4320_v15, %v4320_v15 }
 0xb38   :  { %5141 = vmatmul.mubr.bf16.vlgmr.msra.gmra.mrb[32].mxu1 %v4321_v19 }
 0xc0b   :  { %v4427_v62 = vpop.f32.mrb[32].mxu1 }
 0xc0c   :  { %v4428_v32 = vadd.f32 %v4765_v63, %v4427_v62  ;;  %v5142_v26 = vpop.f32.mrb[33].mxu1 }
 0xc0d   :  { %v4430_v60 = vpop.f32.mrb[34].mxu1 }
 0xc0e   :  { %4433 = vst [vmem:[#allocation12] sm:$0x3] %v4428_v32  ;;  %v5143_v35 = vpop.f32.mrb[35].mxu1 }
 0xc0f   :  { %5262 = shalt.err (!%p5259_p4)
}
 0xc10   :  { %s5263_s8 = scalar_lea.hbm %s6969_s9, 32 }
 0xc11   :  { %p5264_p5 = scmp.ne.s32.totalorder %s6969_s9, %s5263_s8  ;;  %p5267_p6 = scmp.lt.u32.totalorder %s5263_s8, %s6969_s9 }
 0xc13   :  { %p5269_p7 = pnand %p5267_p6, %p5264_p5 }
 0xc15   :  { %5272 = shalt.err (!%p5269_p7)
}
 0xc16   :  { %4443 = dma.vmem_to_hbm [thread:$0]  %s4441_s22, 32, %s6969_s9, [#allocation13]  }
 0xc17   :  { %5273 = dma.done.wait [#allocation13], 32  }
 0xc18   :  { %5274 = vsyncadd [#allocation13], 4294967264 }
 0xc19   :  { %4447 = vsyncpa [#allocation13], 1 }

</bundles_post_ra>
